<compile_context>
chip_gen: v6e
topology: v6e:2x2x1
jax: 0.10.0
libtpu: 0.0.40
codegen_flags: <defaults>
</compile_context>

<pallas_src>
import jax
import jax.numpy as jnp
from jax import lax
from jax.experimental import pallas as pl
from jax.experimental.pallas import tpu as pltpu

LANE = 128          # lane width: Cout is padded to this for lane-dense stores
MAX_TILE_M = 512    # rows of P per grid step

_COMPILER_PARAMS = pltpu.CompilerParams(
    dimension_semantics=("parallel",),
    vmem_limit_bytes=32 * 1024 * 1024,
)


# ----------------------------------------------------------------------------
# Pallas kernels
# ----------------------------------------------------------------------------
def _conv_bn_stats_kernel(p_ref, w_ref, y_ref, s_ref, ss_ref):
    """y = P @ W (bf16 in, f32 acc); emit per-tile sum / sumsq for BatchNorm."""
    y = jnp.dot(p_ref[...], w_ref[...], preferred_element_type=jnp.float32)
    y_ref[...] = y
    s = jnp.sum(y, axis=0, keepdims=True)          # (1, LANE)
    ss = jnp.sum(y * y, axis=0, keepdims=True)     # (1, LANE)
    s_ref[...] = s.reshape(1, 1, LANE)
    ss_ref[...] = ss.reshape(1, 1, LANE)


def _conv_bias_sigmoid_kernel(p_ref, w_ref, b_ref, y_ref):
    """Last layer: y = sigmoid(P @ W + b), no BatchNorm."""
    y = jnp.dot(p_ref[...], w_ref[...], preferred_element_type=jnp.float32)
    y = y + b_ref[...]
    # numerically stable sigmoid routed through the EUP (tanh)
    y_ref[...] = 0.5 * (jnp.tanh(0.5 * y) + 1.0)


def _bn_leaky_kernel(y_ref, sc_ref, sh_ref, o_ref):
    """Per-channel affine (folded BatchNorm) + LeakyReLU(0.2); bf16 store."""
    o = y_ref[...] * sc_ref[...] + sh_ref[...]
    o_ref[...] = jnp.where(o > 0, o, 0.2 * o).astype(o_ref.dtype)


# ----------------------------------------------------------------------------
# pallas_call wrappers (M-tiled, parallel grid, lane-dense outputs)
# ----------------------------------------------------------------------------
def _tile_m(mp):
    return min(MAX_TILE_M, mp)


def conv_matmul_bn_stats(P, Wm):
    mp, K = P.shape
    tm = _tile_m(mp)
    nt = mp // tm
    return pl.pallas_call(
        _conv_bn_stats_kernel,
        out_shape=(
            jax.ShapeDtypeStruct((mp, LANE), jnp.float32),       # pre-BN conv out
            jax.ShapeDtypeStruct((nt, 1, LANE), jnp.float32),    # partial sum
            jax.ShapeDtypeStruct((nt, 1, LANE), jnp.float32),    # partial sumsq
        ),
        grid=(nt,),
        in_specs=[
            pl.BlockSpec((tm, K), lambda i: (i, 0)),
            pl.BlockSpec((K, LANE), lambda i: (0, 0)),
        ],
        out_specs=(
            pl.BlockSpec((tm, LANE), lambda i: (i, 0)),
            pl.BlockSpec((1, 1, LANE), lambda i: (i, 0, 0)),
            pl.BlockSpec((1, 1, LANE), lambda i: (i, 0, 0)),
        ),
        compiler_params=_COMPILER_PARAMS,
    )(P, Wm)


def conv_matmul_bias_sigmoid(P, Wm, bias):
    mp, K = P.shape
    tm = _tile_m(mp)
    nt = mp // tm
    return pl.pallas_call(
        _conv_bias_sigmoid_kernel,
        out_shape=jax.ShapeDtypeStruct((mp, LANE), jnp.float32),
        grid=(nt,),
        in_specs=[
            pl.BlockSpec((tm, K), lambda i: (i, 0)),
            pl.BlockSpec((K, LANE), lambda i: (0, 0)),
            pl.BlockSpec((1, LANE), lambda i: (0, 0)),
        ],
        out_specs=pl.BlockSpec((tm, LANE), lambda i: (i, 0)),
        compiler_params=_COMPILER_PARAMS,
    )(P, Wm, bias)


def bn_leaky(y, scale, shift):
    mp, c = y.shape
    tm = _tile_m(mp)
    nt = mp // tm
    return pl.pallas_call(
        _bn_leaky_kernel,
        out_shape=jax.ShapeDtypeStruct((mp, c), jnp.bfloat16),
        grid=(nt,),
        in_specs=[
            pl.BlockSpec((tm, c), lambda i: (i, 0)),
            pl.BlockSpec((1, c), lambda i: (0, 0)),
            pl.BlockSpec((1, c), lambda i: (0, 0)),
        ],
        out_specs=pl.BlockSpec((tm, c), lambda i: (i, 0)),
        compiler_params=_COMPILER_PARAMS,
    )(y, scale, shift)


# ----------------------------------------------------------------------------
# JAX glue: channels-last im2col, per-layer driver, init, forward
# ----------------------------------------------------------------------------
def _to3(v):
    return tuple(v) if isinstance(v, (tuple, list)) else (v, v, v)


def _round_up(x, m):
    return -(-x // m) * m


def im2col_3d_cl(x, k, s, p):
    """x: (N, D, H, W, C) channels-last -> P:(N*Do*Ho*Wo, C*kd*kh*kw)."""
    kd, kh, kw = k
    sd, sh, sw = s
    pd, ph, pw = p
    x = jnp.pad(x, ((0, 0), (pd, pd), (ph, ph), (pw, pw), (0, 0)))
    N, D, H, W, C = x.shape
    Do = (D - kd) // sd + 1
    Ho = (H - kh) // sh + 1
    Wo = (W - kw) // sw + 1
    cols = []
    for dz in range(kd):
        for dy in range(kh):
            for dx in range(kw):
                cols.append(x[:, dz:dz + sd * Do:sd,
                              dy:dy + sh * Ho:sh,
                              dx:dx + sw * Wo:sw, :])
    cols = jnp.stack(cols, axis=-1)                       # (N,Do,Ho,Wo,C,T)
    P = cols.reshape(N * Do * Ho * Wo, C * kd * kh * kw)  # K order = (Cin, kd, kh, kw)
    return P, (N, Do, Ho, Wo)


def conv3d_layer(x_cl, w, b, gamma, beta, stride, padding, *, use_bn, eps=1e-5):
    Cout, Cin, kd, kh, kw = w.shape
    assert Cout <= LANE
    P, (N, Do, Ho, Wo) = im2col_3d_cl(x_cl, (kd, kh, kw), _to3(stride), _to3(padding))
    M, K = P.shape

    # pad M so the tile evenly divides it (zero rows contribute 0 to BN sums)
    Mp = _round_up(M, 8)
    if Mp > MAX_TILE_M:
        Mp = _round_up(Mp, MAX_TILE_M)
    if Mp != M:
        P = jnp.pad(P, ((0, Mp - M), (0, 0)))
    P = P.astype(jnp.bfloat16)

    # weight: (Cout, Cin, kd, kh, kw) -> (K, Cout) -> lane-pad to (K, 128), bf16
    Wm = w.reshape(Cout, Cin * kd * kh * kw).T
    Wm = jnp.pad(Wm, ((0, 0), (0, LANE - Cout))).astype(jnp.bfloat16)

    if use_bn:
        # conv bias is dropped: it is exactly cancelled by mean subtraction.
        y, s_p, ss_p = conv_matmul_bn_stats(P, Wm)
        s = jnp.sum(s_p, axis=0)              # (1, LANE)
        ss = jnp.sum(ss_p, axis=0)            # (1, LANE)
        mean = s / M                          # biased stats over N*D*H*W (= M)
        var = jnp.maximum(ss / M - mean * mean, 0.0)
        gpad = jnp.pad(gamma, (0, LANE - Cout)).reshape(1, LANE)
        bpad = jnp.pad(beta, (0, LANE - Cout)).reshape(1, LANE)
        scale = gpad * lax.rsqrt(var + eps)
        shift = bpad - mean * scale
        a = bn_leaky(y, scale, shift)         # (Mp, LANE) bf16
        # TODO(synk): running_mean / running_var momentum updates not modeled.
    else:
        bias = jnp.pad(b, (0, LANE - Cout)).reshape(1, LANE)
        a = conv_matmul_bias_sigmoid(P, Wm, bias)   # (Mp, LANE) f32

    return a[:M, :Cout].reshape(N, Do, Ho, Wo, Cout)


def init_params(key, channels, kernels):
    cin_list = [1] + list(channels[:-1])
    params = []
    for cin, cout, k in zip(cin_list, channels, kernels):
        kd, kh, kw = _to3(k)
        key, kw_, kb_ = jax.random.split(key, 3)
        fan_in = cin * kd * kh * kw
        bound = 1.0 / float(fan_in) ** 0.5        # PyTorch default conv init range
        w = jax.random.uniform(kw_, (cout, cin, kd, kh, kw), jnp.float32, -bound, bound)
        b = jax.random.uniform(kb_, (cout,), jnp.float32, -bound, bound)
        gamma = jnp.ones((cout,), jnp.float32)    # BatchNorm default weight
        beta = jnp.zeros((cout,), jnp.float32)    # BatchNorm default bias
        params.append((w, b, gamma, beta))
    return params


def discriminator_forward(params, x, strides, paddings):
    # x: (seq_len, batch, 1, H, W) -- same input as the torch forward.
    # torch permutes to NCDHW = (batch, 1, seq, H, W); we keep channels-last:
    x = jnp.transpose(x, (1, 0, 3, 4, 2)).astype(jnp.bfloat16)   # (N, D, H, W, C)
    n = len(params)
    for i, (w, b, g, be) in enumerate(params):
        last = (i == n - 1)
        x = conv3d_layer(x, w, b, g, be, strides[i], paddings[i], use_bn=not last)
    x = jnp.transpose(x, (0, 4, 1, 2, 3))                        # back to NCDHW
    return jnp.squeeze(x.astype(jnp.float32))                    # .squeeze()


if __name__ == "__main__":
    # Small deterministic configuration consistent with the module's __init__
    channels = (8, 16, 32, 32, 64, 1)
    kernels = (3, 4, 4, 3, (2, 4, 4), 1)
    strides = (1, 2, 2, 1, 1, 1)
    paddings = (1, 1, 1, 1, 0, 0)

    key = jax.random.PRNGKey(0)
    key, xkey = jax.random.split(key)
    # (seq_len=8, batch=2, C=1, H=16, W=16)
    x = jax.random.normal(xkey, (8, 2, 1, 16, 16), jnp.float32)
    params = init_params(key, channels, kernels)

    fwd = jax.jit(lambda p, xx: discriminator_forward(p, xx, strides, paddings))
    out = fwd(params, x)
    out = jax.block_until_ready(out)
    assert out.shape == (2,), out.shape
    assert bool(jnp.all((out >= 0.0) & (out <= 1.0)))
    print("KERNEL_OK")
</pallas_src>

<mosaic_0001>
module attributes {stable_mosaic.version = 11 : i64} {
  func.func @_conv_bn_stats_kernel(%arg0: i32, %arg1: memref<512x27xbf16, #tpu.memory_space<vmem>>, %arg2: memref<27x128xbf16, #tpu.memory_space<vmem>>, %arg3: memref<512x128xf32, #tpu.memory_space<vmem>>, %arg4: memref<1x1x128xf32, #tpu.memory_space<vmem>>, %arg5: memref<1x1x128xf32, #tpu.memory_space<vmem>>) attributes {dimension_semantics = [#tpu.dimension_semantics<parallel>], iteration_bounds = array<i64: 8>, scalar_prefetch = 0 : i64, scratch_operands = 0 : i64, tpu.core_type = #tpu.core_type<tc>, window_params = [{transform_indices = @transform_0, window_bounds = array<i64: 512, 27>}, {pipeline_mode = #tpu.pipeline_mode<synchronous>, transform_indices = @transform_1, window_bounds = array<i64: 27, 128>}, {transform_indices = @transform_2, window_bounds = array<i64: 512, 128>}, {transform_indices = @transform_3, window_bounds = array<i64: 1, 1, 128>}, {transform_indices = @transform_4, window_bounds = array<i64: 1, 1, 128>}]} {
    %c0 = arith.constant 0 : index
    %c0_0 = arith.constant 0 : index
    %0 = vector.load %arg1[%c0, %c0_0] : memref<512x27xbf16, #tpu.memory_space<vmem>>, vector<512x27xbf16>
    %c0_1 = arith.constant 0 : index
    %c0_2 = arith.constant 0 : index
    %1 = vector.load %arg2[%c0_1, %c0_2] : memref<27x128xbf16, #tpu.memory_space<vmem>>, vector<27x128xbf16>
    %cst = arith.constant dense<0.000000e+00> : vector<512x128xf32>
    %2 = tpu.matmul %0, %1, %cst {dimension_numbers = #tpu.dot_dimension_numbers<[1], [0], [0], [1], [0, 0, 1, 1], [], []>} : vector<512x27xbf16>, vector<27x128xbf16>, vector<512x128xf32> -> vector<512x128xf32>
    %c0_3 = arith.constant 0 : index
    %c0_4 = arith.constant 0 : index
    %3 = vector.load %arg3[%c0_3, %c0_4] : memref<512x128xf32, #tpu.memory_space<vmem>>, vector<512x128xf32>
    tpu.vector_store %arg3[%c0_3, %c0_4], %2 {strides = array<i32>} : memref<512x128xf32, #tpu.memory_space<vmem>>, vector<512x128xf32>,
    %cst_5 = arith.constant dense<0.000000e+00> : vector<128xf32>
    %4 = vector.multi_reduction <add>, %2, %cst_5 [0] : vector<512x128xf32> to vector<128xf32>
    %5 = vector.shape_cast %4 : vector<128xf32> to vector<1x128xf32>
    %6 = arith.mulf %2, %2 : vector<512x128xf32>
    %cst_6 = arith.constant dense<0.000000e+00> : vector<128xf32>
    %7 = vector.multi_reduction <add>, %6, %cst_6 [0] : vector<512x128xf32> to vector<128xf32>
    %8 = vector.shape_cast %7 : vector<128xf32> to vector<1x128xf32>
    %9 = vector.shape_cast %5 : vector<1x128xf32> to vector<1x1x128xf32>
    %c0_7 = arith.constant 0 : index
    %c0_8 = arith.constant 0 : index
    %c0_9 = arith.constant 0 : index
    %10 = vector.load %arg4[%c0_7, %c0_8, %c0_9] : memref<1x1x128xf32, #tpu.memory_space<vmem>>, vector<1x1x128xf32>
    tpu.vector_store %arg4[%c0_7, %c0_8, %c0_9], %9 {strides = array<i32>} : memref<1x1x128xf32, #tpu.memory_space<vmem>>, vector<1x1x128xf32>,
    %11 = vector.shape_cast %8 : vector<1x128xf32> to vector<1x1x128xf32>
    %c0_10 = arith.constant 0 : index
    %c0_11 = arith.constant 0 : index
    %c0_12 = arith.constant 0 : index
    %12 = vector.load %arg5[%c0_10, %c0_11, %c0_12] : memref<1x1x128xf32, #tpu.memory_space<vmem>>, vector<1x1x128xf32>
    tpu.vector_store %arg5[%c0_10, %c0_11, %c0_12], %11 {strides = array<i32>} : memref<1x1x128xf32, #tpu.memory_space<vmem>>, vector<1x1x128xf32>,
    return
  }
  func.func @transform_0(%arg0: i32) -> (i32, i32) {
    %c0_i32 = arith.constant 0 : i32
    %c0_i32_0 = arith.constant 0 : i32
    return %arg0, %c0_i32 : i32, i32
  }
  func.func @transform_1(%arg0: i32) -> (i32, i32) {
    %c0_i32 = arith.constant 0 : i32
    %c0_i32_0 = arith.constant 0 : i32
    %c0_i32_1 = arith.constant 0 : i32
    return %c0_i32, %c0_i32_0 : i32, i32
  }
  func.func @transform_2(%arg0: i32) -> (i32, i32) {
    %c0_i32 = arith.constant 0 : i32
    %c0_i32_0 = arith.constant 0 : i32
    return %arg0, %c0_i32 : i32, i32
  }
  func.func @transform_3(%arg0: i32) -> (i32, i32, i32) {
    %c0_i32 = arith.constant 0 : i32
    %c0_i32_0 = arith.constant 0 : i32
    %c0_i32_1 = arith.constant 0 : i32
    return %arg0, %c0_i32, %c0_i32_0 : i32, i32, i32
  }
  func.func @transform_4(%arg0: i32) -> (i32, i32, i32) {
    %c0_i32 = arith.constant 0 : i32
    %c0_i32_0 = arith.constant 0 : i32
    %c0_i32_1 = arith.constant 0 : i32
    return %arg0, %c0_i32, %c0_i32_0 : i32, i32, i32
  }
}

module attributes {stable_mosaic.version = 11 : i64} {
  func.func @_bn_leaky_kernel(%arg0: i32, %arg1: memref<512x128xf32, #tpu.memory_space<vmem>>, %arg2: memref<1x128xf32, #tpu.memory_space<vmem>>, %arg3: memref<1x128xf32, #tpu.memory_space<vmem>>, %arg4: memref<512x128xbf16, #tpu.memory_space<vmem>>) attributes {dimension_semantics = [#tpu.dimension_semantics<parallel>], iteration_bounds = array<i64: 8>, scalar_prefetch = 0 : i64, scratch_operands = 0 : i64, tpu.core_type = #tpu.core_type<tc>, window_params = [{transform_indices = @transform_0, window_bounds = array<i64: 512, 128>}, {pipeline_mode = #tpu.pipeline_mode<synchronous>, transform_indices = @transform_1, window_bounds = array<i64: 1, 128>}, {pipeline_mode = #tpu.pipeline_mode<synchronous>, transform_indices = @transform_2, window_bounds = array<i64: 1, 128>}, {transform_indices = @transform_3, window_bounds = array<i64: 512, 128>}]} {
    %c0 = arith.constant 0 : index
    %c0_0 = arith.constant 0 : index
    %0 = vector.load %arg1[%c0, %c0_0] : memref<512x128xf32, #tpu.memory_space<vmem>>, vector<512x128xf32>
    %c0_1 = arith.constant 0 : index
    %c0_2 = arith.constant 0 : index
    %1 = vector.load %arg2[%c0_1, %c0_2] : memref<1x128xf32, #tpu.memory_space<vmem>>, vector<1x128xf32>
    %2 = vector.broadcast %1 : vector<1x128xf32> to vector<512x128xf32>
    %3 = arith.mulf %0, %2 : vector<512x128xf32>
    %c0_3 = arith.constant 0 : index
    %c0_4 = arith.constant 0 : index
    %4 = vector.load %arg3[%c0_3, %c0_4] : memref<1x128xf32, #tpu.memory_space<vmem>>, vector<1x128xf32>
    %5 = vector.broadcast %4 : vector<1x128xf32> to vector<512x128xf32>
    %6 = arith.addf %3, %5 : vector<512x128xf32>
    %cst = arith.constant 0.000000e+00 : f32
    %7 = vector.broadcast %cst : f32 to vector<512x128xf32>
    %8 = arith.cmpf ogt, %6, %7 : vector<512x128xf32>
    %cst_5 = arith.constant 2.000000e-01 : f32
    %9 = vector.broadcast %cst_5 : f32 to vector<512x128xf32>
    %10 = arith.mulf %9, %6 : vector<512x128xf32>
    %11 = arith.select %8, %6, %10 : vector<512x128xi1>, vector<512x128xf32>
    %12 = arith.truncf %11 : vector<512x128xf32> to vector<512x128xbf16>
    %c0_6 = arith.constant 0 : index
    %c0_7 = arith.constant 0 : index
    %13 = vector.load %arg4[%c0_6, %c0_7] : memref<512x128xbf16, #tpu.memory_space<vmem>>, vector<512x128xbf16>
    tpu.vector_store %arg4[%c0_6, %c0_7], %12 {strides = array<i32>} : memref<512x128xbf16, #tpu.memory_space<vmem>>, vector<512x128xbf16>,
    return
  }
  func.func @transform_0(%arg0: i32) -> (i32, i32) {
    %c0_i32 = arith.constant 0 : i32
    %c0_i32_0 = arith.constant 0 : i32
    return %arg0, %c0_i32 : i32, i32
  }
  func.func @transform_1(%arg0: i32) -> (i32, i32) {
    %c0_i32 = arith.constant 0 : i32
    %c0_i32_0 = arith.constant 0 : i32
    %c0_i32_1 = arith.constant 0 : i32
    return %c0_i32, %c0_i32_0 : i32, i32
  }
  func.func @transform_2(%arg0: i32) -> (i32, i32) {
    %c0_i32 = arith.constant 0 : i32
    %c0_i32_0 = arith.constant 0 : i32
    %c0_i32_1 = arith.constant 0 : i32
    return %c0_i32, %c0_i32_0 : i32, i32
  }
  func.func @transform_3(%arg0: i32) -> (i32, i32) {
    %c0_i32 = arith.constant 0 : i32
    %c0_i32_0 = arith.constant 0 : i32
    return %arg0, %c0_i32 : i32, i32
  }
}

module attributes {stable_mosaic.version = 11 : i64} {
  func.func @_conv_bn_stats_kernel(%arg0: i32, %arg1: memref<512x512xbf16, #tpu.memory_space<vmem>>, %arg2: memref<512x128xbf16, #tpu.memory_space<vmem>>, %arg3: memref<512x128xf32, #tpu.memory_space<vmem>>, %arg4: memref<1x1x128xf32, #tpu.memory_space<vmem>>, %arg5: memref<1x1x128xf32, #tpu.memory_space<vmem>>) attributes {dimension_semantics = [#tpu.dimension_semantics<parallel>], iteration_bounds = array<i64: 1>, scalar_prefetch = 0 : i64, scratch_operands = 0 : i64, tpu.core_type = #tpu.core_type<tc>, window_params = [{transform_indices = @transform_0, window_bounds = array<i64: 512, 512>}, {pipeline_mode = #tpu.pipeline_mode<synchronous>, transform_indices = @transform_1, window_bounds = array<i64: 512, 128>}, {transform_indices = @transform_2, window_bounds = array<i64: 512, 128>}, {transform_indices = @transform_3, window_bounds = array<i64: 1, 1, 128>}, {transform_indices = @transform_4, window_bounds = array<i64: 1, 1, 128>}]} {
    %c0 = arith.constant 0 : index
    %c0_0 = arith.constant 0 : index
    %0 = vector.load %arg1[%c0, %c0_0] : memref<512x512xbf16, #tpu.memory_space<vmem>>, vector<512x512xbf16>
    %c0_1 = arith.constant 0 : index
    %c0_2 = arith.constant 0 : index
    %1 = vector.load %arg2[%c0_1, %c0_2] : memref<512x128xbf16, #tpu.memory_space<vmem>>, vector<512x128xbf16>
    %cst = arith.constant dense<0.000000e+00> : vector<512x128xf32>
    %2 = tpu.matmul %0, %1, %cst {dimension_numbers = #tpu.dot_dimension_numbers<[1], [0], [0], [1], [0, 0, 1, 1], [], []>} : vector<512x512xbf16>, vector<512x128xbf16>, vector<512x128xf32> -> vector<512x128xf32>
    %c0_3 = arith.constant 0 : index
    %c0_4 = arith.constant 0 : index
    %3 = vector.load %arg3[%c0_3, %c0_4] : memref<512x128xf32, #tpu.memory_space<vmem>>, vector<512x128xf32>
    tpu.vector_store %arg3[%c0_3, %c0_4], %2 {strides = array<i32>} : memref<512x128xf32, #tpu.memory_space<vmem>>, vector<512x128xf32>,
    %cst_5 = arith.constant dense<0.000000e+00> : vector<128xf32>
    %4 = vector.multi_reduction <add>, %2, %cst_5 [0] : vector<512x128xf32> to vector<128xf32>
    %5 = vector.shape_cast %4 : vector<128xf32> to vector<1x128xf32>
    %6 = arith.mulf %2, %2 : vector<512x128xf32>
    %cst_6 = arith.constant dense<0.000000e+00> : vector<128xf32>
    %7 = vector.multi_reduction <add>, %6, %cst_6 [0] : vector<512x128xf32> to vector<128xf32>
    %8 = vector.shape_cast %7 : vector<128xf32> to vector<1x128xf32>
    %9 = vector.shape_cast %5 : vector<1x128xf32> to vector<1x1x128xf32>
    %c0_7 = arith.constant 0 : index
    %c0_8 = arith.constant 0 : index
    %c0_9 = arith.constant 0 : index
    %10 = vector.load %arg4[%c0_7, %c0_8, %c0_9] : memref<1x1x128xf32, #tpu.memory_space<vmem>>, vector<1x1x128xf32>
    tpu.vector_store %arg4[%c0_7, %c0_8, %c0_9], %9 {strides = array<i32>} : memref<1x1x128xf32, #tpu.memory_space<vmem>>, vector<1x1x128xf32>,
    %11 = vector.shape_cast %8 : vector<1x128xf32> to vector<1x1x128xf32>
    %c0_10 = arith.constant 0 : index
    %c0_11 = arith.constant 0 : index
    %c0_12 = arith.constant 0 : index
    %12 = vector.load %arg5[%c0_10, %c0_11, %c0_12] : memref<1x1x128xf32, #tpu.memory_space<vmem>>, vector<1x1x128xf32>
    tpu.vector_store %arg5[%c0_10, %c0_11, %c0_12], %11 {strides = array<i32>} : memref<1x1x128xf32, #tpu.memory_space<vmem>>, vector<1x1x128xf32>,
    return
  }
  func.func @transform_0(%arg0: i32) -> (i32, i32) {
    %c0_i32 = arith.constant 0 : i32
    %c0_i32_0 = arith.constant 0 : i32
    return %arg0, %c0_i32 : i32, i32
  }
  func.func @transform_1(%arg0: i32) -> (i32, i32) {
    %c0_i32 = arith.constant 0 : i32
    %c0_i32_0 = arith.constant 0 : i32
    %c0_i32_1 = arith.constant 0 : i32
    return %c0_i32, %c0_i32_0 : i32, i32
  }
  func.func @transform_2(%arg0: i32) -> (i32, i32) {
    %c0_i32 = arith.constant 0 : i32
    %c0_i32_0 = arith.constant 0 : i32
    return %arg0, %c0_i32 : i32, i32
  }
  func.func @transform_3(%arg0: i32) -> (i32, i32, i32) {
    %c0_i32 = arith.constant 0 : i32
    %c0_i32_0 = arith.constant 0 : i32
    %c0_i32_1 = arith.constant 0 : i32
    return %arg0, %c0_i32, %c0_i32_0 : i32, i32, i32
  }
  func.func @transform_4(%arg0: i32) -> (i32, i32, i32) {
    %c0_i32 = arith.constant 0 : i32
    %c0_i32_0 = arith.constant 0 : i32
    %c0_i32_1 = arith.constant 0 : i32
    return %arg0, %c0_i32, %c0_i32_0 : i32, i32, i32
  }
}

module attributes {stable_mosaic.version = 11 : i64} {
  func.func @_bn_leaky_kernel(%arg0: i32, %arg1: memref<512x128xf32, #tpu.memory_space<vmem>>, %arg2: memref<1x128xf32, #tpu.memory_space<vmem>>, %arg3: memref<1x128xf32, #tpu.memory_space<vmem>>, %arg4: memref<512x128xbf16, #tpu.memory_space<vmem>>) attributes {dimension_semantics = [#tpu.dimension_semantics<parallel>], iteration_bounds = array<i64: 1>, scalar_prefetch = 0 : i64, scratch_operands = 0 : i64, tpu.core_type = #tpu.core_type<tc>, window_params = [{transform_indices = @transform_0, window_bounds = array<i64: 512, 128>}, {pipeline_mode = #tpu.pipeline_mode<synchronous>, transform_indices = @transform_1, window_bounds = array<i64: 1, 128>}, {pipeline_mode = #tpu.pipeline_mode<synchronous>, transform_indices = @transform_2, window_bounds = array<i64: 1, 128>}, {transform_indices = @transform_3, window_bounds = array<i64: 512, 128>}]} {
    %c0 = arith.constant 0 : index
    %c0_0 = arith.constant 0 : index
    %0 = vector.load %arg1[%c0, %c0_0] : memref<512x128xf32, #tpu.memory_space<vmem>>, vector<512x128xf32>
    %c0_1 = arith.constant 0 : index
    %c0_2 = arith.constant 0 : index
    %1 = vector.load %arg2[%c0_1, %c0_2] : memref<1x128xf32, #tpu.memory_space<vmem>>, vector<1x128xf32>
    %2 = vector.broadcast %1 : vector<1x128xf32> to vector<512x128xf32>
    %3 = arith.mulf %0, %2 : vector<512x128xf32>
    %c0_3 = arith.constant 0 : index
    %c0_4 = arith.constant 0 : index
    %4 = vector.load %arg3[%c0_3, %c0_4] : memref<1x128xf32, #tpu.memory_space<vmem>>, vector<1x128xf32>
    %5 = vector.broadcast %4 : vector<1x128xf32> to vector<512x128xf32>
    %6 = arith.addf %3, %5 : vector<512x128xf32>
    %cst = arith.constant 0.000000e+00 : f32
    %7 = vector.broadcast %cst : f32 to vector<512x128xf32>
    %8 = arith.cmpf ogt, %6, %7 : vector<512x128xf32>
    %cst_5 = arith.constant 2.000000e-01 : f32
    %9 = vector.broadcast %cst_5 : f32 to vector<512x128xf32>
    %10 = arith.mulf %9, %6 : vector<512x128xf32>
    %11 = arith.select %8, %6, %10 : vector<512x128xi1>, vector<512x128xf32>
    %12 = arith.truncf %11 : vector<512x128xf32> to vector<512x128xbf16>
    %c0_6 = arith.constant 0 : index
    %c0_7 = arith.constant 0 : index
    %13 = vector.load %arg4[%c0_6, %c0_7] : memref<512x128xbf16, #tpu.memory_space<vmem>>, vector<512x128xbf16>
    tpu.vector_store %arg4[%c0_6, %c0_7], %12 {strides = array<i32>} : memref<512x128xbf16, #tpu.memory_space<vmem>>, vector<512x128xbf16>,
    return
  }
  func.func @transform_0(%arg0: i32) -> (i32, i32) {
    %c0_i32 = arith.constant 0 : i32
    %c0_i32_0 = arith.constant 0 : i32
    return %arg0, %c0_i32 : i32, i32
  }
  func.func @transform_1(%arg0: i32) -> (i32, i32) {
    %c0_i32 = arith.constant 0 : i32
    %c0_i32_0 = arith.constant 0 : i32
    %c0_i32_1 = arith.constant 0 : i32
    return %c0_i32, %c0_i32_0 : i32, i32
  }
  func.func @transform_2(%arg0: i32) -> (i32, i32) {
    %c0_i32 = arith.constant 0 : i32
    %c0_i32_0 = arith.constant 0 : i32
    %c0_i32_1 = arith.constant 0 : i32
    return %c0_i32, %c0_i32_0 : i32, i32
  }
  func.func @transform_3(%arg0: i32) -> (i32, i32) {
    %c0_i32 = arith.constant 0 : i32
    %c0_i32_0 = arith.constant 0 : i32
    return %arg0, %c0_i32 : i32, i32
  }
}

module attributes {stable_mosaic.version = 11 : i64} {
  func.func @_conv_bn_stats_kernel(%arg0: i32, %arg1: memref<64x1024xbf16, #tpu.memory_space<vmem>>, %arg2: memref<1024x128xbf16, #tpu.memory_space<vmem>>, %arg3: memref<64x128xf32, #tpu.memory_space<vmem>>, %arg4: memref<1x1x128xf32, #tpu.memory_space<vmem>>, %arg5: memref<1x1x128xf32, #tpu.memory_space<vmem>>) attributes {dimension_semantics = [#tpu.dimension_semantics<parallel>], iteration_bounds = array<i64: 1>, scalar_prefetch = 0 : i64, scratch_operands = 0 : i64, tpu.core_type = #tpu.core_type<tc>, window_params = [{transform_indices = @transform_0, window_bounds = array<i64: 64, 1024>}, {pipeline_mode = #tpu.pipeline_mode<synchronous>, transform_indices = @transform_1, window_bounds = array<i64: 1024, 128>}, {transform_indices = @transform_2, window_bounds = array<i64: 64, 128>}, {transform_indices = @transform_3, window_bounds = array<i64: 1, 1, 128>}, {transform_indices = @transform_4, window_bounds = array<i64: 1, 1, 128>}]} {
    %c0 = arith.constant 0 : index
    %c0_0 = arith.constant 0 : index
    %0 = vector.load %arg1[%c0, %c0_0] : memref<64x1024xbf16, #tpu.memory_space<vmem>>, vector<64x1024xbf16>
    %c0_1 = arith.constant 0 : index
    %c0_2 = arith.constant 0 : index
    %1 = vector.load %arg2[%c0_1, %c0_2] : memref<1024x128xbf16, #tpu.memory_space<vmem>>, vector<1024x128xbf16>
    %cst = arith.constant dense<0.000000e+00> : vector<64x128xf32>
    %2 = tpu.matmul %0, %1, %cst {dimension_numbers = #tpu.dot_dimension_numbers<[1], [0], [0], [1], [0, 0, 1, 1], [], []>} : vector<64x1024xbf16>, vector<1024x128xbf16>, vector<64x128xf32> -> vector<64x128xf32>
    %c0_3 = arith.constant 0 : index
    %c0_4 = arith.constant 0 : index
    %3 = vector.load %arg3[%c0_3, %c0_4] : memref<64x128xf32, #tpu.memory_space<vmem>>, vector<64x128xf32>
    tpu.vector_store %arg3[%c0_3, %c0_4], %2 {strides = array<i32>} : memref<64x128xf32, #tpu.memory_space<vmem>>, vector<64x128xf32>,
    %cst_5 = arith.constant dense<0.000000e+00> : vector<128xf32>
    %4 = vector.multi_reduction <add>, %2, %cst_5 [0] : vector<64x128xf32> to vector<128xf32>
    %5 = vector.shape_cast %4 : vector<128xf32> to vector<1x128xf32>
    %6 = arith.mulf %2, %2 : vector<64x128xf32>
    %cst_6 = arith.constant dense<0.000000e+00> : vector<128xf32>
    %7 = vector.multi_reduction <add>, %6, %cst_6 [0] : vector<64x128xf32> to vector<128xf32>
    %8 = vector.shape_cast %7 : vector<128xf32> to vector<1x128xf32>
    %9 = vector.shape_cast %5 : vector<1x128xf32> to vector<1x1x128xf32>
    %c0_7 = arith.constant 0 : index
    %c0_8 = arith.constant 0 : index
    %c0_9 = arith.constant 0 : index
    %10 = vector.load %arg4[%c0_7, %c0_8, %c0_9] : memref<1x1x128xf32, #tpu.memory_space<vmem>>, vector<1x1x128xf32>
    tpu.vector_store %arg4[%c0_7, %c0_8, %c0_9], %9 {strides = array<i32>} : memref<1x1x128xf32, #tpu.memory_space<vmem>>, vector<1x1x128xf32>,
    %11 = vector.shape_cast %8 : vector<1x128xf32> to vector<1x1x128xf32>
    %c0_10 = arith.constant 0 : index
    %c0_11 = arith.constant 0 : index
    %c0_12 = arith.constant 0 : index
    %12 = vector.load %arg5[%c0_10, %c0_11, %c0_12] : memref<1x1x128xf32, #tpu.memory_space<vmem>>, vector<1x1x128xf32>
    tpu.vector_store %arg5[%c0_10, %c0_11, %c0_12], %11 {strides = array<i32>} : memref<1x1x128xf32, #tpu.memory_space<vmem>>, vector<1x1x128xf32>,
    return
  }
  func.func @transform_0(%arg0: i32) -> (i32, i32) {
    %c0_i32 = arith.constant 0 : i32
    %c0_i32_0 = arith.constant 0 : i32
    return %arg0, %c0_i32 : i32, i32
  }
  func.func @transform_1(%arg0: i32) -> (i32, i32) {
    %c0_i32 = arith.constant 0 : i32
    %c0_i32_0 = arith.constant 0 : i32
    %c0_i32_1 = arith.constant 0 : i32
    return %c0_i32, %c0_i32_0 : i32, i32
  }
  func.func @transform_2(%arg0: i32) -> (i32, i32) {
    %c0_i32 = arith.constant 0 : i32
    %c0_i32_0 = arith.constant 0 : i32
    return %arg0, %c0_i32 : i32, i32
  }
  func.func @transform_3(%arg0: i32) -> (i32, i32, i32) {
    %c0_i32 = arith.constant 0 : i32
    %c0_i32_0 = arith.constant 0 : i32
    %c0_i32_1 = arith.constant 0 : i32
    return %arg0, %c0_i32, %c0_i32_0 : i32, i32, i32
  }
  func.func @transform_4(%arg0: i32) -> (i32, i32, i32) {
    %c0_i32 = arith.constant 0 : i32
    %c0_i32_0 = arith.constant 0 : i32
    %c0_i32_1 = arith.constant 0 : i32
    return %arg0, %c0_i32, %c0_i32_0 : i32, i32, i32
  }
}

module attributes {stable_mosaic.version = 11 : i64} {
  func.func @_bn_leaky_kernel(%arg0: i32, %arg1: memref<64x128xf32, #tpu.memory_space<vmem>>, %arg2: memref<1x128xf32, #tpu.memory_space<vmem>>, %arg3: memref<1x128xf32, #tpu.memory_space<vmem>>, %arg4: memref<64x128xbf16, #tpu.memory_space<vmem>>) attributes {dimension_semantics = [#tpu.dimension_semantics<parallel>], iteration_bounds = array<i64: 1>, scalar_prefetch = 0 : i64, scratch_operands = 0 : i64, tpu.core_type = #tpu.core_type<tc>, window_params = [{transform_indices = @transform_0, window_bounds = array<i64: 64, 128>}, {pipeline_mode = #tpu.pipeline_mode<synchronous>, transform_indices = @transform_1, window_bounds = array<i64: 1, 128>}, {pipeline_mode = #tpu.pipeline_mode<synchronous>, transform_indices = @transform_2, window_bounds = array<i64: 1, 128>}, {transform_indices = @transform_3, window_bounds = array<i64: 64, 128>}]} {
    %c0 = arith.constant 0 : index
    %c0_0 = arith.constant 0 : index
    %0 = vector.load %arg1[%c0, %c0_0] : memref<64x128xf32, #tpu.memory_space<vmem>>, vector<64x128xf32>
    %c0_1 = arith.constant 0 : index
    %c0_2 = arith.constant 0 : index
    %1 = vector.load %arg2[%c0_1, %c0_2] : memref<1x128xf32, #tpu.memory_space<vmem>>, vector<1x128xf32>
    %2 = vector.broadcast %1 : vector<1x128xf32> to vector<64x128xf32>
    %3 = arith.mulf %0, %2 : vector<64x128xf32>
    %c0_3 = arith.constant 0 : index
    %c0_4 = arith.constant 0 : index
    %4 = vector.load %arg3[%c0_3, %c0_4] : memref<1x128xf32, #tpu.memory_space<vmem>>, vector<1x128xf32>
    %5 = vector.broadcast %4 : vector<1x128xf32> to vector<64x128xf32>
    %6 = arith.addf %3, %5 : vector<64x128xf32>
    %cst = arith.constant 0.000000e+00 : f32
    %7 = vector.broadcast %cst : f32 to vector<64x128xf32>
    %8 = arith.cmpf ogt, %6, %7 : vector<64x128xf32>
    %cst_5 = arith.constant 2.000000e-01 : f32
    %9 = vector.broadcast %cst_5 : f32 to vector<64x128xf32>
    %10 = arith.mulf %9, %6 : vector<64x128xf32>
    %11 = arith.select %8, %6, %10 : vector<64x128xi1>, vector<64x128xf32>
    %12 = arith.truncf %11 : vector<64x128xf32> to vector<64x128xbf16>
    %c0_6 = arith.constant 0 : index
    %c0_7 = arith.constant 0 : index
    %13 = vector.load %arg4[%c0_6, %c0_7] : memref<64x128xbf16, #tpu.memory_space<vmem>>, vector<64x128xbf16>
    tpu.vector_store %arg4[%c0_6, %c0_7], %12 {strides = array<i32>} : memref<64x128xbf16, #tpu.memory_space<vmem>>, vector<64x128xbf16>,
    return
  }
  func.func @transform_0(%arg0: i32) -> (i32, i32) {
    %c0_i32 = arith.constant 0 : i32
    %c0_i32_0 = arith.constant 0 : i32
    return %arg0, %c0_i32 : i32, i32
  }
  func.func @transform_1(%arg0: i32) -> (i32, i32) {
    %c0_i32 = arith.constant 0 : i32
    %c0_i32_0 = arith.constant 0 : i32
    %c0_i32_1 = arith.constant 0 : i32
    return %c0_i32, %c0_i32_0 : i32, i32
  }
  func.func @transform_2(%arg0: i32) -> (i32, i32) {
    %c0_i32 = arith.constant 0 : i32
    %c0_i32_0 = arith.constant 0 : i32
    %c0_i32_1 = arith.constant 0 : i32
    return %c0_i32, %c0_i32_0 : i32, i32
  }
  func.func @transform_3(%arg0: i32) -> (i32, i32) {
    %c0_i32 = arith.constant 0 : i32
    %c0_i32_0 = arith.constant 0 : i32
    return %arg0, %c0_i32 : i32, i32
  }
}

module attributes {stable_mosaic.version = 11 : i64} {
  func.func @_conv_bn_stats_kernel(%arg0: i32, %arg1: memref<64x864xbf16, #tpu.memory_space<vmem>>, %arg2: memref<864x128xbf16, #tpu.memory_space<vmem>>, %arg3: memref<64x128xf32, #tpu.memory_space<vmem>>, %arg4: memref<1x1x128xf32, #tpu.memory_space<vmem>>, %arg5: memref<1x1x128xf32, #tpu.memory_space<vmem>>) attributes {dimension_semantics = [#tpu.dimension_semantics<parallel>], iteration_bounds = array<i64: 1>, scalar_prefetch = 0 : i64, scratch_operands = 0 : i64, tpu.core_type = #tpu.core_type<tc>, window_params = [{transform_indices = @transform_0, window_bounds = array<i64: 64, 864>}, {pipeline_mode = #tpu.pipeline_mode<synchronous>, transform_indices = @transform_1, window_bounds = array<i64: 864, 128>}, {transform_indices = @transform_2, window_bounds = array<i64: 64, 128>}, {transform_indices = @transform_3, window_bounds = array<i64: 1, 1, 128>}, {transform_indices = @transform_4, window_bounds = array<i64: 1, 1, 128>}]} {
    %c0 = arith.constant 0 : index
    %c0_0 = arith.constant 0 : index
    %0 = vector.load %arg1[%c0, %c0_0] : memref<64x864xbf16, #tpu.memory_space<vmem>>, vector<64x864xbf16>
    %c0_1 = arith.constant 0 : index
    %c0_2 = arith.constant 0 : index
    %1 = vector.load %arg2[%c0_1, %c0_2] : memref<864x128xbf16, #tpu.memory_space<vmem>>, vector<864x128xbf16>
    %cst = arith.constant dense<0.000000e+00> : vector<64x128xf32>
    %2 = tpu.matmul %0, %1, %cst {dimension_numbers = #tpu.dot_dimension_numbers<[1], [0], [0], [1], [0, 0, 1, 1], [], []>} : vector<64x864xbf16>, vector<864x128xbf16>, vector<64x128xf32> -> vector<64x128xf32>
    %c0_3 = arith.constant 0 : index
    %c0_4 = arith.constant 0 : index
    %3 = vector.load %arg3[%c0_3, %c0_4] : memref<64x128xf32, #tpu.memory_space<vmem>>, vector<64x128xf32>
    tpu.vector_store %arg3[%c0_3, %c0_4], %2 {strides = array<i32>} : memref<64x128xf32, #tpu.memory_space<vmem>>, vector<64x128xf32>,
    %cst_5 = arith.constant dense<0.000000e+00> : vector<128xf32>
    %4 = vector.multi_reduction <add>, %2, %cst_5 [0] : vector<64x128xf32> to vector<128xf32>
    %5 = vector.shape_cast %4 : vector<128xf32> to vector<1x128xf32>
    %6 = arith.mulf %2, %2 : vector<64x128xf32>
    %cst_6 = arith.constant dense<0.000000e+00> : vector<128xf32>
    %7 = vector.multi_reduction <add>, %6, %cst_6 [0] : vector<64x128xf32> to vector<128xf32>
    %8 = vector.shape_cast %7 : vector<128xf32> to vector<1x128xf32>
    %9 = vector.shape_cast %5 : vector<1x128xf32> to vector<1x1x128xf32>
    %c0_7 = arith.constant 0 : index
    %c0_8 = arith.constant 0 : index
    %c0_9 = arith.constant 0 : index
    %10 = vector.load %arg4[%c0_7, %c0_8, %c0_9] : memref<1x1x128xf32, #tpu.memory_space<vmem>>, vector<1x1x128xf32>
    tpu.vector_store %arg4[%c0_7, %c0_8, %c0_9], %9 {strides = array<i32>} : memref<1x1x128xf32, #tpu.memory_space<vmem>>, vector<1x1x128xf32>,
    %11 = vector.shape_cast %8 : vector<1x128xf32> to vector<1x1x128xf32>
    %c0_10 = arith.constant 0 : index
    %c0_11 = arith.constant 0 : index
    %c0_12 = arith.constant 0 : index
    %12 = vector.load %arg5[%c0_10, %c0_11, %c0_12] : memref<1x1x128xf32, #tpu.memory_space<vmem>>, vector<1x1x128xf32>
    tpu.vector_store %arg5[%c0_10, %c0_11, %c0_12], %11 {strides = array<i32>} : memref<1x1x128xf32, #tpu.memory_space<vmem>>, vector<1x1x128xf32>,
    return
  }
  func.func @transform_0(%arg0: i32) -> (i32, i32) {
    %c0_i32 = arith.constant 0 : i32
    %c0_i32_0 = arith.constant 0 : i32
    return %arg0, %c0_i32 : i32, i32
  }
  func.func @transform_1(%arg0: i32) -> (i32, i32) {
    %c0_i32 = arith.constant 0 : i32
    %c0_i32_0 = arith.constant 0 : i32
    %c0_i32_1 = arith.constant 0 : i32
    return %c0_i32, %c0_i32_0 : i32, i32
  }
  func.func @transform_2(%arg0: i32) -> (i32, i32) {
    %c0_i32 = arith.constant 0 : i32
    %c0_i32_0 = arith.constant 0 : i32
    return %arg0, %c0_i32 : i32, i32
  }
  func.func @transform_3(%arg0: i32) -> (i32, i32, i32) {
    %c0_i32 = arith.constant 0 : i32
    %c0_i32_0 = arith.constant 0 : i32
    %c0_i32_1 = arith.constant 0 : i32
    return %arg0, %c0_i32, %c0_i32_0 : i32, i32, i32
  }
  func.func @transform_4(%arg0: i32) -> (i32, i32, i32) {
    %c0_i32 = arith.constant 0 : i32
    %c0_i32_0 = arith.constant 0 : i32
    %c0_i32_1 = arith.constant 0 : i32
    return %arg0, %c0_i32, %c0_i32_0 : i32, i32, i32
  }
}

module attributes {stable_mosaic.version = 11 : i64} {
  func.func @_bn_leaky_kernel(%arg0: i32, %arg1: memref<8x128xf32, #tpu.memory_space<vmem>>, %arg2: memref<1x128xf32, #tpu.memory_space<vmem>>, %arg3: memref<1x128xf32, #tpu.memory_space<vmem>>, %arg4: memref<8x128xbf16, #tpu.memory_space<vmem>>) attributes {dimension_semantics = [#tpu.dimension_semantics<parallel>], iteration_bounds = array<i64: 1>, scalar_prefetch = 0 : i64, scratch_operands = 0 : i64, tpu.core_type = #tpu.core_type<tc>, window_params = [{transform_indices = @transform_0, window_bounds = array<i64: 8, 128>}, {pipeline_mode = #tpu.pipeline_mode<synchronous>, transform_indices = @transform_1, window_bounds = array<i64: 1, 128>}, {pipeline_mode = #tpu.pipeline_mode<synchronous>, transform_indices = @transform_2, window_bounds = array<i64: 1, 128>}, {transform_indices = @transform_3, window_bounds = array<i64: 8, 128>}]} {
    %c0 = arith.constant 0 : index
    %c0_0 = arith.constant 0 : index
    %0 = vector.load %arg1[%c0, %c0_0] : memref<8x128xf32, #tpu.memory_space<vmem>>, vector<8x128xf32>
    %c0_1 = arith.constant 0 : index
    %c0_2 = arith.constant 0 : index
    %1 = vector.load %arg2[%c0_1, %c0_2] : memref<1x128xf32, #tpu.memory_space<vmem>>, vector<1x128xf32>
    %2 = vector.broadcast %1 : vector<1x128xf32> to vector<8x128xf32>
    %3 = arith.mulf %0, %2 : vector<8x128xf32>
    %c0_3 = arith.constant 0 : index
    %c0_4 = arith.constant 0 : index
    %4 = vector.load %arg3[%c0_3, %c0_4] : memref<1x128xf32, #tpu.memory_space<vmem>>, vector<1x128xf32>
    %5 = vector.broadcast %4 : vector<1x128xf32> to vector<8x128xf32>
    %6 = arith.addf %3, %5 : vector<8x128xf32>
    %cst = arith.constant 0.000000e+00 : f32
    %7 = vector.broadcast %cst : f32 to vector<8x128xf32>
    %8 = arith.cmpf ogt, %6, %7 : vector<8x128xf32>
    %cst_5 = arith.constant 2.000000e-01 : f32
    %9 = vector.broadcast %cst_5 : f32 to vector<8x128xf32>
    %10 = arith.mulf %9, %6 : vector<8x128xf32>
    %11 = arith.select %8, %6, %10 : vector<8x128xi1>, vector<8x128xf32>
    %12 = arith.truncf %11 : vector<8x128xf32> to vector<8x128xbf16>
    %c0_6 = arith.constant 0 : index
    %c0_7 = arith.constant 0 : index
    %13 = vector.load %arg4[%c0_6, %c0_7] : memref<8x128xbf16, #tpu.memory_space<vmem>>, vector<8x128xbf16>
    tpu.vector_store %arg4[%c0_6, %c0_7], %12 {strides = array<i32>} : memref<8x128xbf16, #tpu.memory_space<vmem>>, vector<8x128xbf16>,
    return
  }
  func.func @transform_0(%arg0: i32) -> (i32, i32) {
    %c0_i32 = arith.constant 0 : i32
    %c0_i32_0 = arith.constant 0 : i32
    return %arg0, %c0_i32 : i32, i32
  }
  func.func @transform_1(%arg0: i32) -> (i32, i32) {
    %c0_i32 = arith.constant 0 : i32
    %c0_i32_0 = arith.constant 0 : i32
    %c0_i32_1 = arith.constant 0 : i32
    return %c0_i32, %c0_i32_0 : i32, i32
  }
  func.func @transform_2(%arg0: i32) -> (i32, i32) {
    %c0_i32 = arith.constant 0 : i32
    %c0_i32_0 = arith.constant 0 : i32
    %c0_i32_1 = arith.constant 0 : i32
    return %c0_i32, %c0_i32_0 : i32, i32
  }
  func.func @transform_3(%arg0: i32) -> (i32, i32) {
    %c0_i32 = arith.constant 0 : i32
    %c0_i32_0 = arith.constant 0 : i32
    return %arg0, %c0_i32 : i32, i32
  }
}

module attributes {stable_mosaic.version = 11 : i64} {
  func.func @_conv_bn_stats_kernel(%arg0: i32, %arg1: memref<8x1024xbf16, #tpu.memory_space<vmem>>, %arg2: memref<1024x128xbf16, #tpu.memory_space<vmem>>, %arg3: memref<8x128xf32, #tpu.memory_space<vmem>>, %arg4: memref<1x1x128xf32, #tpu.memory_space<vmem>>, %arg5: memref<1x1x128xf32, #tpu.memory_space<vmem>>) attributes {dimension_semantics = [#tpu.dimension_semantics<parallel>], iteration_bounds = array<i64: 1>, scalar_prefetch = 0 : i64, scratch_operands = 0 : i64, tpu.core_type = #tpu.core_type<tc>, window_params = [{transform_indices = @transform_0, window_bounds = array<i64: 8, 1024>}, {pipeline_mode = #tpu.pipeline_mode<synchronous>, transform_indices = @transform_1, window_bounds = array<i64: 1024, 128>}, {transform_indices = @transform_2, window_bounds = array<i64: 8, 128>}, {transform_indices = @transform_3, window_bounds = array<i64: 1, 1, 128>}, {transform_indices = @transform_4, window_bounds = array<i64: 1, 1, 128>}]} {
    %c0 = arith.constant 0 : index
    %c0_0 = arith.constant 0 : index
    %0 = vector.load %arg1[%c0, %c0_0] : memref<8x1024xbf16, #tpu.memory_space<vmem>>, vector<8x1024xbf16>
    %c0_1 = arith.constant 0 : index
    %c0_2 = arith.constant 0 : index
    %1 = vector.load %arg2[%c0_1, %c0_2] : memref<1024x128xbf16, #tpu.memory_space<vmem>>, vector<1024x128xbf16>
    %cst = arith.constant dense<0.000000e+00> : vector<8x128xf32>
    %2 = tpu.matmul %0, %1, %cst {dimension_numbers = #tpu.dot_dimension_numbers<[1], [0], [0], [1], [0, 0, 1, 1], [], []>} : vector<8x1024xbf16>, vector<1024x128xbf16>, vector<8x128xf32> -> vector<8x128xf32>
    %c0_3 = arith.constant 0 : index
    %c0_4 = arith.constant 0 : index
    %3 = vector.load %arg3[%c0_3, %c0_4] : memref<8x128xf32, #tpu.memory_space<vmem>>, vector<8x128xf32>
    tpu.vector_store %arg3[%c0_3, %c0_4], %2 {strides = array<i32>} : memref<8x128xf32, #tpu.memory_space<vmem>>, vector<8x128xf32>,
    %cst_5 = arith.constant dense<0.000000e+00> : vector<128xf32>
    %4 = vector.multi_reduction <add>, %2, %cst_5 [0] : vector<8x128xf32> to vector<128xf32>
    %5 = vector.shape_cast %4 : vector<128xf32> to vector<1x128xf32>
    %6 = arith.mulf %2, %2 : vector<8x128xf32>
    %cst_6 = arith.constant dense<0.000000e+00> : vector<128xf32>
    %7 = vector.multi_reduction <add>, %6, %cst_6 [0] : vector<8x128xf32> to vector<128xf32>
    %8 = vector.shape_cast %7 : vector<128xf32> to vector<1x128xf32>
    %9 = vector.shape_cast %5 : vector<1x128xf32> to vector<1x1x128xf32>
    %c0_7 = arith.constant 0 : index
    %c0_8 = arith.constant 0 : index
    %c0_9 = arith.constant 0 : index
    %10 = vector.load %arg4[%c0_7, %c0_8, %c0_9] : memref<1x1x128xf32, #tpu.memory_space<vmem>>, vector<1x1x128xf32>
    tpu.vector_store %arg4[%c0_7, %c0_8, %c0_9], %9 {strides = array<i32>} : memref<1x1x128xf32, #tpu.memory_space<vmem>>, vector<1x1x128xf32>,
    %11 = vector.shape_cast %8 : vector<1x128xf32> to vector<1x1x128xf32>
    %c0_10 = arith.constant 0 : index
    %c0_11 = arith.constant 0 : index
    %c0_12 = arith.constant 0 : index
    %12 = vector.load %arg5[%c0_10, %c0_11, %c0_12] : memref<1x1x128xf32, #tpu.memory_space<vmem>>, vector<1x1x128xf32>
    tpu.vector_store %arg5[%c0_10, %c0_11, %c0_12], %11 {strides = array<i32>} : memref<1x1x128xf32, #tpu.memory_space<vmem>>, vector<1x1x128xf32>,
    return
  }
  func.func @transform_0(%arg0: i32) -> (i32, i32) {
    %c0_i32 = arith.constant 0 : i32
    %c0_i32_0 = arith.constant 0 : i32
    return %arg0, %c0_i32 : i32, i32
  }
  func.func @transform_1(%arg0: i32) -> (i32, i32) {
    %c0_i32 = arith.constant 0 : i32
    %c0_i32_0 = arith.constant 0 : i32
    %c0_i32_1 = arith.constant 0 : i32
    return %c0_i32, %c0_i32_0 : i32, i32
  }
  func.func @transform_2(%arg0: i32) -> (i32, i32) {
    %c0_i32 = arith.constant 0 : i32
    %c0_i32_0 = arith.constant 0 : i32
    return %arg0, %c0_i32 : i32, i32
  }
  func.func @transform_3(%arg0: i32) -> (i32, i32, i32) {
    %c0_i32 = arith.constant 0 : i32
    %c0_i32_0 = arith.constant 0 : i32
    %c0_i32_1 = arith.constant 0 : i32
    return %arg0, %c0_i32, %c0_i32_0 : i32, i32, i32
  }
  func.func @transform_4(%arg0: i32) -> (i32, i32, i32) {
    %c0_i32 = arith.constant 0 : i32
    %c0_i32_0 = arith.constant 0 : i32
    %c0_i32_1 = arith.constant 0 : i32
    return %arg0, %c0_i32, %c0_i32_0 : i32, i32, i32
  }
}

module attributes {stable_mosaic.version = 11 : i64} {
  func.func @_conv_bias_sigmoid_kernel(%arg0: i32, %arg1: memref<8x64xbf16, #tpu.memory_space<vmem>>, %arg2: memref<64x128xbf16, #tpu.memory_space<vmem>>, %arg3: memref<1x128xf32, #tpu.memory_space<vmem>>, %arg4: memref<8x128xf32, #tpu.memory_space<vmem>>) attributes {dimension_semantics = [#tpu.dimension_semantics<parallel>], iteration_bounds = array<i64: 1>, scalar_prefetch = 0 : i64, scratch_operands = 0 : i64, tpu.core_type = #tpu.core_type<tc>, window_params = [{transform_indices = @transform_0, window_bounds = array<i64: 8, 64>}, {pipeline_mode = #tpu.pipeline_mode<synchronous>, transform_indices = @transform_1, window_bounds = array<i64: 64, 128>}, {pipeline_mode = #tpu.pipeline_mode<synchronous>, transform_indices = @transform_2, window_bounds = array<i64: 1, 128>}, {transform_indices = @transform_3, window_bounds = array<i64: 8, 128>}]} {
    %c0 = arith.constant 0 : index
    %c0_0 = arith.constant 0 : index
    %0 = vector.load %arg1[%c0, %c0_0] : memref<8x64xbf16, #tpu.memory_space<vmem>>, vector<8x64xbf16>
    %c0_1 = arith.constant 0 : index
    %c0_2 = arith.constant 0 : index
    %1 = vector.load %arg2[%c0_1, %c0_2] : memref<64x128xbf16, #tpu.memory_space<vmem>>, vector<64x128xbf16>
    %cst = arith.constant dense<0.000000e+00> : vector<8x128xf32>
    %2 = tpu.matmul %0, %1, %cst {dimension_numbers = #tpu.dot_dimension_numbers<[1], [0], [0], [1], [0, 0, 1, 1], [], []>} : vector<8x64xbf16>, vector<64x128xbf16>, vector<8x128xf32> -> vector<8x128xf32>
    %c0_3 = arith.constant 0 : index
    %c0_4 = arith.constant 0 : index
    %3 = vector.load %arg3[%c0_3, %c0_4] : memref<1x128xf32, #tpu.memory_space<vmem>>, vector<1x128xf32>
    %4 = vector.broadcast %3 : vector<1x128xf32> to vector<8x128xf32>
    %5 = arith.addf %2, %4 : vector<8x128xf32>
    %cst_5 = arith.constant 5.000000e-01 : f32
    %6 = vector.broadcast %cst_5 : f32 to vector<8x128xf32>
    %7 = arith.mulf %6, %5 : vector<8x128xf32>
    %8 = math.tanh %7 : vector<8x128xf32>
    %cst_6 = arith.constant 1.000000e+00 : f32
    %9 = vector.broadcast %cst_6 : f32 to vector<8x128xf32>
    %10 = arith.addf %8, %9 : vector<8x128xf32>
    %cst_7 = arith.constant 5.000000e-01 : f32
    %11 = vector.broadcast %cst_7 : f32 to vector<8x128xf32>
    %12 = arith.mulf %11, %10 : vector<8x128xf32>
    %c0_8 = arith.constant 0 : index
    %c0_9 = arith.constant 0 : index
    %13 = vector.load %arg4[%c0_8, %c0_9] : memref<8x128xf32, #tpu.memory_space<vmem>>, vector<8x128xf32>
    tpu.vector_store %arg4[%c0_8, %c0_9], %12 {strides = array<i32>} : memref<8x128xf32, #tpu.memory_space<vmem>>, vector<8x128xf32>,
    return
  }
  func.func @transform_0(%arg0: i32) -> (i32, i32) {
    %c0_i32 = arith.constant 0 : i32
    %c0_i32_0 = arith.constant 0 : i32
    return %arg0, %c0_i32 : i32, i32
  }
  func.func @transform_1(%arg0: i32) -> (i32, i32) {
    %c0_i32 = arith.constant 0 : i32
    %c0_i32_0 = arith.constant 0 : i32
    %c0_i32_1 = arith.constant 0 : i32
    return %c0_i32, %c0_i32_0 : i32, i32
  }
  func.func @transform_2(%arg0: i32) -> (i32, i32) {
    %c0_i32 = arith.constant 0 : i32
    %c0_i32_0 = arith.constant 0 : i32
    %c0_i32_1 = arith.constant 0 : i32
    return %c0_i32, %c0_i32_0 : i32, i32
  }
  func.func @transform_3(%arg0: i32) -> (i32, i32) {
    %c0_i32 = arith.constant 0 : i32
    %c0_i32_0 = arith.constant 0 : i32
    return %arg0, %c0_i32 : i32, i32
  }
}

</mosaic_0001>

<bundles_post_ra>
// kernel: _lambda_.12
= control target key start
LH: loop header
LB: loop body
LE: loop exit
PB: predicated region body
PF: predicated region fallthrough
CT: control target
= control target key end

     0   :  { %s1316_s12 = smov 0   ;;  %s1576_s0 = inlined_call_operand.vmem [shape: f32[4096,128], index: 0, kind: input, shape index: {}]   ;;  %s1577_s1 = inlined_call_operand.vmem [shape: f32[1,128], index: 1, kind: input, shape index: {}]   ;;  %s1578_s2 = inlined_call_operand.vmem [shape: f32[1,128], index: 2, kind: input, shape index: {}]   ;;  %s1579_s3 = inlined_call_operand.vmem [shape: bf16[4096,128], index: 3, kind: output, shape index: {}]  }
   0x1 LB: > { %s948_s13 = sadd.s32 4294967295, %s1294_s12   ;;  %p952_p0 = scmp.ge.s32.totalorder %s1294_s12, 1  ;;  %s1294_s12 = sphi %s1316_s12, %s13_s12  }
   0x2   : > { %p138_p1 = scmp.lt.s32.totalorder %s1294_s12, 9 }
   0x4   : > { %p139_p2 = pnand %p952_p0, %p138_p1 }
   0x5   : > { %s953_s14 = sshll.u32 (!%p139_p2), %s948_s13, 6 }
   0x6   : > { %142 = sbr.rel (%p139_p2) target bundleno = 109 (0x6d), region = 32  ;;  %p163_p3 = scmp.lt.s32.totalorder (!%p139_p2), %s953_s14, 511 }
   0xb   : > { %s1581_s14 = smov (!%p163_p3, %s953_s14), 511  ;;  %v1330_v0 = vld [vmem:[%s1577_s1] ss:$0 sm:$0xff] }
   0xc   : > { %s954_s15 = sshll.u32 %s1581_s14, 3  ;;  %v1340_v1 = vld [vmem:[%s1578_s2] ss:$0 sm:$0xff]  ;;  %s956_s23 = sshll.u32 %s1581_s14, 2 }
   0xd   : > { %s1335_s20 = scalar_lea.vmem %s1576_s0, %s954_s15  ;;  %s1368_s26 = scalar_lea.vmem %s1579_s3, %s956_s23 }
   0xe   : > { %v174_v2 = vld [vmem:[%s1335_s20] sm:$0xff]  ;;  %v175_v3 = vld [vmem:[%s1335_s20 + $0x8] sm:$0xff]  ;;  %v176_v4 = vld [vmem:[%s1335_s20 + $0x10] sm:$0xff] }
   0xf   : > { %v245_v5 = vmul.f32 %v1330_v0, %v174_v2  ;;  %v246_v6 = vmul.f32 %v1330_v0, %v175_v3  ;;  %v177_v7 = vld [vmem:[%s1335_s20 + $0x18] sm:$0xff]  ;;  %v247_v8 = vmul.f32 %v1330_v0, %v176_v4  ;;  %v178_v9 = vld [vmem:[%s1335_s20 + $0x20] sm:$0xff]  ;;  %v179_v10 = vld [vmem:[%s1335_s20 + $0x28] sm:$0xff] }
  0x10   : > { %v248_v11 = vmul.f32 %v1330_v0, %v177_v7  ;;  %v249_v12 = vmul.f32 %v1330_v0, %v178_v9  ;;  %v250_v13 = vmul.f32 %v1330_v0, %v179_v10  ;;  %v180_v14 = vld [vmem:[%s1335_s20 + $0x30] sm:$0xff]  ;;  %v181_v15 = vld [vmem:[%s1335_s20 + $0x38] sm:$0xff]  ;;  %v182_v30 = vld [vmem:[%s1335_s20 + $0x40] sm:$0xff] }
  0x11   : > { %v316_v16 = vadd.f32 %v1340_v1, %v245_v5  ;;  %v317_v17 = vadd.f32 %v1340_v1, %v246_v6  ;;  %v318_v18 = vadd.f32 %v1340_v1, %v247_v8  ;;  %v251_v19 = vmul.f32 %v1330_v0, %v180_v14  ;;  %v183_v31 = vld [vmem:[%s1335_s20 + $0x48] sm:$0xff]  ;;  %v184_v32 = vld [vmem:[%s1335_s20 + $0x50] sm:$0xff]  ;;  %v185_v44 = vld [vmem:[%s1335_s20 + $0x58] sm:$0xff] }
  0x12   : > { %v319_v20 = vadd.f32 %v1340_v1, %v248_v11  ;;  %v320_v21 = vadd.f32 %v1340_v1, %v249_v12  ;;  %v321_v22 = vadd.f32 %v1340_v1, %v250_v13  ;;  %v252_v23 = vmul.f32 %v1330_v0, %v181_v15  ;;  %v186_v46 = vld [vmem:[%s1335_s20 + $0x60] sm:$0xff]  ;;  %v187_v56 = vld [vmem:[%s1335_s20 + $0x68] sm:$0xff]  ;;  %v188_v60 = vld [vmem:[%s1335_s20 + $0x70] sm:$0xff] }
  0x13   : > { %vm380_vm0 = vcmp.gt.f32.partialorder %v316_v16, 0.0  ;;  %vm381_vm1 = vcmp.gt.f32.partialorder %v317_v17, 0.0  ;;  %v444_v24 = vmul.f32 0.2, %v316_v16  ;;  %v445_v25 = vmul.f32 0.2, %v317_v17 }
  0x14   : > { %vm382_vm2 = vcmp.gt.f32.partialorder %v318_v18, 0.0  ;;  %vm383_vm3 = vcmp.gt.f32.partialorder %v319_v20, 0.0  ;;  %v446_v26 = vmul.f32 0.2, %v318_v18  ;;  %v447_v27 = vmul.f32 0.2, %v319_v20 }
  0x15   : > { %v508_v28 = vsel %vm380_vm0, %v316_v16, %v444_v24  ;;  %v509_v29 = vsel %vm381_vm1, %v317_v17, %v445_v25  ;;  %vm384_vm4 = vcmp.gt.f32.partialorder %v320_v21, 0.0  ;;  %vm385_vm5 = vcmp.gt.f32.partialorder %v321_v22, 0.0  ;;  %v189_v6 = vld [vmem:[%s1335_s20 + $0x78] sm:$0xff]  ;;  %v190_v10 = vld [vmem:[%s1335_s20 + $0x80] sm:$0xff] }
  0x16   : > { %v1092_v33 = vpack.c.bf16 %v509_v29, %v508_v28  ;;  %v510_v34 = vsel %vm382_vm2, %v318_v18, %v446_v26  ;;  %v511_v35 = vsel %vm383_vm3, %v319_v20, %v447_v27  ;;  %v448_v36 = vmul.f32 0.2, %v320_v21  ;;  %v191_v18 = vld [vmem:[%s1335_s20 + $0x88] sm:$0xff]  ;;  %v193_v26 = vld [vmem:[%s1335_s20 + $0x98] sm:$0xff] }
  0x17   : > { %v1097_v37 = vpack.c.bf16 %v511_v35, %v510_v34  ;;  %v449_v38 = vmul.f32 0.2, %v321_v22  ;;  %v322_v39 = vadd.f32 %v1340_v1, %v251_v19  ;;  %v323_v40 = vadd.f32 %v1340_v1, %v252_v23  ;;  %v192_v19 = vld [vmem:[%s1335_s20 + $0x90] sm:$0xff] }
  0x18   : > { %1093 = vst [vmem:[%s1368_s26] sm:$0xff] %v1092_v33   ;;  %v512_v41 = vsel %vm384_vm4, %v320_v21, %v448_v36  ;;  %v253_v42 = vmul.f32 %v1330_v0, %v182_v30  ;;  %v254_v43 = vmul.f32 %v1330_v0, %v183_v31  ;;  %v255_v45 = vmul.f32 %v1330_v0, %v184_v32  ;;  %v194_v31 = vld [vmem:[%s1335_s20 + $0xa0] sm:$0xff]  ;;  %v195_v32 = vld [vmem:[%s1335_s20 + $0xa8] sm:$0xff] }
  0x19   : > { %1249 = vst [vmem:[%s1368_s26 + $0x8] sm:$0xff] %v1097_v37   ;;  %v513_v47 = vsel %vm385_vm5, %v321_v22, %v449_v38  ;;  %vm386_vm6 = vcmp.gt.f32.partialorder %v322_v39, 0.0  ;;  %vm387_vm7 = vcmp.gt.f32.partialorder %v323_v40, 0.0  ;;  %v450_v48 = vmul.f32 0.2, %v322_v39 }
  0x1a   : > { %v1102_v49 = vpack.c.bf16 %v513_v47, %v512_v41  ;;  %v451_v50 = vmul.f32 0.2, %v323_v40  ;;  %v324_v51 = vadd.f32 %v1340_v1, %v253_v42  ;;  %v325_v52 = vadd.f32 %v1340_v1, %v254_v43  ;;  %v196_v43 = vld [vmem:[%s1335_s20 + $0xb0] sm:$0xff] }
  0x1b   : > { %v514_v53 = vsel %vm386_vm6, %v322_v39, %v450_v48  ;;  %v256_v54 = vmul.f32 %v1330_v0, %v185_v44  ;;  %v326_v55 = vadd.f32 %v1340_v1, %v255_v45  ;;  %v257_v57 = vmul.f32 %v1330_v0, %v186_v46  ;;  %v197_v44 = vld [vmem:[%s1335_s20 + $0xb8] sm:$0xff] }
  0x1c   : > { %1250 = vst [vmem:[%s1368_s26 + $0x10] sm:$0xff] %v1102_v49   ;;  %v515_v58 = vsel %vm387_vm7, %v323_v40, %v451_v50  ;;  %vm388_vm8 = vcmp.gt.f32.partialorder %v324_v51, 0.0  ;;  %vm389_vm9 = vcmp.gt.f32.partialorder %v325_v52, 0.0  ;;  %v452_v59 = vmul.f32 0.2, %v324_v51 }
  0x1d   : > { %v1107_v61 = vpack.c.bf16 %v515_v58, %v514_v53  ;;  %v453_v62 = vmul.f32 0.2, %v325_v52  ;;  %v327_v63 = vadd.f32 %v1340_v1, %v256_v54  ;;  %vm390_vm10 = vcmp.gt.f32.partialorder %v326_v55, 0.0 }
  0x1e   : > { %v516_v2 = vsel %vm388_vm8, %v324_v51, %v452_v59  ;;  %v454_v3 = vmul.f32 0.2, %v326_v55  ;;  %v258_v4 = vmul.f32 %v1330_v0, %v187_v56  ;;  %v328_v5 = vadd.f32 %v1340_v1, %v257_v57  ;;  %v199_v59 = vld [vmem:[%s1335_s20 + $0xc8] sm:$0xff] }
  0x1f   : > { %1251 = vst [vmem:[%s1368_s26 + $0x18] sm:$0xff] %v1107_v61   ;;  %v517_v7 = vsel %vm389_vm9, %v325_v52, %v453_v62  ;;  %vm391_vm11 = vcmp.gt.f32.partialorder %v327_v63, 0.0  ;;  %v455_v8 = vmul.f32 0.2, %v327_v63  ;;  %v259_v9 = vmul.f32 %v1330_v0, %v188_v60 }
  0x20   : > { %v1112_v11 = vpack.c.bf16 %v517_v7, %v516_v2  ;;  %v518_v12 = vsel %vm390_vm10, %v326_v55, %v454_v3  ;;  %v329_v13 = vadd.f32 %v1340_v1, %v258_v4  ;;  %vm392_vm12 = vcmp.gt.f32.partialorder %v328_v5, 0.0  ;;  %v198_v55 = vld [vmem:[%s1335_s20 + $0xc0] sm:$0xff]  ;;  %v200_v4 = vld [vmem:[%s1335_s20 + $0xd0] sm:$0xff] }
  0x21   : > { %v519_v14 = vsel %vm391_vm11, %v327_v63, %v455_v8  ;;  %v456_v15 = vmul.f32 0.2, %v328_v5  ;;  %v260_v16 = vmul.f32 %v1330_v0, %v189_v6  ;;  %v330_v17 = vadd.f32 %v1340_v1, %v259_v9  ;;  %v201_v9 = vld [vmem:[%s1335_s20 + $0xd8] sm:$0xff] }
  0x22   : > { %1252 = vst [vmem:[%s1368_s26 + $0x20] sm:$0xff] %v1112_v11   ;;  %v1117_v20 = vpack.c.bf16 %v519_v14, %v518_v12  ;;  %vm393_vm13 = vcmp.gt.f32.partialorder %v329_v13, 0.0  ;;  %v457_v21 = vmul.f32 0.2, %v329_v13  ;;  %v261_v22 = vmul.f32 %v1330_v0, %v190_v10  ;;  %v202_v10 = vld [vmem:[%s1335_s20 + $0xe0] sm:$0xff]  ;;  %v203_v11 = vld [vmem:[%s1335_s20 + $0xe8] sm:$0xff] }
  0x23   : > { %v520_v23 = vsel %vm392_vm12, %v328_v5, %v456_v15  ;;  %v331_v24 = vadd.f32 %v1340_v1, %v260_v16  ;;  %vm394_vm14 = vcmp.gt.f32.partialorder %v330_v17, 0.0  ;;  %v458_v25 = vmul.f32 0.2, %v330_v17 }
  0x24   : > { %1253 = vst [vmem:[%s1368_s26 + $0x28] sm:$0xff] %v1117_v20   ;;  %v521_v27 = vsel %vm393_vm13, %v329_v13, %v457_v21  ;;  %v262_v28 = vmul.f32 %v1330_v0, %v191_v18  ;;  %v332_v29 = vadd.f32 %v1340_v1, %v261_v22  ;;  %v263_v30 = vmul.f32 %v1330_v0, %v192_v19  ;;  %v204_v22 = vld [vmem:[%s1335_s20 + $0xf0] sm:$0xff] }
  0x25   : > { %v1122_v33 = vpack.c.bf16 %v521_v27, %v520_v23  ;;  %vm395_vm15 = vcmp.gt.f32.partialorder %v331_v24, 0.0  ;;  %v459_v34 = vmul.f32 0.2, %v331_v24  ;;  %v522_v35 = vsel %vm394_vm14, %v330_v17, %v458_v25 }
  0x26   : > { %v333_v36 = vadd.f32 %v1340_v1, %v262_v28  ;;  %vm396_vm0 = vcmp.gt.f32.partialorder %v332_v29, 0.0  ;;  %v460_v37 = vmul.f32 0.2, %v332_v29  ;;  %v264_v38 = vmul.f32 %v1330_v0, %v193_v26 }
  0x27   : > { %1254 = vst [vmem:[%s1368_s26 + $0x30] sm:$0xff] %v1122_v33   ;;  %v523_v39 = vsel %vm395_vm15, %v331_v24, %v459_v34  ;;  %v334_v40 = vadd.f32 %v1340_v1, %v263_v30  ;;  %v265_v41 = vmul.f32 %v1330_v0, %v194_v31  ;;  %v266_v42 = vmul.f32 %v1330_v0, %v195_v32  ;;  %v205_v32 = vld [vmem:[%s1335_s20 + $0xf8] sm:$0xff] }
  0x28   : > { %v1127_v45 = vpack.c.bf16 %v523_v39, %v522_v35  ;;  %vm397_vm1 = vcmp.gt.f32.partialorder %v333_v36, 0.0  ;;  %v461_v46 = vmul.f32 0.2, %v333_v36  ;;  %v524_v47 = vsel %vm396_vm0, %v332_v29, %v460_v37  ;;  %v207_v37 = vld [vmem:[%s1335_s20 + $0x108] sm:$0xff] }
  0x29   : > { %v335_v48 = vadd.f32 %v1340_v1, %v264_v38  ;;  %vm398_vm2 = vcmp.gt.f32.partialorder %v334_v40, 0.0  ;;  %v462_v49 = vmul.f32 0.2, %v334_v40  ;;  %v336_v50 = vadd.f32 %v1340_v1, %v265_v41 }
  0x2a   : > { %1255 = vst [vmem:[%s1368_s26 + $0x38] sm:$0xff] %v1127_v45   ;;  %v525_v51 = vsel %vm397_vm1, %v333_v36, %v461_v46  ;;  %v337_v52 = vadd.f32 %v1340_v1, %v266_v42  ;;  %v267_v53 = vmul.f32 %v1330_v0, %v196_v43  ;;  %v268_v54 = vmul.f32 %v1330_v0, %v197_v44  ;;  %v206_v36 = vld [vmem:[%s1335_s20 + $0x100] sm:$0xff] }
  0x2b   : > { %v1132_v56 = vpack.c.bf16 %v525_v51, %v524_v47  ;;  %vm399_vm3 = vcmp.gt.f32.partialorder %v335_v48, 0.0  ;;  %v463_v57 = vmul.f32 0.2, %v335_v48  ;;  %v526_v58 = vsel %vm398_vm2, %v334_v40, %v462_v49 }
  0x2c   : > { %vm400_vm4 = vcmp.gt.f32.partialorder %v336_v50, 0.0  ;;  %vm401_vm5 = vcmp.gt.f32.partialorder %v337_v52, 0.0  ;;  %v464_v60 = vmul.f32 0.2, %v336_v50  ;;  %v465_v61 = vmul.f32 0.2, %v337_v52 }
  0x2d   : > { %1256 = vst [vmem:[%s1368_s26 + $0x40] sm:$0xff] %v1132_v56   ;;  %v527_v62 = vsel %vm399_vm3, %v335_v48, %v463_v57  ;;  %v338_v63 = vadd.f32 %v1340_v1, %v267_v53  ;;  %v339_v2 = vadd.f32 %v1340_v1, %v268_v54  ;;  %v269_v3 = vmul.f32 %v1330_v0, %v198_v55  ;;  %v208_v48 = vld [vmem:[%s1335_s20 + $0x110] sm:$0xff]  ;;  %v209_v53 = vld [vmem:[%s1335_s20 + $0x118] sm:$0xff] }
  0x2e   : > { %v1137_v5 = vpack.c.bf16 %v527_v62, %v526_v58  ;;  %v528_v6 = vsel %vm400_vm4, %v336_v50, %v464_v60  ;;  %v529_v7 = vsel %vm401_vm5, %v337_v52, %v465_v61  ;;  %v270_v8 = vmul.f32 %v1330_v0, %v199_v59  ;;  %v210_v60 = vld [vmem:[%s1335_s20 + $0x120] sm:$0xff] }
  0x2f   : > { %v1142_v12 = vpack.c.bf16 %v529_v7, %v528_v6  ;;  %vm402_vm6 = vcmp.gt.f32.partialorder %v338_v63, 0.0  ;;  %vm403_vm7 = vcmp.gt.f32.partialorder %v339_v2, 0.0  ;;  %v466_v13 = vmul.f32 0.2, %v338_v63 }
  0x30   : > { %1257 = vst [vmem:[%s1368_s26 + $0x48] sm:$0xff] %v1137_v5   ;;  %v467_v14 = vmul.f32 0.2, %v339_v2  ;;  %v340_v15 = vadd.f32 %v1340_v1, %v269_v3  ;;  %v341_v16 = vadd.f32 %v1340_v1, %v270_v8  ;;  %v271_v17 = vmul.f32 %v1330_v0, %v200_v4 }
  0x31   : > { %1258 = vst [vmem:[%s1368_s26 + $0x50] sm:$0xff] %v1142_v12   ;;  %v530_v18 = vsel %vm402_vm6, %v338_v63, %v466_v13  ;;  %v272_v19 = vmul.f32 %v1330_v0, %v201_v9  ;;  %v273_v20 = vmul.f32 %v1330_v0, %v202_v10  ;;  %v274_v21 = vmul.f32 %v1330_v0, %v203_v11  ;;  %v212_v10 = vld [vmem:[%s1335_s20 + $0x130] sm:$0xff]  ;;  %v213_v11 = vld [vmem:[%s1335_s20 + $0x138] sm:$0xff] }
  0x32   : > { %v531_v23 = vsel %vm403_vm7, %v339_v2, %v467_v14  ;;  %vm404_vm8 = vcmp.gt.f32.partialorder %v340_v15, 0.0  ;;  %vm405_vm9 = vcmp.gt.f32.partialorder %v341_v16, 0.0  ;;  %v468_v24 = vmul.f32 0.2, %v340_v15  ;;  %v211_v2 = vld [vmem:[%s1335_s20 + $0x128] sm:$0xff] }
  0x33   : > { %v1147_v25 = vpack.c.bf16 %v531_v23, %v530_v18  ;;  %v469_v26 = vmul.f32 0.2, %v341_v16  ;;  %v342_v27 = vadd.f32 %v1340_v1, %v271_v17  ;;  %v343_v28 = vadd.f32 %v1340_v1, %v272_v19  ;;  %v215_v23 = vld [vmem:[%s1335_s20 + $0x148] sm:$0xff] }
  0x34   : > { %v532_v29 = vsel %vm404_vm8, %v340_v15, %v468_v24  ;;  %v344_v30 = vadd.f32 %v1340_v1, %v273_v20  ;;  %v345_v31 = vadd.f32 %v1340_v1, %v274_v21  ;;  %v275_v33 = vmul.f32 %v1330_v0, %v204_v22  ;;  %v214_v15 = vld [vmem:[%s1335_s20 + $0x140] sm:$0xff] }
  0x35   : > { %1259 = vst [vmem:[%s1368_s26 + $0x58] sm:$0xff] %v1147_v25   ;;  %v533_v34 = vsel %vm405_vm9, %v341_v16, %v469_v26  ;;  %vm406_vm10 = vcmp.gt.f32.partialorder %v342_v27, 0.0  ;;  %vm407_vm11 = vcmp.gt.f32.partialorder %v343_v28, 0.0  ;;  %v470_v35 = vmul.f32 0.2, %v342_v27 }
  0x36   : > { %v1152_v38 = vpack.c.bf16 %v533_v34, %v532_v29  ;;  %v471_v39 = vmul.f32 0.2, %v343_v28  ;;  %vm408_vm12 = vcmp.gt.f32.partialorder %v344_v30, 0.0  ;;  %vm409_vm13 = vcmp.gt.f32.partialorder %v345_v31, 0.0 }
  0x37   : > { %v534_v40 = vsel %vm406_vm10, %v342_v27, %v470_v35  ;;  %v472_v41 = vmul.f32 0.2, %v344_v30  ;;  %v473_v42 = vmul.f32 0.2, %v345_v31  ;;  %v276_v43 = vmul.f32 %v1330_v0, %v205_v32  ;;  %v216_v27 = vld [vmem:[%s1335_s20 + $0x150] sm:$0xff]  ;;  %v217_v35 = vld [vmem:[%s1335_s20 + $0x158] sm:$0xff] }
  0x38   : > { %1260 = vst [vmem:[%s1368_s26 + $0x60] sm:$0xff] %v1152_v38   ;;  %v535_v44 = vsel %vm407_vm11, %v343_v28, %v471_v39  ;;  %v346_v45 = vadd.f32 %v1340_v1, %v275_v33  ;;  %v277_v46 = vmul.f32 %v1330_v0, %v206_v36  ;;  %v278_v47 = vmul.f32 %v1330_v0, %v207_v37 }
  0x39   : > { %v1157_v49 = vpack.c.bf16 %v535_v44, %v534_v40  ;;  %v536_v50 = vsel %vm408_vm12, %v344_v30, %v472_v41  ;;  %v537_v51 = vsel %vm409_vm13, %v345_v31, %v473_v42  ;;  %v347_v52 = vadd.f32 %v1340_v1, %v276_v43  ;;  %v218_v42 = vld [vmem:[%s1335_s20 + $0x160] sm:$0xff] }
  0x3a   : > { %v1162_v54 = vpack.c.bf16 %v537_v51, %v536_v50  ;;  %vm410_vm14 = vcmp.gt.f32.partialorder %v346_v45, 0.0  ;;  %v474_v55 = vmul.f32 0.2, %v346_v45  ;;  %v348_v56 = vadd.f32 %v1340_v1, %v277_v46  ;;  %v219_v46 = vld [vmem:[%s1335_s20 + $0x168] sm:$0xff] }
  0x3b   : > { %1261 = vst [vmem:[%s1368_s26 + $0x68] sm:$0xff] %v1157_v49   ;;  %vm411_vm15 = vcmp.gt.f32.partialorder %v347_v52, 0.0  ;;  %v475_v57 = vmul.f32 0.2, %v347_v52  ;;  %v349_v58 = vadd.f32 %v1340_v1, %v278_v47  ;;  %v279_v59 = vmul.f32 %v1330_v0, %v208_v48 }
  0x3c   : > { %1262 = vst [vmem:[%s1368_s26 + $0x70] sm:$0xff] %v1162_v54   ;;  %v538_v61 = vsel %vm410_vm14, %v346_v45, %v474_v55  ;;  %vm412_vm0 = vcmp.gt.f32.partialorder %v348_v56, 0.0  ;;  %v476_v62 = vmul.f32 0.2, %v348_v56  ;;  %v280_v63 = vmul.f32 %v1330_v0, %v209_v53  ;;  %v220_v54 = vld [vmem:[%s1335_s20 + $0x170] sm:$0xff]  ;;  %v221_v55 = vld [vmem:[%s1335_s20 + $0x178] sm:$0xff] }
  0x3d   : > { %v539_v3 = vsel %vm411_vm15, %v347_v52, %v475_v57  ;;  %vm413_vm1 = vcmp.gt.f32.partialorder %v349_v58, 0.0  ;;  %v477_v4 = vmul.f32 0.2, %v349_v58  ;;  %v350_v5 = vadd.f32 %v1340_v1, %v279_v59  ;;  %v222_v59 = vld [vmem:[%s1335_s20 + $0x180] sm:$0xff] }
  0x3e   : > { %v1167_v6 = vpack.c.bf16 %v539_v3, %v538_v61  ;;  %v540_v7 = vsel %vm412_vm0, %v348_v56, %v476_v62  ;;  %v351_v8 = vadd.f32 %v1340_v1, %v280_v63  ;;  %v281_v9 = vmul.f32 %v1330_v0, %v210_v60 }
  0x3f   : > { %v541_v12 = vsel %vm413_vm1, %v349_v58, %v477_v4  ;;  %vm414_vm2 = vcmp.gt.f32.partialorder %v350_v5, 0.0  ;;  %v478_v13 = vmul.f32 0.2, %v350_v5  ;;  %v282_v14 = vmul.f32 %v1330_v0, %v211_v2 }
  0x40   : > { %1263 = vst [vmem:[%s1368_s26 + $0x78] sm:$0xff] %v1167_v6   ;;  %v1172_v16 = vpack.c.bf16 %v541_v12, %v540_v7  ;;  %vm415_vm3 = vcmp.gt.f32.partialorder %v351_v8, 0.0  ;;  %v479_v17 = vmul.f32 0.2, %v351_v8  ;;  %v352_v18 = vadd.f32 %v1340_v1, %v281_v9  ;;  %v224_v9 = vld [vmem:[%s1335_s20 + $0x190] sm:$0xff] }
  0x41   : > { %v542_v19 = vsel %vm414_vm2, %v350_v5, %v478_v13  ;;  %v353_v20 = vadd.f32 %v1340_v1, %v282_v14  ;;  %v283_v21 = vmul.f32 %v1330_v0, %v212_v10  ;;  %v284_v22 = vmul.f32 %v1330_v0, %v213_v11  ;;  %v223_v5 = vld [vmem:[%s1335_s20 + $0x188] sm:$0xff] }
  0x42   : > { %1264 = vst [vmem:[%s1368_s26 + $0x80] sm:$0xff] %v1172_v16   ;;  %v543_v24 = vsel %vm415_vm3, %v351_v8, %v479_v17  ;;  %vm416_vm4 = vcmp.gt.f32.partialorder %v352_v18, 0.0  ;;  %v480_v25 = vmul.f32 0.2, %v352_v18  ;;  %v285_v26 = vmul.f32 %v1330_v0, %v214_v15  ;;  %v225_v17 = vld [vmem:[%s1335_s20 + $0x198] sm:$0xff] }
  0x43   : > { %v1177_v28 = vpack.c.bf16 %v543_v24, %v542_v19  ;;  %vm417_vm5 = vcmp.gt.f32.partialorder %v353_v20, 0.0  ;;  %v481_v29 = vmul.f32 0.2, %v353_v20  ;;  %v354_v30 = vadd.f32 %v1340_v1, %v283_v21  ;;  %v226_v24 = vld [vmem:[%s1335_s20 + $0x1a0] sm:$0xff] }
  0x44   : > { %v544_v31 = vsel %vm416_vm4, %v352_v18, %v480_v25  ;;  %v355_v32 = vadd.f32 %v1340_v1, %v284_v22  ;;  %v286_v33 = vmul.f32 %v1330_v0, %v215_v23  ;;  %v356_v34 = vadd.f32 %v1340_v1, %v285_v26 }
  0x45   : > { %1265 = vst [vmem:[%s1368_s26 + $0x88] sm:$0xff] %v1177_v28   ;;  %v545_v36 = vsel %vm417_vm5, %v353_v20, %v481_v29  ;;  %vm418_vm6 = vcmp.gt.f32.partialorder %v354_v30, 0.0  ;;  %v482_v37 = vmul.f32 0.2, %v354_v30  ;;  %v287_v38 = vmul.f32 %v1330_v0, %v216_v27  ;;  %v227_v28 = vld [vmem:[%s1335_s20 + $0x1a8] sm:$0xff] }
  0x46   : > { %v1182_v39 = vpack.c.bf16 %v545_v36, %v544_v31  ;;  %vm419_vm7 = vcmp.gt.f32.partialorder %v355_v32, 0.0  ;;  %v483_v40 = vmul.f32 0.2, %v355_v32  ;;  %v357_v41 = vadd.f32 %v1340_v1, %v286_v33  ;;  %v228_v36 = vld [vmem:[%s1335_s20 + $0x1b0] sm:$0xff] }
  0x47   : > { %v546_v43 = vsel %vm418_vm6, %v354_v30, %v482_v37  ;;  %vm420_vm8 = vcmp.gt.f32.partialorder %v356_v34, 0.0  ;;  %v484_v44 = vmul.f32 0.2, %v356_v34  ;;  %v288_v45 = vmul.f32 %v1330_v0, %v217_v35  ;;  %v229_v37 = vld [vmem:[%s1335_s20 + $0x1b8] sm:$0xff] }
  0x48   : > { %1266 = vst [vmem:[%s1368_s26 + $0x90] sm:$0xff] %v1182_v39   ;;  %v547_v47 = vsel %vm419_vm7, %v355_v32, %v483_v40  ;;  %vm421_vm9 = vcmp.gt.f32.partialorder %v357_v41, 0.0  ;;  %v485_v48 = vmul.f32 0.2, %v357_v41  ;;  %v358_v49 = vadd.f32 %v1340_v1, %v287_v38 }
  0x49   : > { %v1187_v50 = vpack.c.bf16 %v547_v47, %v546_v43  ;;  %v548_v51 = vsel %vm420_vm8, %v356_v34, %v484_v44  ;;  %v359_v52 = vadd.f32 %v1340_v1, %v288_v45  ;;  %v289_v53 = vmul.f32 %v1330_v0, %v218_v42 }
  0x4a   : > { %v549_v56 = vsel %vm421_vm9, %v357_v41, %v485_v48  ;;  %vm422_vm10 = vcmp.gt.f32.partialorder %v358_v49, 0.0  ;;  %v486_v57 = vmul.f32 0.2, %v358_v49  ;;  %v290_v58 = vmul.f32 %v1330_v0, %v219_v46  ;;  %v230_v41 = vld [vmem:[%s1335_s20 + $0x1c0] sm:$0xff] }
  0x4b   : > { %1267 = vst [vmem:[%s1368_s26 + $0x98] sm:$0xff] %v1187_v50   ;;  %v1192_v60 = vpack.c.bf16 %v549_v56, %v548_v51  ;;  %vm423_vm11 = vcmp.gt.f32.partialorder %v359_v52, 0.0  ;;  %v487_v61 = vmul.f32 0.2, %v359_v52  ;;  %v360_v62 = vadd.f32 %v1340_v1, %v289_v53  ;;  %v232_v53 = vld [vmem:[%s1335_s20 + $0x1d0] sm:$0xff] }
  0x4c   : > { %v550_v63 = vsel %vm422_vm10, %v358_v49, %v486_v57  ;;  %v361_v2 = vadd.f32 %v1340_v1, %v290_v58  ;;  %v291_v3 = vmul.f32 %v1330_v0, %v220_v54  ;;  %v292_v4 = vmul.f32 %v1330_v0, %v221_v55  ;;  %v231_v49 = vld [vmem:[%s1335_s20 + $0x1c8] sm:$0xff] }
  0x4d   : > { %1268 = vst [vmem:[%s1368_s26 + $0xa0] sm:$0xff] %v1192_v60   ;;  %v551_v6 = vsel %vm423_vm11, %v359_v52, %v487_v61  ;;  %vm424_vm12 = vcmp.gt.f32.partialorder %v360_v62, 0.0  ;;  %v488_v7 = vmul.f32 0.2, %v360_v62  ;;  %v293_v8 = vmul.f32 %v1330_v0, %v222_v59  ;;  %v233_v61 = vld [vmem:[%s1335_s20 + $0x1d8] sm:$0xff] }
  0x4e   : > { %v1197_v10 = vpack.c.bf16 %v551_v6, %v550_v63  ;;  %vm425_vm13 = vcmp.gt.f32.partialorder %v361_v2, 0.0  ;;  %v489_v11 = vmul.f32 0.2, %v361_v2  ;;  %v362_v12 = vadd.f32 %v1340_v1, %v291_v3  ;;  %v234_v6 = vld [vmem:[%s1335_s20 + $0x1e0] sm:$0xff] }
  0x4f   : > { %v552_v13 = vsel %vm424_vm12, %v360_v62, %v488_v7  ;;  %v363_v14 = vadd.f32 %v1340_v1, %v292_v4  ;;  %v294_v15 = vmul.f32 %v1330_v0, %v223_v5  ;;  %v364_v16 = vadd.f32 %v1340_v1, %v293_v8 }
  0x50   : > { %1269 = vst [vmem:[%s1368_s26 + $0xa8] sm:$0xff] %v1197_v10   ;;  %v553_v18 = vsel %vm425_vm13, %v361_v2, %v489_v11  ;;  %vm426_vm14 = vcmp.gt.f32.partialorder %v362_v12, 0.0  ;;  %v490_v19 = vmul.f32 0.2, %v362_v12  ;;  %v295_v20 = vmul.f32 %v1330_v0, %v224_v9  ;;  %v235_v10 = vld [vmem:[%s1335_s20 + $0x1e8] sm:$0xff] }
  0x51   : > { %v1202_v21 = vpack.c.bf16 %v553_v18, %v552_v13  ;;  %vm427_vm15 = vcmp.gt.f32.partialorder %v363_v14, 0.0  ;;  %v491_v22 = vmul.f32 0.2, %v363_v14  ;;  %v365_v23 = vadd.f32 %v1340_v1, %v294_v15  ;;  %v236_v18 = vld [vmem:[%s1335_s20 + $0x1f0] sm:$0xff] }
  0x52   : > { %v554_v25 = vsel %vm426_vm14, %v362_v12, %v490_v19  ;;  %vm428_vm0 = vcmp.gt.f32.partialorder %v364_v16, 0.0  ;;  %v492_v26 = vmul.f32 0.2, %v364_v16  ;;  %v296_v27 = vmul.f32 %v1330_v0, %v225_v17  ;;  %v237_v19 = vld [vmem:[%s1335_s20 + $0x1f8] sm:$0xff] }
  0x53   : > { %1270 = vst [vmem:[%s1368_s26 + $0xb0] sm:$0xff] %v1202_v21   ;;  %v555_v29 = vsel %vm427_vm15, %v363_v14, %v491_v22  ;;  %vm429_vm1 = vcmp.gt.f32.partialorder %v365_v23, 0.0  ;;  %v493_v30 = vmul.f32 0.2, %v365_v23  ;;  %v366_v31 = vadd.f32 %v1340_v1, %v295_v20 }
  0x54   : > { %v1207_v32 = vpack.c.bf16 %v555_v29, %v554_v25  ;;  %v556_v33 = vsel %vm428_vm0, %v364_v16, %v492_v26  ;;  %v367_v34 = vadd.f32 %v1340_v1, %v296_v27  ;;  %v297_v35 = vmul.f32 %v1330_v0, %v226_v24 }
  0x55   : > { %v557_v38 = vsel %vm429_vm1, %v365_v23, %v493_v30  ;;  %vm430_vm2 = vcmp.gt.f32.partialorder %v366_v31, 0.0  ;;  %v494_v39 = vmul.f32 0.2, %v366_v31  ;;  %v298_v40 = vmul.f32 %v1330_v0, %v227_v28 }
  0x56   : > { %1271 = vst [vmem:[%s1368_s26 + $0xb8] sm:$0xff] %v1207_v32   ;;  %v1212_v42 = vpack.c.bf16 %v557_v38, %v556_v33  ;;  %vm431_vm3 = vcmp.gt.f32.partialorder %v367_v34, 0.0  ;;  %v495_v43 = vmul.f32 0.2, %v367_v34  ;;  %v368_v44 = vadd.f32 %v1340_v1, %v297_v35 }
  0x57   : > { %v558_v45 = vsel %vm430_vm2, %v366_v31, %v494_v39  ;;  %v369_v46 = vadd.f32 %v1340_v1, %v298_v40  ;;  %v299_v47 = vmul.f32 %v1330_v0, %v228_v36  ;;  %v300_v48 = vmul.f32 %v1330_v0, %v229_v37 }
  0x58   : > { %1272 = vst [vmem:[%s1368_s26 + $0xc0] sm:$0xff] %v1212_v42   ;;  %v559_v50 = vsel %vm431_vm3, %v367_v34, %v495_v43  ;;  %vm432_vm4 = vcmp.gt.f32.partialorder %v368_v44, 0.0  ;;  %v496_v51 = vmul.f32 0.2, %v368_v44  ;;  %v301_v52 = vmul.f32 %v1330_v0, %v230_v41 }
  0x59   : > { %v1217_v54 = vpack.c.bf16 %v559_v50, %v558_v45  ;;  %vm433_vm5 = vcmp.gt.f32.partialorder %v369_v46, 0.0  ;;  %v497_v55 = vmul.f32 0.2, %v369_v46  ;;  %v370_v56 = vadd.f32 %v1340_v1, %v299_v47 }
  0x5a   : > { %v560_v57 = vsel %vm432_vm4, %v368_v44, %v496_v51  ;;  %v371_v58 = vadd.f32 %v1340_v1, %v300_v48  ;;  %v302_v59 = vmul.f32 %v1330_v0, %v231_v49  ;;  %v372_v60 = vadd.f32 %v1340_v1, %v301_v52 }
  0x5b   : > { %1273 = vst [vmem:[%s1368_s26 + $0xc8] sm:$0xff] %v1217_v54   ;;  %v561_v62 = vsel %vm433_vm5, %v369_v46, %v497_v55  ;;  %vm434_vm6 = vcmp.gt.f32.partialorder %v370_v56, 0.0  ;;  %v498_v63 = vmul.f32 0.2, %v370_v56  ;;  %v303_v2 = vmul.f32 %v1330_v0, %v232_v53 }
  0x5c   : > { %v1222_v3 = vpack.c.bf16 %v561_v62, %v560_v57  ;;  %vm435_vm7 = vcmp.gt.f32.partialorder %v371_v58, 0.0  ;;  %v499_v4 = vmul.f32 0.2, %v371_v58  ;;  %v373_v5 = vadd.f32 %v1340_v1, %v302_v59 }
  0x5d   : > { %v562_v7 = vsel %vm434_vm6, %v370_v56, %v498_v63  ;;  %vm436_vm8 = vcmp.gt.f32.partialorder %v372_v60, 0.0  ;;  %v500_v8 = vmul.f32 0.2, %v372_v60  ;;  %v304_v9 = vmul.f32 %v1330_v0, %v233_v61 }
  0x5e   : > { %1274 = vst [vmem:[%s1368_s26 + $0xd0] sm:$0xff] %v1222_v3   ;;  %v563_v11 = vsel %vm435_vm7, %v371_v58, %v499_v4  ;;  %vm437_vm9 = vcmp.gt.f32.partialorder %v373_v5, 0.0  ;;  %v501_v12 = vmul.f32 0.2, %v373_v5  ;;  %v374_v13 = vadd.f32 %v1340_v1, %v303_v2 }
  0x5f   : > { %v1227_v14 = vpack.c.bf16 %v563_v11, %v562_v7  ;;  %v564_v15 = vsel %vm436_vm8, %v372_v60, %v500_v8  ;;  %v375_v16 = vadd.f32 %v1340_v1, %v304_v9  ;;  %v305_v17 = vmul.f32 %v1330_v0, %v234_v6 }
  0x60   : > { %v565_v20 = vsel %vm437_vm9, %v373_v5, %v501_v12  ;;  %vm438_vm10 = vcmp.gt.f32.partialorder %v374_v13, 0.0  ;;  %v502_v21 = vmul.f32 0.2, %v374_v13  ;;  %v306_v22 = vmul.f32 %v1330_v0, %v235_v10 }
  0x61   : > { %1275 = vst [vmem:[%s1368_s26 + $0xd8] sm:$0xff] %v1227_v14   ;;  %v1232_v23 = vpack.c.bf16 %v565_v20, %v564_v15  ;;  %vm439_vm11 = vcmp.gt.f32.partialorder %v375_v16, 0.0  ;;  %v503_v24 = vmul.f32 0.2, %v375_v16  ;;  %v376_v25 = vadd.f32 %v1340_v1, %v305_v17 }
  0x62   : > { %v566_v26 = vsel %vm438_vm10, %v374_v13, %v502_v21  ;;  %v377_v27 = vadd.f32 %v1340_v1, %v306_v22  ;;  %v307_v28 = vmul.f32 %v1330_v0, %v236_v18  ;;  %v308_v29 = vmul.f32 %v1330_v0, %v237_v19 }
  0x63   : > { %1276 = vst [vmem:[%s1368_s26 + $0xe0] sm:$0xff] %v1232_v23   ;;  %v567_v30 = vsel %vm439_vm11, %v375_v16, %v503_v24  ;;  %vm440_vm12 = vcmp.gt.f32.partialorder %v376_v25, 0.0  ;;  %v504_v31 = vmul.f32 0.2, %v376_v25 }
  0x64   : > { %v1237_v32 = vpack.c.bf16 %v567_v30, %v566_v26  ;;  %vm441_vm13 = vcmp.gt.f32.partialorder %v377_v27, 0.0  ;;  %v505_v33 = vmul.f32 0.2, %v377_v27  ;;  %v378_v34 = vadd.f32 %v1340_v1, %v307_v28 }
  0x65   : > { %v568_v35 = vsel %vm440_vm12, %v376_v25, %v504_v31  ;;  %v379_v36 = vadd.f32 %v1340_v1, %v308_v29 }
  0x66   : > { %1277 = vst [vmem:[%s1368_s26 + $0xe8] sm:$0xff] %v1237_v32   ;;  %v569_v37 = vsel %vm441_vm13, %v377_v27, %v505_v33  ;;  %vm442_vm14 = vcmp.gt.f32.partialorder %v378_v34, 0.0  ;;  %v506_v38 = vmul.f32 0.2, %v378_v34 }
  0x67   : > { %v1242_v39 = vpack.c.bf16 %v569_v37, %v568_v35  ;;  %vm443_vm15 = vcmp.gt.f32.partialorder %v379_v36, 0.0  ;;  %v507_v0 = vmul.f32 0.2, %v379_v36 }
  0x68   : > { %v570_v40 = vsel %vm442_vm14, %v378_v34, %v506_v38 }
  0x69   : > { %1278 = vst [vmem:[%s1368_s26 + $0xf0] sm:$0xff] %v1242_v39   ;;  %v571_v41 = vsel %vm443_vm15, %v379_v36, %v507_v0 }
  0x6a   : > { %v1247_v42 = vpack.c.bf16 %v571_v41, %v570_v40 }
  0x6c   : > { %1279 = vst [vmem:[%s1368_s26 + $0xf8] sm:$0xff] %v1247_v42  }
  0x6d PF: > { %s13_s12 = sadd.s32 1, %s1294_s12  }
  0x6e   : > { %p10_p4 = scmp.ge.s32.totalorder %s13_s12, 10  }
  0x70   :  { %12 = sbr.rel (!%p10_p4) target bundleno = 1 (0x1), region = 62 }

// kernel: _lambda_.11
= control target key start
LH: loop header
LB: loop body
LE: loop exit
PB: predicated region body
PF: predicated region fallthrough
CT: control target
= control target key end

     0   :  { %s1485_s15 = smov 0   ;;  %s1847_s0 = inlined_call_operand.vmem [shape: bf16[4096,27], index: 0, kind: input, shape index: {}]   ;;  %s1848_s1 = inlined_call_operand.vmem [shape: bf16[27,128], index: 1, kind: input, shape index: {}]   ;;  %s1849_s2 = inlined_call_operand.vmem [shape: f32[4096,128], index: 2, kind: output, shape index: {0}]   ;;  %s1850_s3 = inlined_call_operand.vmem [shape: f32[8,1,128], index: 3, kind: output, shape index: {1}]   ;;  %s1851_s4 = inlined_call_operand.vmem [shape: f32[8,1,128], index: 4, kind: output, shape index: {2}]  }
   0x1 LB: > { %s1491_s16 = sadd.s32 4294967295, %s1457_s15   ;;  %p1229_p0 = scmp.ge.s32.totalorder %s1457_s15, 1  ;;  %s1457_s15 = sphi %s1485_s15, %s15_s15  }
   0x2   : > { %p168_p1 = scmp.lt.s32.totalorder %s1457_s15, 9 }
   0x4   : > { %p169_p2 = pnand %p1229_p0, %p168_p1 }
   0x5   : > { %s1230_s19 = sshll.u32 (!%p169_p2), %s1491_s16, 6  ;;  %p212_p4 = scmp.lt.s32.totalorder (!%p169_p2), %s1491_s16, 7 }
   0x6   : > { %172 = sbr.rel (%p169_p2) target bundleno = 364 (0x16c), region = 28  ;;  %p201_p3 = scmp.lt.s32.totalorder (!%p169_p2), %s1230_s19, 511 }
   0xb   : > { %v1417_v0 = vld [vmem:[%s1848_s1 + $0x8] sm:$0x3f]   ;;  %vm555_vm0 = vcmask 1044480   ;;  %vm556_vm1 = vcmask 1045504   ;;  %v1459_v1 = vmov 65535   ;;  %v1418_v5 = vld [vmem:[%s1848_s1] sm:$0xff]  }
   0xc   : > { %v557_v2 = vsel %vm555_vm0, 4294967295, %v1459_v1  ;;  %s1853_s19 = smov (!%p201_p3, %s1230_s19), 511  ;;  %vm458_vm2 = vcmask 220160   ;;  %s1855_s16 = smov (!%p212_p4, %s1491_s16), 7 }
   0xd   : > { %v558_v3 = vsel %vm556_vm1, %v557_v2, 0  ;;  %s1231_s22 = sshll.u32 %s1853_s19, 2  ;;  %s1233_s26 = sshll.u32 %s1853_s19, 3 }
   0xe   : > { %v560_v4 = vand.u32 %v1417_v0, %v558_v3  ;;  %s1508_s25 = scalar_lea.vmem %s1847_s0, %s1231_s22  ;;  %s1578_s29 = scalar_lea.vmem %s1849_s2, %s1233_s26 }
   0xf   : > { %v1419_v6 = vld [vmem:[%s1508_s25] sm:$0xff]   ;;  %v1420_v7 = vld [vmem:[%s1508_s25 + $0x8] sm:$0xff]   ;;  %v1421_v8 = vld [vmem:[%s1508_s25 + $0x10] sm:$0xff]   ;;  %s214_s6 = scalar_lea.vmem %s1850_s3, %s1855_s16  ;;  %s217_s9 = scalar_lea.vmem %s1851_s4, %s1855_s16 }
  0x10   : > { %1336 = vmatprep.subr.bf16.mxu0 %v560_v4  ;;  %1404 = vmatprep.subr.bf16.mxu1 %v560_v4  ;;  %v1422_v9 = vld [vmem:[%s1508_s25 + $0x18] sm:$0xff]   ;;  %v1423_v10 = vld [vmem:[%s1508_s25 + $0x20] sm:$0xff]   ;;  %v1424_v11 = vld [vmem:[%s1508_s25 + $0x28] sm:$0xff]  }
  0x11   : > { %1337 = vmatpush3.bf16.msra.mxu0 %v560_v4  ;;  %1406 = vmatpush3.bf16.msra.mxu1 %v560_v4  ;;  %v1425_v12 = vld [vmem:[%s1508_s25 + $0x30] sm:$0xff]   ;;  %v1435_v13 = vld [vmem:[%s1508_s25 + $0x80] sm:$0xff]   ;;  %v1436_v14 = vld [vmem:[%s1508_s25 + $0x88] sm:$0xff]  }
  0x12   : > { %1338 = vmatprep.subr.bf16.mxu0 %v1418_v5  ;;  %1405 = vmatprep.subr.bf16.mxu1 %v1418_v5  ;;  %v1437_v15 = vld [vmem:[%s1508_s25 + $0x90] sm:$0xff]   ;;  %v1438_v16 = vld [vmem:[%s1508_s25 + $0x98] sm:$0xff]   ;;  %v1439_v17 = vld [vmem:[%s1508_s25 + $0xa0] sm:$0xff]  }
  0x13   : > { %1340 = vmatprep.mubr.msk.bf16.mxu0 %vm458_vm2, %v1419_v6  ;;  %1372 = vmatprep.mubr.msk.bf16.mxu1 %vm458_vm2, %v1435_v13  ;;  %v1426_v18 = vld [vmem:[%s1508_s25 + $0x38] sm:$0xff]   ;;  %v1427_v19 = vld [vmem:[%s1508_s25 + $0x40] sm:$0xff]   ;;  %v1440_v20 = vld [vmem:[%s1508_s25 + $0xa8] sm:$0xff]  }
  0x14   : > { %v1441_v21 = vld [vmem:[%s1508_s25 + $0xb0] sm:$0xff]   ;;  %v1428_v22 = vld [vmem:[%s1508_s25 + $0x48] sm:$0xff]   ;;  %v1442_v24 = vld [vmem:[%s1508_s25 + $0xb8] sm:$0xff]  }
  0x15   : > { %1339 = vmatpush3.bf16.msra.mxu0 %v1418_v5  ;;  %1407 = vmatpush3.bf16.msra.mxu1 %v1418_v5  ;;  %v1429_v23 = vld [vmem:[%s1508_s25 + $0x50] sm:$0xff]   ;;  %v1443_v25 = vld [vmem:[%s1508_s25 + $0xc0] sm:$0xff]   ;;  %v1430_v26 = vld [vmem:[%s1508_s25 + $0x58] sm:$0xff]  }
  0x16   : > { %v1431_v27 = vld [vmem:[%s1508_s25 + $0x60] sm:$0xff]   ;;  %v1444_v28 = vld [vmem:[%s1508_s25 + $0xc8] sm:$0xff]   ;;  %v1445_v29 = vld [vmem:[%s1508_s25 + $0xd0] sm:$0xff]  }
  0x17   : > { %v1432_v30 = vld [vmem:[%s1508_s25 + $0x68] sm:$0xff]   ;;  %v1433_v31 = vld [vmem:[%s1508_s25 + $0x70] sm:$0xff]   ;;  %v1446_v32 = vld [vmem:[%s1508_s25 + $0xd8] sm:$0xff]  }
  0x18   : > { %1341 = vmatmul.mubr.msk.bf16.vlgmr.msra.gmra.mxu0 %vm458_vm2, %v1420_v7  ;;  %1373 = vmatmul.mubr.msk.bf16.vlgmr.msra.gmra.mxu1 %vm458_vm2, %v1436_v14  ;;  %v1447_v33 = vld [vmem:[%s1508_s25 + $0xe0] sm:$0xff]   ;;  %v1434_v34 = vld [vmem:[%s1508_s25 + $0x78] sm:$0xff]   ;;  %v1448_v35 = vld [vmem:[%s1508_s25 + $0xe8] sm:$0xff]  }
  0x19   : > { %1344 = vmatprep.mubr.msk.bf16.mxu0 %vm458_vm2, %v1421_v8  ;;  %1376 = vmatprep.mubr.msk.bf16.mxu1 %vm458_vm2, %v1437_v15  ;;  %v1449_v36 = vld [vmem:[%s1508_s25 + $0xf0] sm:$0xff]   ;;  %v1450_v37 = vld [vmem:[%s1508_s25 + $0xf8] sm:$0xff]  }
  0x20   : > { %1345 = vmatmul.mubr.msk.bf16.gmra.mxu0 %vm458_vm2, %v1422_v9  ;;  %1377 = vmatmul.mubr.msk.bf16.gmra.mxu1 %vm458_vm2, %v1438_v16 }
  0x21   : > { %1348 = vmatprep.mubr.msk.bf16.mxu0 %vm458_vm2, %v1423_v10  ;;  %1380 = vmatprep.mubr.msk.bf16.mxu1 %vm458_vm2, %v1439_v17 }
  0x28   : > { %1349 = vmatmul.mubr.msk.bf16.gmra.mxu0 %vm458_vm2, %v1424_v11  ;;  %1381 = vmatmul.mubr.msk.bf16.gmra.mxu1 %vm458_vm2, %v1440_v20 }
  0x29   : > { %1352 = vmatprep.mubr.msk.bf16.mxu0 %vm458_vm2, %v1425_v12  ;;  %1384 = vmatprep.mubr.msk.bf16.mxu1 %vm458_vm2, %v1441_v21 }
  0x30   : > { %1353 = vmatmul.mubr.msk.bf16.gmra.mxu0 %vm458_vm2, %v1426_v18  ;;  %1385 = vmatmul.mubr.msk.bf16.gmra.mxu1 %vm458_vm2, %v1442_v24 }
  0x31   : > { %1356 = vmatprep.mubr.msk.bf16.mxu0 %vm458_vm2, %v1427_v19  ;;  %1388 = vmatprep.mubr.msk.bf16.mxu1 %vm458_vm2, %v1443_v25 }
  0x38   : > { %1357 = vmatmul.mubr.msk.bf16.gmra.mxu0 %vm458_vm2, %v1428_v22  ;;  %1389 = vmatmul.mubr.msk.bf16.gmra.mxu1 %vm458_vm2, %v1444_v28 }
  0x39   : > { %1360 = vmatprep.mubr.msk.bf16.mxu0 %vm458_vm2, %v1429_v23  ;;  %1392 = vmatprep.mubr.msk.bf16.mxu1 %vm458_vm2, %v1445_v29 }
  0x40   : > { %1361 = vmatmul.mubr.msk.bf16.gmra.mxu0 %vm458_vm2, %v1430_v26  ;;  %1393 = vmatmul.mubr.msk.bf16.gmra.mxu1 %vm458_vm2, %v1446_v32 }
  0x41   : > { %1364 = vmatprep.mubr.msk.bf16.mxu0 %vm458_vm2, %v1431_v27  ;;  %1396 = vmatprep.mubr.msk.bf16.mxu1 %vm458_vm2, %v1447_v33 }
  0x48   : > { %1365 = vmatmul.mubr.msk.bf16.gmra.mxu0 %vm458_vm2, %v1432_v30  ;;  %1397 = vmatmul.mubr.msk.bf16.gmra.mxu1 %vm458_vm2, %v1448_v35 }
  0x49   : > { %1368 = vmatprep.mubr.msk.bf16.mxu0 %vm458_vm2, %v1433_v31  ;;  %1400 = vmatprep.mubr.msk.bf16.mxu1 %vm458_vm2, %v1449_v36 }
  0x50   : > { %1369 = vmatmul.mubr.msk.bf16.gmra.mxu0 %vm458_vm2, %v1434_v34  ;;  %1401 = vmatmul.mubr.msk.bf16.gmra.mxu1 %vm458_vm2, %v1450_v37 }
  0xd8   : > { %v1342_v38 = vpop.f32.mrf.mxu0  ;;  %v1587_v58 = vpop.f32.mrf.mxu1 }
  0xd9   : > { %853 = vst [vmem:[%s1578_s29 + $0x10] sm:$0xff] %v1342_v38  ;;  %v986_v46 = vmul.f32 %v1342_v38, %v1342_v38  ;;  %885 = vst [vmem:[%s1578_s29 + $0x110] sm:$0xff] %v1587_v58 }
  0xda   : > { %v596_v39 = vpop.f32.mrf.mxu0  ;;  %v1592_v63 = vpop.f32.mrf.mxu1 }
  0xdb   : > { %851 = vst [vmem:[%s1578_s29] sm:$0xff] %v596_v39  ;;  %v984_v42 = vmul.f32 %v596_v39, %v596_v39  ;;  %883 = vst [vmem:[%s1578_s29 + $0x100] sm:$0xff] %v1592_v63 }
  0xdc   : > { %v1343_v40 = vpop.f32.mrf.mxu0  ;;  %v1597_v4 = vpop.f32.mrf.mxu1 }
  0xdd   : > { %854 = vst [vmem:[%s1578_s29 + $0x18] sm:$0xff] %v1343_v40  ;;  %v987_v50 = vmul.f32 %v1343_v40, %v1343_v40  ;;  %886 = vst [vmem:[%s1578_s29 + $0x118] sm:$0xff] %v1597_v4 }
  0xde   : > { %v599_v41 = vpop.f32.mrf.mxu0  ;;  %v1602_v9 = vpop.f32.mrf.mxu1 }
  0xdf   : > { %852 = vst [vmem:[%s1578_s29 + $0x8] sm:$0xff] %v599_v41  ;;  %v915_v43 = vadd.f32 %v599_v41, %v596_v39  ;;  %v985_v44 = vmul.f32 %v599_v41, %v599_v41  ;;  %884 = vst [vmem:[%s1578_s29 + $0x108] sm:$0xff] %v1602_v9 }
  0xe0   : > { %v1346_v45 = vpop.f32.mrf.mxu0  ;;  %v1607_v14 = vpop.f32.mrf.mxu1 }
  0xe1   : > { %v916_v47 = vadd.f32 %v1342_v38, %v915_v43  ;;  %v1048_v48 = vadd.f32 %v985_v44, %v984_v42  ;;  %857 = vst [vmem:[%s1578_s29 + $0x30] sm:$0xff] %v1346_v45  ;;  %v990_v0 = vmul.f32 %v1346_v45, %v1346_v45  ;;  %889 = vst [vmem:[%s1578_s29 + $0x130] sm:$0xff] %v1607_v14 }
  0xe2   : > { %v612_v49 = vpop.f32.mrf.mxu0  ;;  %v1612_v19 = vpop.f32.mrf.mxu1 }
  0xe3   : > { %v1049_v51 = vadd.f32 %v1048_v48, %v986_v46  ;;  %855 = vst [vmem:[%s1578_s29 + $0x20] sm:$0xff] %v612_v49  ;;  %v917_v52 = vadd.f32 %v1343_v40, %v916_v47  ;;  %v988_v55 = vmul.f32 %v612_v49, %v612_v49  ;;  %887 = vst [vmem:[%s1578_s29 + $0x120] sm:$0xff] %v1612_v19 }
  0xe4   : > { %v1347_v53 = vpop.f32.mrf.mxu0  ;;  %v1617_v24 = vpop.f32.mrf.mxu1 }
  0xe5   : > { %v918_v54 = vadd.f32 %v917_v52, %v612_v49  ;;  %v1050_v56 = vadd.f32 %v1049_v51, %v987_v50  ;;  %858 = vst [vmem:[%s1578_s29 + $0x38] sm:$0xff] %v1347_v53  ;;  %v991_v5 = vmul.f32 %v1347_v53, %v1347_v53  ;;  %890 = vst [vmem:[%s1578_s29 + $0x138] sm:$0xff] %v1617_v24 }
  0xe6   : > { %v615_v57 = vpop.f32.mrf.mxu0  ;;  %v1622_v29 = vpop.f32.mrf.mxu1 }
  0xe7   : > { %v1051_v59 = vadd.f32 %v1050_v56, %v988_v55  ;;  %856 = vst [vmem:[%s1578_s29 + $0x28] sm:$0xff] %v615_v57  ;;  %v919_v60 = vadd.f32 %v918_v54, %v615_v57  ;;  %v989_v61 = vmul.f32 %v615_v57, %v615_v57  ;;  %888 = vst [vmem:[%s1578_s29 + $0x128] sm:$0xff] %v1622_v29 }
  0xe8   : > { %v1350_v62 = vpop.f32.mrf.mxu0  ;;  %v1627_v34 = vpop.f32.mrf.mxu1 }
  0xe9   : > { %v920_v1 = vadd.f32 %v1346_v45, %v919_v60  ;;  %v1052_v2 = vadd.f32 %v1051_v59, %v989_v61  ;;  %861 = vst [vmem:[%s1578_s29 + $0x50] sm:$0xff] %v1350_v62  ;;  %v994_v20 = vmul.f32 %v1350_v62, %v1350_v62  ;;  %893 = vst [vmem:[%s1578_s29 + $0x150] sm:$0xff] %v1627_v34 }
  0xea   : > { %v628_v3 = vpop.f32.mrf.mxu0  ;;  %v1632_v39 = vpop.f32.mrf.mxu1 }
  0xeb   : > { %v1053_v6 = vadd.f32 %v1052_v2, %v990_v0  ;;  %859 = vst [vmem:[%s1578_s29 + $0x40] sm:$0xff] %v628_v3  ;;  %v921_v7 = vadd.f32 %v1347_v53, %v920_v1  ;;  %v992_v11 = vmul.f32 %v628_v3, %v628_v3  ;;  %891 = vst [vmem:[%s1578_s29 + $0x140] sm:$0xff] %v1632_v39 }
  0xec   : > { %v1351_v8 = vpop.f32.mrf.mxu0  ;;  %v1637_v44 = vpop.f32.mrf.mxu1 }
  0xed   : > { %v922_v10 = vadd.f32 %v921_v7, %v628_v3  ;;  %v1054_v12 = vadd.f32 %v1053_v6, %v991_v5  ;;  %862 = vst [vmem:[%s1578_s29 + $0x58] sm:$0xff] %v1351_v8  ;;  %v995_v25 = vmul.f32 %v1351_v8, %v1351_v8  ;;  %894 = vst [vmem:[%s1578_s29 + $0x158] sm:$0xff] %v1637_v44 }
  0xee   : > { %v631_v13 = vpop.f32.mrf.mxu0  ;;  %v1642_v49 = vpop.f32.mrf.mxu1 }
  0xef   : > { %v1055_v15 = vadd.f32 %v1054_v12, %v992_v11  ;;  %860 = vst [vmem:[%s1578_s29 + $0x48] sm:$0xff] %v631_v13  ;;  %v923_v16 = vadd.f32 %v922_v10, %v631_v13  ;;  %v993_v17 = vmul.f32 %v631_v13, %v631_v13  ;;  %892 = vst [vmem:[%s1578_s29 + $0x148] sm:$0xff] %v1642_v49 }
  0xf0   : > { %v1354_v18 = vpop.f32.mrf.mxu0  ;;  %v1647_v54 = vpop.f32.mrf.mxu1 }
  0xf1   : > { %v924_v21 = vadd.f32 %v1350_v62, %v923_v16  ;;  %v1056_v22 = vadd.f32 %v1055_v15, %v993_v17  ;;  %865 = vst [vmem:[%s1578_s29 + $0x70] sm:$0xff] %v1354_v18  ;;  %v998_v40 = vmul.f32 %v1354_v18, %v1354_v18  ;;  %897 = vst [vmem:[%s1578_s29 + $0x170] sm:$0xff] %v1647_v54 }
  0xf2   : > { %v644_v23 = vpop.f32.mrf.mxu0  ;;  %v1652_v60 = vpop.f32.mrf.mxu1 }
  0xf3   : > { %v1057_v26 = vadd.f32 %v1056_v22, %v994_v20  ;;  %863 = vst [vmem:[%s1578_s29 + $0x60] sm:$0xff] %v644_v23  ;;  %v925_v27 = vadd.f32 %v1351_v8, %v924_v21  ;;  %v996_v31 = vmul.f32 %v644_v23, %v644_v23  ;;  %895 = vst [vmem:[%s1578_s29 + $0x160] sm:$0xff] %v1652_v60 }
  0xf4   : > { %v1355_v28 = vpop.f32.mrf.mxu0  ;;  %v1657_v2 = vpop.f32.mrf.mxu1 }
  0xf5   : > { %v926_v30 = vadd.f32 %v925_v27, %v644_v23  ;;  %v1058_v32 = vadd.f32 %v1057_v26, %v995_v25  ;;  %866 = vst [vmem:[%s1578_s29 + $0x78] sm:$0xff] %v1355_v28  ;;  %v999_v45 = vmul.f32 %v1355_v28, %v1355_v28  ;;  %898 = vst [vmem:[%s1578_s29 + $0x178] sm:$0xff] %v1657_v2 }
  0xf6   : > { %v647_v33 = vpop.f32.mrf.mxu0  ;;  %v1662_v8 = vpop.f32.mrf.mxu1 }
  0xf7   : > { %v1059_v35 = vadd.f32 %v1058_v32, %v996_v31  ;;  %864 = vst [vmem:[%s1578_s29 + $0x68] sm:$0xff] %v647_v33  ;;  %v927_v36 = vadd.f32 %v926_v30, %v647_v33  ;;  %v997_v37 = vmul.f32 %v647_v33, %v647_v33  ;;  %896 = vst [vmem:[%s1578_s29 + $0x168] sm:$0xff] %v1662_v8 }
  0xf8   : > { %v1358_v38 = vpop.f32.mrf.mxu0  ;;  %v1667_v15 = vpop.f32.mrf.mxu1 }
  0xf9   : > { %v928_v41 = vadd.f32 %v1354_v18, %v927_v36  ;;  %v1060_v42 = vadd.f32 %v1059_v35, %v997_v37  ;;  %869 = vst [vmem:[%s1578_s29 + $0x90] sm:$0xff] %v1358_v38  ;;  %v1002_v61 = vmul.f32 %v1358_v38, %v1358_v38  ;;  %901 = vst [vmem:[%s1578_s29 + $0x190] sm:$0xff] %v1667_v15 }
  0xfa   : > { %v660_v43 = vpop.f32.mrf.mxu0  ;;  %v1672_v21 = vpop.f32.mrf.mxu1 }
  0xfb   : > { %v1061_v46 = vadd.f32 %v1060_v42, %v998_v40  ;;  %867 = vst [vmem:[%s1578_s29 + $0x80] sm:$0xff] %v660_v43  ;;  %v929_v47 = vadd.f32 %v1355_v28, %v928_v41  ;;  %v1000_v51 = vmul.f32 %v660_v43, %v660_v43  ;;  %899 = vst [vmem:[%s1578_s29 + $0x180] sm:$0xff] %v1672_v21 }
  0xfc   : > { %v1359_v48 = vpop.f32.mrf.mxu0  ;;  %v1677_v27 = vpop.f32.mrf.mxu1 }
  0xfd   : > { %v930_v50 = vadd.f32 %v929_v47, %v660_v43  ;;  %v1062_v52 = vadd.f32 %v1061_v46, %v999_v45  ;;  %870 = vst [vmem:[%s1578_s29 + $0x98] sm:$0xff] %v1359_v48  ;;  %v1003_v3 = vmul.f32 %v1359_v48, %v1359_v48  ;;  %902 = vst [vmem:[%s1578_s29 + $0x198] sm:$0xff] %v1677_v27 }
  0xfe   : > { %v663_v53 = vpop.f32.mrf.mxu0  ;;  %v1682_v33 = vpop.f32.mrf.mxu1 }
  0xff   : > { %v1063_v55 = vadd.f32 %v1062_v52, %v1000_v51  ;;  %868 = vst [vmem:[%s1578_s29 + $0x88] sm:$0xff] %v663_v53  ;;  %v931_v56 = vadd.f32 %v930_v50, %v663_v53  ;;  %v1001_v57 = vmul.f32 %v663_v53, %v663_v53  ;;  %900 = vst [vmem:[%s1578_s29 + $0x188] sm:$0xff] %v1682_v33 }
 0x100   : > { %v1362_v59 = vpop.f32.mrf.mxu0  ;;  %v1687_v40 = vpop.f32.mrf.mxu1 }
 0x101   : > { %v932_v62 = vadd.f32 %v1358_v38, %v931_v56  ;;  %v1064_v0 = vadd.f32 %v1063_v55, %v1001_v57  ;;  %873 = vst [vmem:[%s1578_s29 + $0xb0] sm:$0xff] %v1362_v59  ;;  %v1006_v22 = vmul.f32 %v1362_v59, %v1362_v59  ;;  %905 = vst [vmem:[%s1578_s29 + $0x1b0] sm:$0xff] %v1687_v40 }
 0x102   : > { %v676_v1 = vpop.f32.mrf.mxu0  ;;  %v1692_v46 = vpop.f32.mrf.mxu1 }
 0x103   : > { %v1065_v5 = vadd.f32 %v1064_v0, %v1002_v61  ;;  %871 = vst [vmem:[%s1578_s29 + $0xa0] sm:$0xff] %v676_v1  ;;  %v933_v6 = vadd.f32 %v1359_v48, %v932_v62  ;;  %v1004_v11 = vmul.f32 %v676_v1, %v676_v1  ;;  %903 = vst [vmem:[%s1578_s29 + $0x1a0] sm:$0xff] %v1692_v46 }
 0x104   : > { %v1363_v7 = vpop.f32.mrf.mxu0  ;;  %v1697_v52 = vpop.f32.mrf.mxu1 }
 0x105   : > { %v934_v10 = vadd.f32 %v933_v6, %v676_v1  ;;  %v1066_v12 = vadd.f32 %v1065_v5, %v1003_v3  ;;  %874 = vst [vmem:[%s1578_s29 + $0xb8] sm:$0xff] %v1363_v7  ;;  %v1007_v28 = vmul.f32 %v1363_v7, %v1363_v7  ;;  %906 = vst [vmem:[%s1578_s29 + $0x1b8] sm:$0xff] %v1697_v52 }
 0x106   : > { %v679_v13 = vpop.f32.mrf.mxu0 }
 0x107   : > { %v1067_v16 = vadd.f32 %v1066_v12, %v1004_v11  ;;  %872 = vst [vmem:[%s1578_s29 + $0xa8] sm:$0xff] %v679_v13  ;;  %v935_v17 = vadd.f32 %v934_v10, %v679_v13  ;;  %v1005_v18 = vmul.f32 %v679_v13, %v679_v13 }
 0x108   : > { %v1366_v20 = vpop.f32.mrf.mxu0 }
 0x109   : > { %v936_v23 = vadd.f32 %v1362_v59, %v935_v17  ;;  %v1068_v25 = vadd.f32 %v1067_v16, %v1005_v18  ;;  %877 = vst [vmem:[%s1578_s29 + $0xd0] sm:$0xff] %v1366_v20  ;;  %v1010_v47 = vmul.f32 %v1366_v20, %v1366_v20  ;;  %v1702_v59 = vpop.f32.mrf.mxu1 }
 0x10a   : > { %v692_v26 = vpop.f32.mrf.mxu0  ;;  %904 = vst [vmem:[%s1578_s29 + $0x1a8] sm:$0xff] %v1702_v59 }
 0x10b   : > { %v1069_v30 = vadd.f32 %v1068_v25, %v1006_v22  ;;  %875 = vst [vmem:[%s1578_s29 + $0xc0] sm:$0xff] %v692_v26  ;;  %v937_v31 = vadd.f32 %v1363_v7, %v936_v23  ;;  %v1008_v36 = vmul.f32 %v692_v26, %v692_v26  ;;  %v1707_v3 = vpop.f32.mrf.mxu1  ;;  %v1016_v23 = vmul.f32 %v1592_v63, %v1592_v63 }
 0x10c   : > { %v1367_v32 = vpop.f32.mrf.mxu0  ;;  %909 = vst [vmem:[%s1578_s29 + $0x1d0] sm:$0xff] %v1707_v3 }
 0x10d   : > { %v938_v35 = vadd.f32 %v937_v31, %v692_v26  ;;  %v1070_v37 = vadd.f32 %v1069_v30, %v1007_v28  ;;  %878 = vst [vmem:[%s1578_s29 + $0xd8] sm:$0xff] %v1367_v32  ;;  %v1011_v53 = vmul.f32 %v1367_v32, %v1367_v32  ;;  %v1712_v10 = vpop.f32.mrf.mxu1  ;;  %v1017_v31 = vmul.f32 %v1602_v9, %v1602_v9 }
 0x10e   : > { %v695_v38 = vpop.f32.mrf.mxu0  ;;  %907 = vst [vmem:[%s1578_s29 + $0x1c0] sm:$0xff] %v1712_v10 }
 0x10f   : > { %v1071_v41 = vadd.f32 %v1070_v37, %v1008_v36  ;;  %876 = vst [vmem:[%s1578_s29 + $0xc8] sm:$0xff] %v695_v38  ;;  %v939_v42 = vadd.f32 %v938_v35, %v695_v38  ;;  %v1009_v43 = vmul.f32 %v695_v38, %v695_v38  ;;  %v1716_v16 = vpop.f32.mrf.mxu1  ;;  %v1018_v36 = vmul.f32 %v1587_v58, %v1587_v58 }
 0x110   : > { %v1370_v45 = vpop.f32.mrf.mxu0  ;;  %910 = vst [vmem:[%s1578_s29 + $0x1d8] sm:$0xff] %v1716_v16 }
 0x111   : > { %v940_v48 = vadd.f32 %v1366_v20, %v939_v42  ;;  %v1072_v50 = vadd.f32 %v1071_v41, %v1009_v43  ;;  %881 = vst [vmem:[%s1578_s29 + $0xf0] sm:$0xff] %v1370_v45  ;;  %v1014_v11 = vmul.f32 %v1370_v45, %v1370_v45  ;;  %v1720_v22 = vpop.f32.mrf.mxu1  ;;  %v1019_v41 = vmul.f32 %v1597_v4, %v1597_v4 }
 0x112   : > { %v708_v51 = vpop.f32.mrf.mxu0  ;;  %908 = vst [vmem:[%s1578_s29 + $0x1c8] sm:$0xff] %v1720_v22 }
 0x113   : > { %v1073_v55 = vadd.f32 %v1072_v50, %v1010_v47  ;;  %879 = vst [vmem:[%s1578_s29 + $0xe0] sm:$0xff] %v708_v51  ;;  %v941_v56 = vadd.f32 %v1367_v32, %v940_v48  ;;  %v1012_v62 = vmul.f32 %v708_v51, %v708_v51  ;;  %v1727_v28 = vpop.f32.mrf.mxu1 }
 0x114   : > { %v1371_v57 = vpop.f32.mrf.mxu0  ;;  %913 = vst [vmem:[%s1578_s29 + $0x1f0] sm:$0xff] %v1727_v28 }
 0x115   : > { %v942_v61 = vadd.f32 %v941_v56, %v708_v51  ;;  %v1074_v0 = vadd.f32 %v1073_v55, %v1011_v53  ;;  %882 = vst [vmem:[%s1578_s29 + $0xf8] sm:$0xff] %v1371_v57  ;;  %v1015_v17 = vmul.f32 %v1371_v57, %v1371_v57  ;;  %v1734_v35 = vpop.f32.mrf.mxu1  ;;  %v1021_v51 = vmul.f32 %v1622_v29, %v1622_v29 }
 0x116   : > { %v711_v1 = vpop.f32.mrf.mxu0  ;;  %911 = vst [vmem:[%s1578_s29 + $0x1e0] sm:$0xff] %v1734_v35  ;;  %v1023_v56 = vmul.f32 %v1617_v24, %v1617_v24 }
 0x117   : > { %v1075_v5 = vadd.f32 %v1074_v0, %v1012_v62  ;;  %880 = vst [vmem:[%s1578_s29 + $0xe8] sm:$0xff] %v711_v1  ;;  %v943_v6 = vadd.f32 %v942_v61, %v711_v1  ;;  %v1013_v7 = vmul.f32 %v711_v1, %v711_v1  ;;  %v1741_v38 = vpop.f32.mrf.mxu1  ;;  %v1024_v62 = vmul.f32 %v1632_v39, %v1632_v39 }
 0x118   : > { %914 = vst [vmem:[%s1578_s29 + $0x1f8] sm:$0xff] %v1741_v38 }
 0x119   : > { %v944_v12 = vadd.f32 %v1370_v45, %v943_v6  ;;  %v1076_v13 = vadd.f32 %v1075_v5, %v1013_v7  ;;  %v1748_v43 = vpop.f32.mrf.mxu1  ;;  %v1025_v5 = vmul.f32 %v1642_v49, %v1642_v49 }
 0x11a   : > { %912 = vst [vmem:[%s1578_s29 + $0x1e8] sm:$0xff] %v1748_v43 }
 0x11b   : > { %v945_v18 = vadd.f32 %v1371_v57, %v944_v12  ;;  %v1077_v20 = vadd.f32 %v1076_v13, %v1014_v11  ;;  %v1028_v13 = vmul.f32 %v1652_v60, %v1652_v60 }
 0x11d   : > { %v1078_v25 = vadd.f32 %v1077_v20, %v1015_v17  ;;  %v946_v26 = vadd.f32 %v945_v18, %v1592_v63  ;;  %v1029_v20 = vmul.f32 %v1662_v8, %v1662_v8 }
 0x11f   : > { %v947_v30 = vadd.f32 %v946_v26, %v1602_v9  ;;  %v1079_v32 = vadd.f32 %v1078_v25, %v1016_v23 }
 0x121   : > { %v948_v63 = vadd.f32 %v1587_v58, %v947_v30  ;;  %v1080_v37 = vadd.f32 %v1079_v32, %v1017_v31  ;;  %v1020_v58 = vmul.f32 %v1612_v19, %v1612_v19  ;;  %v1032_v31 = vmul.f32 %v1672_v21, %v1672_v21 }
 0x123   : > { %v1081_v9 = vadd.f32 %v1080_v37, %v1018_v36  ;;  %v949_v42 = vadd.f32 %v1597_v4, %v948_v63  ;;  %v1022_v4 = vmul.f32 %v1607_v14, %v1607_v14  ;;  %v1033_v63 = vmul.f32 %v1682_v33, %v1682_v33 }
 0x125   : > { %v950_v45 = vadd.f32 %v949_v42, %v1612_v19  ;;  %v1082_v47 = vadd.f32 %v1081_v9, %v1019_v41 }
 0x127   : > { %v1083_v48 = vadd.f32 %v1082_v47, %v1020_v58  ;;  %v951_v50 = vadd.f32 %v950_v45, %v1622_v29  ;;  %v1036_v45 = vmul.f32 %v1692_v46, %v1692_v46 }
 0x129   : > { %v952_v53 = vadd.f32 %v1607_v14, %v951_v50  ;;  %v1084_v55 = vadd.f32 %v1083_v48, %v1021_v51  ;;  %v1026_v14 = vmul.f32 %v1627_v34, %v1627_v34  ;;  %v1037_v48 = vmul.f32 %v1702_v59, %v1702_v59 }
 0x12b   : > { %v1085_v57 = vadd.f32 %v1084_v55, %v1022_v4  ;;  %v953_v19 = vadd.f32 %v1617_v24, %v952_v53  ;;  %v1027_v24 = vmul.f32 %v1637_v44, %v1637_v44  ;;  %v1040_v55 = vmul.f32 %v1712_v10, %v1712_v10 }
 0x12d   : > { %v954_v61 = vadd.f32 %v953_v19, %v1632_v39  ;;  %v1086_v0 = vadd.f32 %v1085_v57, %v1023_v56  ;;  %v1041_v19 = vmul.f32 %v1720_v22, %v1720_v22 }
 0x12f   : > { %v1087_v1 = vadd.f32 %v1086_v0, %v1024_v62  ;;  %v955_v29 = vadd.f32 %v954_v61, %v1642_v49 }
 0x131   : > { %v956_v6 = vadd.f32 %v1627_v34, %v955_v29  ;;  %v1088_v7 = vadd.f32 %v1087_v1, %v1025_v5  ;;  %v1030_v34 = vmul.f32 %v1647_v54, %v1647_v54  ;;  %v1044_v29 = vmul.f32 %v1734_v35, %v1734_v35 }
 0x133   : > { %v1089_v11 = vadd.f32 %v1088_v7, %v1026_v14  ;;  %v957_v12 = vadd.f32 %v1637_v44, %v956_v6  ;;  %v1031_v44 = vmul.f32 %v1657_v2, %v1657_v2  ;;  %v1046_v6 = vmul.f32 %v1727_v28, %v1727_v28 }
 0x135   : > { %v958_v39 = vadd.f32 %v957_v12, %v1652_v60  ;;  %v1090_v17 = vadd.f32 %v1089_v11, %v1027_v24 }
 0x137   : > { %v1091_v18 = vadd.f32 %v1090_v17, %v1028_v13  ;;  %v959_v49 = vadd.f32 %v958_v39, %v1662_v8 }
 0x139   : > { %v960_v23 = vadd.f32 %v1647_v54, %v959_v49  ;;  %v1092_v25 = vadd.f32 %v1091_v18, %v1029_v20  ;;  %v1034_v54 = vmul.f32 %v1667_v15, %v1667_v15 }
 0x13b   : > { %v1093_v26 = vadd.f32 %v1092_v25, %v1030_v34  ;;  %v961_v30 = vadd.f32 %v1657_v2, %v960_v23  ;;  %v1035_v2 = vmul.f32 %v1677_v27, %v1677_v27 }
 0x13d   : > { %v962_v60 = vadd.f32 %v961_v30, %v1672_v21  ;;  %v1094_v32 = vadd.f32 %v1093_v26, %v1031_v44 }
 0x13f   : > { %v1095_v36 = vadd.f32 %v1094_v32, %v1032_v31  ;;  %v963_v8 = vadd.f32 %v962_v60, %v1682_v33 }
 0x141   : > { %v964_v37 = vadd.f32 %v1667_v15, %v963_v8  ;;  %v1096_v41 = vadd.f32 %v1095_v36, %v1033_v63  ;;  %v1038_v15 = vmul.f32 %v1687_v40, %v1687_v40 }
 0x143   : > { %v1097_v9 = vadd.f32 %v1096_v41, %v1034_v54  ;;  %v965_v42 = vadd.f32 %v1677_v27, %v964_v37  ;;  %v1039_v27 = vmul.f32 %v1697_v52, %v1697_v52 }
 0x145   : > { %v966_v21 = vadd.f32 %v965_v42, %v1692_v46  ;;  %v1098_v58 = vadd.f32 %v1097_v9, %v1035_v2 }
 0x147   : > { %v1099_v47 = vadd.f32 %v1098_v58, %v1036_v45  ;;  %v967_v33 = vadd.f32 %v966_v21, %v1702_v59 }
 0x149   : > { %v968_v50 = vadd.f32 %v1687_v40, %v967_v33  ;;  %v1100_v51 = vadd.f32 %v1099_v47, %v1037_v48  ;;  %v1042_v40 = vmul.f32 %v1707_v3, %v1707_v3 }
 0x14b   : > { %v1101_v4 = vadd.f32 %v1100_v51, %v1038_v15  ;;  %v969_v53 = vadd.f32 %v1697_v52, %v968_v50  ;;  %v1043_v52 = vmul.f32 %v1716_v16, %v1716_v16 }
 0x14d   : > { %v970_v46 = vadd.f32 %v969_v53, %v1712_v10  ;;  %v1102_v56 = vadd.f32 %v1101_v4, %v1039_v27 }
 0x14f   : > { %v1103_v57 = vadd.f32 %v1102_v56, %v1040_v55  ;;  %v971_v59 = vadd.f32 %v970_v46, %v1720_v22 }
 0x151   : > { %v972_v61 = vadd.f32 %v1707_v3, %v971_v59  ;;  %v1104_v62 = vadd.f32 %v1103_v57, %v1041_v19  ;;  %v1045_v3 = vmul.f32 %v1748_v43, %v1748_v43 }
 0x153   : > { %v1105_v0 = vadd.f32 %v1104_v62, %v1042_v40  ;;  %v973_v10 = vadd.f32 %v1716_v16, %v972_v61  ;;  %v1047_v16 = vmul.f32 %v1741_v38, %v1741_v38 }
 0x155   : > { %v974_v1 = vadd.f32 %v973_v10, %v1734_v35  ;;  %v1106_v5 = vadd.f32 %v1105_v0, %v1043_v52 }
 0x157   : > { %v1107_v22 = vadd.f32 %v1106_v5, %v1044_v29  ;;  %v975_v14 = vadd.f32 %v974_v1, %v1748_v43 }
 0x159   : > { %v976_v7 = vadd.f32 %v1727_v28, %v975_v14  ;;  %v1108_v24 = vadd.f32 %v1107_v22, %v1045_v3 }
 0x15b   : > { %v977_v11 = vadd.f32 %v1741_v38, %v976_v7  ;;  %v1109_v35 = vadd.f32 %v1108_v24, %v1046_v6 }
 0x15d   : > { %v978_v12 = vrot.slane %v977_v11, 4  ;;  %v1110_v39 = vadd.f32 %v1109_v35, %v1047_v16 }
 0x15f   : > { %v979_v13 = vadd.f32 %v978_v12, %v977_v11  ;;  %v1111_v17 = vrot.slane %v1110_v39, 4 }
 0x161   : > { %v980_v18 = vrot.slane %v979_v13, 2  ;;  %v1112_v49 = vadd.f32 %v1111_v17, %v1110_v39 }
 0x163   : > { %v981_v43 = vadd.f32 %v980_v18, %v979_v13  ;;  %v1113_v20 = vrot.slane %v1112_v49, 2 }
 0x165   : > { %v982_v34 = vrot.slane %v981_v43, 1  ;;  %v1114_v23 = vadd.f32 %v1113_v20, %v1112_v49 }
 0x167   : > { %v983_v28 = vadd.f32 %v982_v34, %v981_v43  ;;  %v1115_v25 = vrot.slane %v1114_v23, 1 }
 0x169   : > { %v1116_v38 = vadd.f32 %v1115_v25, %v1114_v23  ;;  %1117 = vst [vmem:[%s214_s6] sm:$0x1] %v983_v28 }
 0x16b   : > { %1118 = vst [vmem:[%s217_s9] sm:$0x1] %v1116_v38 }
 0x16c PF: > { %s15_s15 = sadd.s32 1, %s1457_s15  }
 0x16d   : > { %p12_p5 = scmp.ge.s32.totalorder %s15_s15, 10  }
 0x16f   :  { %14 = sbr.rel (!%p12_p5) target bundleno = 1 (0x1), region = 82 }

// kernel: _lambda_.14
= control target key start
LH: loop header
LB: loop body
LE: loop exit
PB: predicated region body
PF: predicated region fallthrough
CT: control target
= control target key end

     0   :  { %s1503_s0 = inlined_call_operand.vmem [shape: f32[512,128], index: 0, kind: input, shape index: {}]   ;;  %s1504_s1 = inlined_call_operand.vmem [shape: f32[1,128], index: 1, kind: input, shape index: {}]   ;;  %s1505_s2 = inlined_call_operand.vmem [shape: f32[1,128], index: 2, kind: input, shape index: {}]   ;;  %s1506_s3 = inlined_call_operand.vmem [shape: bf16[512,128], index: 3, kind: output, shape index: {}]  }
   0x1   :  { %v14_v0 = vld [vmem:[%s1503_s0] sm:$0xff]  ;;  %v15_v1 = vld [vmem:[%s1503_s0 + $0x8] sm:$0xff]  ;;  %v16_v6 = vld [vmem:[%s1503_s0 + $0x10] sm:$0xff] }
   0x2   :  { %v1086_v2 = vld [vmem:[%s1504_s1] ss:$0 sm:$0xff]  ;;  %v17_v7 = vld [vmem:[%s1503_s0 + $0x18] sm:$0xff]  ;;  %v19_v11 = vld [vmem:[%s1503_s0 + $0x28] sm:$0xff] }
   0x3   :  { %v85_v3 = vmul.f32 %v1086_v2, %v14_v0  ;;  %v86_v4 = vmul.f32 %v1086_v2, %v15_v1  ;;  %v1093_v5 = vld [vmem:[%s1505_s2] ss:$0 sm:$0xff]  ;;  %v87_v8 = vmul.f32 %v1086_v2, %v16_v6  ;;  %v88_v9 = vmul.f32 %v1086_v2, %v17_v7  ;;  %v20_v12 = vld [vmem:[%s1503_s0 + $0x30] sm:$0xff]  ;;  %v21_v17 = vld [vmem:[%s1503_s0 + $0x38] sm:$0xff] }
   0x4   :  { %v18_v10 = vld [vmem:[%s1503_s0 + $0x20] sm:$0xff]  ;;  %v90_v16 = vmul.f32 %v1086_v2, %v19_v11  ;;  %v91_v20 = vmul.f32 %v1086_v2, %v20_v12  ;;  %v92_v21 = vmul.f32 %v1086_v2, %v21_v17  ;;  %v23_v35 = vld [vmem:[%s1503_s0 + $0x48] sm:$0xff]  ;;  %v24_v36 = vld [vmem:[%s1503_s0 + $0x50] sm:$0xff] }
   0x5   :  { %v156_v13 = vadd.f32 %v1093_v5, %v85_v3  ;;  %v157_v14 = vadd.f32 %v1093_v5, %v86_v4  ;;  %v89_v15 = vmul.f32 %v1086_v2, %v18_v10  ;;  %v158_v18 = vadd.f32 %v1093_v5, %v87_v8  ;;  %v22_v34 = vld [vmem:[%s1503_s0 + $0x40] sm:$0xff]  ;;  %v25_v42 = vld [vmem:[%s1503_s0 + $0x58] sm:$0xff]  ;;  %v27_v48 = vld [vmem:[%s1503_s0 + $0x68] sm:$0xff] }
   0x6   :  { %v159_v19 = vadd.f32 %v1093_v5, %v88_v9  ;;  %v161_v29 = vadd.f32 %v1093_v5, %v90_v16  ;;  %v162_v33 = vadd.f32 %v1093_v5, %v91_v20  ;;  %v163_v40 = vadd.f32 %v1093_v5, %v92_v21  ;;  %v26_v47 = vld [vmem:[%s1503_s0 + $0x60] sm:$0xff]  ;;  %v28_v60 = vld [vmem:[%s1503_s0 + $0x70] sm:$0xff]  ;;  %v29_v7 = vld [vmem:[%s1503_s0 + $0x78] sm:$0xff] }
   0x7   :  { %vm220_vm0 = vcmp.gt.f32.partialorder %v156_v13, 0.0  ;;  %vm221_vm1 = vcmp.gt.f32.partialorder %v157_v14, 0.0  ;;  %v284_v22 = vmul.f32 0.2, %v156_v13  ;;  %v285_v23 = vmul.f32 0.2, %v157_v14 }
   0x8   :  { %vm222_vm2 = vcmp.gt.f32.partialorder %v158_v18, 0.0  ;;  %vm223_vm3 = vcmp.gt.f32.partialorder %v159_v19, 0.0  ;;  %v286_v24 = vmul.f32 0.2, %v158_v18  ;;  %v287_v25 = vmul.f32 0.2, %v159_v19 }
   0x9   :  { %v348_v26 = vsel %vm220_vm0, %v156_v13, %v284_v22  ;;  %v349_v27 = vsel %vm221_vm1, %v157_v14, %v285_v23  ;;  %v160_v28 = vadd.f32 %v1093_v5, %v89_v15  ;;  %vm225_vm5 = vcmp.gt.f32.partialorder %v161_v29, 0.0  ;;  %v30_v12 = vld [vmem:[%s1503_s0 + $0x80] sm:$0xff]  ;;  %v31_v13 = vld [vmem:[%s1503_s0 + $0x88] sm:$0xff]  ;;  %v32_v20 = vld [vmem:[%s1503_s0 + $0x90] sm:$0xff] }
   0xa   :  { %v869_v30 = vpack.c.bf16 %v349_v27, %v348_v26  ;;  %v350_v31 = vsel %vm222_vm2, %v158_v18, %v286_v24  ;;  %v351_v32 = vsel %vm223_vm3, %v159_v19, %v287_v25  ;;  %v289_v39 = vmul.f32 0.2, %v161_v29  ;;  %v33_v25 = vld [vmem:[%s1503_s0 + $0x98] sm:$0xff] }
   0xb   :  { %v874_v37 = vpack.c.bf16 %v351_v32, %v350_v31  ;;  %vm224_vm4 = vcmp.gt.f32.partialorder %v160_v28, 0.0  ;;  %v288_v38 = vmul.f32 0.2, %v160_v28  ;;  %vm226_vm6 = vcmp.gt.f32.partialorder %v162_v33, 0.0 }
   0xc   :  { %870 = vst [vmem:[%s1506_s3] sm:$0xff] %v869_v30   ;;  %v290_v41 = vmul.f32 0.2, %v162_v33  ;;  %v93_v44 = vmul.f32 %v1086_v2, %v22_v34  ;;  %v94_v45 = vmul.f32 %v1086_v2, %v23_v35  ;;  %v95_v46 = vmul.f32 %v1086_v2, %v24_v36 }
   0xd   :  { %1026 = vst [vmem:[%s1506_s3 + $0x8] sm:$0xff] %v874_v37   ;;  %v352_v43 = vsel %vm224_vm4, %v160_v28, %v288_v38  ;;  %v353_v49 = vsel %vm225_vm5, %v161_v29, %v289_v39  ;;  %vm227_vm7 = vcmp.gt.f32.partialorder %v163_v40, 0.0  ;;  %v291_v50 = vmul.f32 0.2, %v163_v40  ;;  %v35_v37 = vld [vmem:[%s1503_s0 + $0xa8] sm:$0xff] }
   0xe   :  { %v354_v51 = vsel %vm226_vm6, %v162_v33, %v290_v41  ;;  %v879_v52 = vpack.c.bf16 %v353_v49, %v352_v43  ;;  %v164_v53 = vadd.f32 %v1093_v5, %v93_v44  ;;  %v165_v54 = vadd.f32 %v1093_v5, %v94_v45  ;;  %v34_v33 = vld [vmem:[%s1503_s0 + $0xa0] sm:$0xff]  ;;  %v36_v44 = vld [vmem:[%s1503_s0 + $0xb0] sm:$0xff]  ;;  %v37_v49 = vld [vmem:[%s1503_s0 + $0xb8] sm:$0xff] }
   0xf   :  { %v96_v55 = vmul.f32 %v1086_v2, %v25_v42  ;;  %v355_v56 = vsel %vm227_vm7, %v163_v40, %v291_v50  ;;  %v166_v57 = vadd.f32 %v1093_v5, %v95_v46  ;;  %v97_v58 = vmul.f32 %v1086_v2, %v26_v47  ;;  %v38_v50 = vld [vmem:[%s1503_s0 + $0xc0] sm:$0xff] }
  0x10   :  { %v98_v59 = vmul.f32 %v1086_v2, %v27_v48  ;;  %1027 = vst [vmem:[%s1506_s3 + $0x10] sm:$0xff] %v879_v52   ;;  %v884_v61 = vpack.c.bf16 %v355_v56, %v354_v51  ;;  %vm228_vm8 = vcmp.gt.f32.partialorder %v164_v53, 0.0  ;;  %vm229_vm9 = vcmp.gt.f32.partialorder %v165_v54, 0.0  ;;  %v39_v51 = vld [vmem:[%s1503_s0 + $0xc8] sm:$0xff] }
  0x11   :  { %v292_v62 = vmul.f32 0.2, %v164_v53  ;;  %v293_v63 = vmul.f32 0.2, %v165_v54  ;;  %v167_v0 = vadd.f32 %v1093_v5, %v96_v55  ;;  %vm230_vm10 = vcmp.gt.f32.partialorder %v166_v57, 0.0 }
  0x12   :  { %v294_v1 = vmul.f32 0.2, %v166_v57  ;;  %1028 = vst [vmem:[%s1506_s3 + $0x18] sm:$0xff] %v884_v61   ;;  %v168_v4 = vadd.f32 %v1093_v5, %v97_v58  ;;  %v169_v6 = vadd.f32 %v1093_v5, %v98_v59  ;;  %v99_v8 = vmul.f32 %v1086_v2, %v28_v60 }
  0x13   :  { %v356_v3 = vsel %vm228_vm8, %v164_v53, %v292_v62  ;;  %v357_v9 = vsel %vm229_vm9, %v165_v54, %v293_v63  ;;  %vm231_vm11 = vcmp.gt.f32.partialorder %v167_v0, 0.0  ;;  %v295_v10 = vmul.f32 0.2, %v167_v0  ;;  %v40_v62 = vld [vmem:[%s1503_s0 + $0xd0] sm:$0xff] }
  0x14   :  { %v358_v11 = vsel %vm230_vm10, %v166_v57, %v294_v1  ;;  %v889_v14 = vpack.c.bf16 %v357_v9, %v356_v3  ;;  %vm232_vm12 = vcmp.gt.f32.partialorder %v168_v4, 0.0  ;;  %vm233_vm13 = vcmp.gt.f32.partialorder %v169_v6, 0.0 }
  0x15   :  { %v296_v15 = vmul.f32 0.2, %v168_v4  ;;  %v359_v16 = vsel %vm231_vm11, %v167_v0, %v295_v10  ;;  %v297_v17 = vmul.f32 0.2, %v169_v6  ;;  %v100_v18 = vmul.f32 %v1086_v2, %v29_v7  ;;  %v41_v10 = vld [vmem:[%s1503_s0 + $0xd8] sm:$0xff] }
  0x16   :  { %v170_v19 = vadd.f32 %v1093_v5, %v99_v8  ;;  %1029 = vst [vmem:[%s1506_s3 + $0x20] sm:$0xff] %v889_v14   ;;  %v894_v21 = vpack.c.bf16 %v359_v16, %v358_v11  ;;  %v101_v23 = vmul.f32 %v1086_v2, %v30_v12  ;;  %v102_v24 = vmul.f32 %v1086_v2, %v31_v13  ;;  %v42_v14 = vld [vmem:[%s1503_s0 + $0xe0] sm:$0xff] }
  0x17   :  { %v360_v22 = vsel %vm232_vm12, %v168_v4, %v296_v15  ;;  %v361_v26 = vsel %vm233_vm13, %v169_v6, %v297_v17  ;;  %v171_v27 = vadd.f32 %v1093_v5, %v100_v18  ;;  %v103_v32 = vmul.f32 %v1086_v2, %v32_v20  ;;  %v43_v15 = vld [vmem:[%s1503_s0 + $0xe8] sm:$0xff] }
  0x18   :  { %vm234_vm14 = vcmp.gt.f32.partialorder %v170_v19, 0.0  ;;  %v298_v28 = vmul.f32 0.2, %v170_v19  ;;  %1030 = vst [vmem:[%s1506_s3 + $0x28] sm:$0xff] %v894_v21   ;;  %v899_v29 = vpack.c.bf16 %v361_v26, %v360_v22  ;;  %v172_v30 = vadd.f32 %v1093_v5, %v101_v23  ;;  %v44_v26 = vld [vmem:[%s1503_s0 + $0xf0] sm:$0xff] }
  0x19   :  { %v173_v31 = vadd.f32 %v1093_v5, %v102_v24  ;;  %vm235_vm15 = vcmp.gt.f32.partialorder %v171_v27, 0.0  ;;  %v299_v34 = vmul.f32 0.2, %v171_v27  ;;  %v104_v36 = vmul.f32 %v1086_v2, %v33_v25 }
  0x1a   :  { %v362_v35 = vsel %vm234_vm14, %v170_v19, %v298_v28  ;;  %1031 = vst [vmem:[%s1506_s3 + $0x30] sm:$0xff] %v899_v29   ;;  %vm236_vm0 = vcmp.gt.f32.partialorder %v172_v30, 0.0  ;;  %v300_v38 = vmul.f32 0.2, %v172_v30  ;;  %v174_v41 = vadd.f32 %v1093_v5, %v103_v32 }
  0x1b   :  { %vm237_vm1 = vcmp.gt.f32.partialorder %v173_v31, 0.0  ;;  %v301_v39 = vmul.f32 0.2, %v173_v31  ;;  %v363_v40 = vsel %vm235_vm15, %v171_v27, %v299_v34  ;;  %v175_v42 = vadd.f32 %v1093_v5, %v104_v36 }
  0x1c   :  { %v105_v43 = vmul.f32 %v1086_v2, %v34_v33  ;;  %v904_v45 = vpack.c.bf16 %v363_v40, %v362_v35  ;;  %v364_v46 = vsel %vm236_vm0, %v172_v30, %v300_v38  ;;  %v106_v48 = vmul.f32 %v1086_v2, %v35_v37  ;;  %v46_v38 = vld [vmem:[%s1503_s0 + $0x100] sm:$0xff] }
  0x1d   :  { %v365_v47 = vsel %vm237_vm1, %v173_v31, %v301_v39  ;;  %vm238_vm2 = vcmp.gt.f32.partialorder %v174_v41, 0.0  ;;  %vm239_vm3 = vcmp.gt.f32.partialorder %v175_v42, 0.0  ;;  %v302_v53 = vmul.f32 0.2, %v174_v41  ;;  %v45_v31 = vld [vmem:[%s1503_s0 + $0xf8] sm:$0xff] }
  0x1e   :  { %v909_v52 = vpack.c.bf16 %v365_v47, %v364_v46  ;;  %1032 = vst [vmem:[%s1506_s3 + $0x38] sm:$0xff] %v904_v45   ;;  %v303_v54 = vmul.f32 0.2, %v175_v42  ;;  %v176_v55 = vadd.f32 %v1093_v5, %v105_v43  ;;  %v177_v56 = vadd.f32 %v1093_v5, %v106_v48 }
  0x1f   :  { %v107_v57 = vmul.f32 %v1086_v2, %v36_v44  ;;  %v366_v58 = vsel %vm238_vm2, %v174_v41, %v302_v53  ;;  %v108_v59 = vmul.f32 %v1086_v2, %v37_v49  ;;  %v109_v60 = vmul.f32 %v1086_v2, %v38_v50  ;;  %v48_v50 = vld [vmem:[%s1503_s0 + $0x110] sm:$0xff] }
  0x20   :  { %1033 = vst [vmem:[%s1506_s3 + $0x40] sm:$0xff] %v909_v52   ;;  %v110_v61 = vmul.f32 %v1086_v2, %v39_v51  ;;  %v367_v63 = vsel %vm239_vm3, %v175_v42, %v303_v54  ;;  %vm240_vm4 = vcmp.gt.f32.partialorder %v176_v55, 0.0  ;;  %vm241_vm5 = vcmp.gt.f32.partialorder %v177_v56, 0.0  ;;  %v47_v42 = vld [vmem:[%s1503_s0 + $0x108] sm:$0xff]  ;;  %v49_v51 = vld [vmem:[%s1503_s0 + $0x118] sm:$0xff] }
  0x21   :  { %v304_v0 = vmul.f32 0.2, %v176_v55  ;;  %v914_v1 = vpack.c.bf16 %v367_v63, %v366_v58  ;;  %v305_v3 = vmul.f32 0.2, %v177_v56  ;;  %v178_v4 = vadd.f32 %v1093_v5, %v107_v57  ;;  %v51_v63 = vld [vmem:[%s1503_s0 + $0x128] sm:$0xff] }
  0x22   :  { %v179_v6 = vadd.f32 %v1093_v5, %v108_v59  ;;  %v180_v8 = vadd.f32 %v1093_v5, %v109_v60  ;;  %v181_v9 = vadd.f32 %v1093_v5, %v110_v61  ;;  %v111_v11 = vmul.f32 %v1086_v2, %v40_v62 }
  0x23   :  { %v368_v7 = vsel %vm240_vm4, %v176_v55, %v304_v0  ;;  %1034 = vst [vmem:[%s1506_s3 + $0x48] sm:$0xff] %v914_v1   ;;  %v369_v12 = vsel %vm241_vm5, %v177_v56, %v305_v3  ;;  %vm242_vm6 = vcmp.gt.f32.partialorder %v178_v4, 0.0  ;;  %v306_v13 = vmul.f32 0.2, %v178_v4  ;;  %v50_v55 = vld [vmem:[%s1503_s0 + $0x120] sm:$0xff] }
  0x24   :  { %vm243_vm7 = vcmp.gt.f32.partialorder %v179_v6, 0.0  ;;  %v919_v16 = vpack.c.bf16 %v369_v12, %v368_v7  ;;  %v307_v17 = vmul.f32 0.2, %v179_v6  ;;  %vm244_vm8 = vcmp.gt.f32.partialorder %v180_v8, 0.0 }
  0x25   :  { %vm245_vm9 = vcmp.gt.f32.partialorder %v181_v9, 0.0  ;;  %v370_v18 = vsel %vm242_vm6, %v178_v4, %v306_v13  ;;  %v308_v19 = vmul.f32 0.2, %v180_v8  ;;  %v309_v20 = vmul.f32 0.2, %v181_v9  ;;  %v52_v4 = vld [vmem:[%s1503_s0 + $0x130] sm:$0xff] }
  0x26   :  { %v112_v21 = vmul.f32 %v1086_v2, %v41_v10  ;;  %1035 = vst [vmem:[%s1506_s3 + $0x50] sm:$0xff] %v919_v16   ;;  %v371_v22 = vsel %vm243_vm7, %v179_v6, %v307_v17  ;;  %v182_v23 = vadd.f32 %v1093_v5, %v111_v11  ;;  %v113_v24 = vmul.f32 %v1086_v2, %v42_v14  ;;  %v53_v13 = vld [vmem:[%s1503_s0 + $0x138] sm:$0xff] }
  0x27   :  { %v114_v25 = vmul.f32 %v1086_v2, %v43_v15  ;;  %v924_v27 = vpack.c.bf16 %v371_v22, %v370_v18  ;;  %v372_v28 = vsel %vm244_vm8, %v180_v8, %v308_v19  ;;  %v373_v29 = vsel %vm245_vm9, %v181_v9, %v309_v20  ;;  %v54_v20 = vld [vmem:[%s1503_s0 + $0x140] sm:$0xff] }
  0x28   :  { %v183_v30 = vadd.f32 %v1093_v5, %v112_v21  ;;  %v929_v32 = vpack.c.bf16 %v373_v29, %v372_v28  ;;  %vm246_vm10 = vcmp.gt.f32.partialorder %v182_v23, 0.0  ;;  %v310_v33 = vmul.f32 0.2, %v182_v23 }
  0x29   :  { %v184_v34 = vadd.f32 %v1093_v5, %v113_v24  ;;  %1036 = vst [vmem:[%s1506_s3 + $0x58] sm:$0xff] %v924_v27   ;;  %v185_v36 = vadd.f32 %v1093_v5, %v114_v25  ;;  %v115_v37 = vmul.f32 %v1086_v2, %v44_v26  ;;  %v116_v41 = vmul.f32 %v1086_v2, %v45_v31  ;;  %v55_v24 = vld [vmem:[%s1503_s0 + $0x148] sm:$0xff] }
  0x2a   :  { %vm247_vm11 = vcmp.gt.f32.partialorder %v183_v30, 0.0  ;;  %v311_v35 = vmul.f32 0.2, %v183_v30  ;;  %1037 = vst [vmem:[%s1506_s3 + $0x60] sm:$0xff] %v929_v32   ;;  %v374_v39 = vsel %vm246_vm10, %v182_v23, %v310_v33  ;;  %v117_v49 = vmul.f32 %v1086_v2, %v46_v38  ;;  %v56_v32 = vld [vmem:[%s1503_s0 + $0x150] sm:$0xff]  ;;  %v57_v33 = vld [vmem:[%s1503_s0 + $0x158] sm:$0xff] }
  0x2b   :  { %vm248_vm12 = vcmp.gt.f32.partialorder %v184_v34, 0.0  ;;  %v312_v40 = vmul.f32 0.2, %v184_v34  ;;  %vm249_vm13 = vcmp.gt.f32.partialorder %v185_v36, 0.0  ;;  %v313_v44 = vmul.f32 0.2, %v185_v36 }
  0x2c   :  { %v375_v43 = vsel %vm247_vm11, %v183_v30, %v311_v35  ;;  %v186_v45 = vadd.f32 %v1093_v5, %v115_v37  ;;  %v187_v48 = vadd.f32 %v1093_v5, %v116_v41  ;;  %v118_v54 = vmul.f32 %v1086_v2, %v47_v42  ;;  %v58_v37 = vld [vmem:[%s1503_s0 + $0x160] sm:$0xff] }
  0x2d   :  { %v934_v46 = vpack.c.bf16 %v375_v43, %v374_v39  ;;  %v376_v47 = vsel %vm248_vm12, %v184_v34, %v312_v40  ;;  %v377_v52 = vsel %vm249_vm13, %v185_v36, %v313_v44  ;;  %v188_v58 = vadd.f32 %v1093_v5, %v117_v49  ;;  %v60_v49 = vld [vmem:[%s1503_s0 + $0x170] sm:$0xff] }
  0x2e   :  { %vm250_vm14 = vcmp.gt.f32.partialorder %v186_v45, 0.0  ;;  %v314_v53 = vmul.f32 0.2, %v186_v45  ;;  %v939_v56 = vpack.c.bf16 %v377_v52, %v376_v47  ;;  %vm251_vm15 = vcmp.gt.f32.partialorder %v187_v48, 0.0 }
  0x2f   :  { %1038 = vst [vmem:[%s1506_s3 + $0x68] sm:$0xff] %v934_v46   ;;  %v315_v57 = vmul.f32 0.2, %v187_v48  ;;  %v189_v60 = vadd.f32 %v1093_v5, %v118_v54  ;;  %v119_v61 = vmul.f32 %v1086_v2, %v48_v50  ;;  %v120_v62 = vmul.f32 %v1086_v2, %v49_v51 }
  0x30   :  { %v378_v59 = vsel %vm250_vm14, %v186_v45, %v314_v53  ;;  %1039 = vst [vmem:[%s1506_s3 + $0x70] sm:$0xff] %v939_v56   ;;  %vm252_vm0 = vcmp.gt.f32.partialorder %v188_v58, 0.0  ;;  %v316_v1 = vmul.f32 0.2, %v188_v58  ;;  %v121_v3 = vmul.f32 %v1086_v2, %v50_v55  ;;  %v59_v45 = vld [vmem:[%s1503_s0 + $0x168] sm:$0xff] }
  0x31   :  { %v379_v0 = vsel %vm251_vm15, %v187_v48, %v315_v57  ;;  %vm253_vm1 = vcmp.gt.f32.partialorder %v189_v60, 0.0  ;;  %v317_v7 = vmul.f32 0.2, %v189_v60  ;;  %v190_v8 = vadd.f32 %v1093_v5, %v119_v61  ;;  %v61_v57 = vld [vmem:[%s1503_s0 + $0x178] sm:$0xff] }
  0x32   :  { %v944_v6 = vpack.c.bf16 %v379_v0, %v378_v59  ;;  %v380_v9 = vsel %vm252_vm0, %v188_v58, %v316_v1  ;;  %v191_v10 = vadd.f32 %v1093_v5, %v120_v62  ;;  %v122_v11 = vmul.f32 %v1086_v2, %v51_v63  ;;  %v62_v0 = vld [vmem:[%s1503_s0 + $0x180] sm:$0xff] }
  0x33   :  { %v192_v12 = vadd.f32 %v1093_v5, %v121_v3  ;;  %v381_v14 = vsel %vm253_vm1, %v189_v60, %v317_v7  ;;  %vm254_vm2 = vcmp.gt.f32.partialorder %v190_v8, 0.0  ;;  %v318_v15 = vmul.f32 0.2, %v190_v8 }
  0x34   :  { %1040 = vst [vmem:[%s1506_s3 + $0x78] sm:$0xff] %v944_v6   ;;  %v123_v16 = vmul.f32 %v1086_v2, %v52_v4  ;;  %v949_v17 = vpack.c.bf16 %v381_v14, %v380_v9  ;;  %vm255_vm3 = vcmp.gt.f32.partialorder %v191_v10, 0.0  ;;  %v319_v18 = vmul.f32 0.2, %v191_v10  ;;  %v63_v6 = vld [vmem:[%s1503_s0 + $0x188] sm:$0xff]  ;;  %v64_v14 = vld [vmem:[%s1503_s0 + $0x190] sm:$0xff] }
  0x35   :  { %v193_v19 = vadd.f32 %v1093_v5, %v122_v11  ;;  %v382_v21 = vsel %vm254_vm2, %v190_v8, %v318_v15  ;;  %vm256_vm4 = vcmp.gt.f32.partialorder %v192_v12, 0.0  ;;  %v320_v22 = vmul.f32 0.2, %v192_v12  ;;  %v65_v15 = vld [vmem:[%s1503_s0 + $0x198] sm:$0xff] }
  0x36   :  { %v124_v23 = vmul.f32 %v1086_v2, %v53_v13  ;;  %1041 = vst [vmem:[%s1506_s3 + $0x80] sm:$0xff] %v949_v17   ;;  %v383_v25 = vsel %vm255_vm3, %v191_v10, %v319_v18  ;;  %v194_v27 = vadd.f32 %v1093_v5, %v123_v16  ;;  %v125_v31 = vmul.f32 %v1086_v2, %v54_v20 }
  0x37   :  { %vm257_vm5 = vcmp.gt.f32.partialorder %v193_v19, 0.0  ;;  %v321_v26 = vmul.f32 0.2, %v193_v19  ;;  %v954_v28 = vpack.c.bf16 %v383_v25, %v382_v21  ;;  %v384_v29 = vsel %vm256_vm4, %v192_v12, %v320_v22 }
  0x38   :  { %v195_v30 = vadd.f32 %v1093_v5, %v124_v23  ;;  %vm258_vm6 = vcmp.gt.f32.partialorder %v194_v27, 0.0  ;;  %v322_v35 = vmul.f32 0.2, %v194_v27  ;;  %v126_v36 = vmul.f32 %v1086_v2, %v55_v24 }
  0x39   :  { %v385_v34 = vsel %vm257_vm5, %v193_v19, %v321_v26  ;;  %1042 = vst [vmem:[%s1506_s3 + $0x88] sm:$0xff] %v954_v28   ;;  %v196_v40 = vadd.f32 %v1093_v5, %v125_v31  ;;  %v127_v43 = vmul.f32 %v1086_v2, %v56_v32  ;;  %v128_v44 = vmul.f32 %v1086_v2, %v57_v33  ;;  %v66_v19 = vld [vmem:[%s1503_s0 + $0x1a0] sm:$0xff]  ;;  %v68_v31 = vld [vmem:[%s1503_s0 + $0x1b0] sm:$0xff] }
  0x3a   :  { %v959_v38 = vpack.c.bf16 %v385_v34, %v384_v29  ;;  %vm259_vm7 = vcmp.gt.f32.partialorder %v195_v30, 0.0  ;;  %v323_v39 = vmul.f32 0.2, %v195_v30  ;;  %v386_v41 = vsel %vm258_vm6, %v194_v27, %v322_v35  ;;  %v67_v27 = vld [vmem:[%s1503_s0 + $0x1a8] sm:$0xff] }
  0x3b   :  { %v197_v42 = vadd.f32 %v1093_v5, %v126_v36  ;;  %vm260_vm8 = vcmp.gt.f32.partialorder %v196_v40, 0.0  ;;  %v324_v47 = vmul.f32 0.2, %v196_v40  ;;  %v129_v48 = vmul.f32 %v1086_v2, %v58_v37 }
  0x3c   :  { %1043 = vst [vmem:[%s1506_s3 + $0x90] sm:$0xff] %v959_v38   ;;  %v387_v46 = vsel %vm259_vm7, %v195_v30, %v323_v39  ;;  %v198_v52 = vadd.f32 %v1093_v5, %v127_v43  ;;  %v199_v54 = vadd.f32 %v1093_v5, %v128_v44  ;;  %v130_v55 = vmul.f32 %v1086_v2, %v59_v45  ;;  %v69_v39 = vld [vmem:[%s1503_s0 + $0x1b8] sm:$0xff] }
  0x3d   :  { %v964_v50 = vpack.c.bf16 %v387_v46, %v386_v41  ;;  %vm261_vm9 = vcmp.gt.f32.partialorder %v197_v42, 0.0  ;;  %v325_v51 = vmul.f32 0.2, %v197_v42  ;;  %v388_v53 = vsel %vm260_vm8, %v196_v40, %v324_v47  ;;  %v70_v46 = vld [vmem:[%s1503_s0 + $0x1c0] sm:$0xff] }
  0x3e   :  { %v200_v56 = vadd.f32 %v1093_v5, %v129_v48  ;;  %vm262_vm10 = vcmp.gt.f32.partialorder %v198_v52, 0.0  ;;  %v326_v59 = vmul.f32 0.2, %v198_v52  ;;  %v131_v60 = vmul.f32 %v1086_v2, %v60_v49 }
  0x3f   :  { %1044 = vst [vmem:[%s1506_s3 + $0x98] sm:$0xff] %v964_v50   ;;  %v389_v58 = vsel %vm261_vm9, %v197_v42, %v325_v51  ;;  %vm263_vm11 = vcmp.gt.f32.partialorder %v199_v54, 0.0  ;;  %v327_v62 = vmul.f32 0.2, %v199_v54  ;;  %v201_v63 = vadd.f32 %v1093_v5, %v130_v55  ;;  %v71_v50 = vld [vmem:[%s1503_s0 + $0x1c8] sm:$0xff] }
  0x40   :  { %v969_v61 = vpack.c.bf16 %v389_v58, %v388_v53  ;;  %v390_v1 = vsel %vm262_vm10, %v198_v52, %v326_v59  ;;  %vm264_vm12 = vcmp.gt.f32.partialorder %v200_v56, 0.0  ;;  %v328_v3 = vmul.f32 0.2, %v200_v56  ;;  %v72_v58 = vld [vmem:[%s1503_s0 + $0x1d0] sm:$0xff]  ;;  %v73_v59 = vld [vmem:[%s1503_s0 + $0x1d8] sm:$0xff] }
  0x41   :  { %v132_v4 = vmul.f32 %v1086_v2, %v61_v57  ;;  %v391_v7 = vsel %vm263_vm11, %v199_v54, %v327_v62  ;;  %vm265_vm13 = vcmp.gt.f32.partialorder %v201_v63, 0.0  ;;  %v329_v8 = vmul.f32 0.2, %v201_v63 }
  0x42   :  { %1045 = vst [vmem:[%s1506_s3 + $0xa0] sm:$0xff] %v969_v61   ;;  %v202_v9 = vadd.f32 %v1093_v5, %v131_v60  ;;  %v974_v10 = vpack.c.bf16 %v391_v7, %v390_v1  ;;  %v392_v11 = vsel %vm264_vm12, %v200_v56, %v328_v3  ;;  %v133_v13 = vmul.f32 %v1086_v2, %v62_v0 }
  0x43   :  { %v203_v12 = vadd.f32 %v1093_v5, %v132_v4  ;;  %v393_v16 = vsel %vm265_vm13, %v201_v63, %v329_v8  ;;  %v134_v18 = vmul.f32 %v1086_v2, %v63_v6  ;;  %v135_v25 = vmul.f32 %v1086_v2, %v64_v14  ;;  %v74_v63 = vld [vmem:[%s1503_s0 + $0x1e0] sm:$0xff] }
  0x44   :  { %vm266_vm14 = vcmp.gt.f32.partialorder %v202_v9, 0.0  ;;  %v330_v17 = vmul.f32 0.2, %v202_v9  ;;  %1046 = vst [vmem:[%s1506_s3 + $0xa8] sm:$0xff] %v974_v10   ;;  %v979_v20 = vpack.c.bf16 %v393_v16, %v392_v11  ;;  %v204_v22 = vadd.f32 %v1093_v5, %v133_v13  ;;  %v76_v13 = vld [vmem:[%s1503_s0 + $0x1f0] sm:$0xff] }
  0x45   :  { %vm267_vm15 = vcmp.gt.f32.partialorder %v203_v12, 0.0  ;;  %v331_v21 = vmul.f32 0.2, %v203_v12  ;;  %v205_v24 = vadd.f32 %v1093_v5, %v134_v18  ;;  %v136_v26 = vmul.f32 %v1086_v2, %v65_v15 }
  0x46   :  { %v394_v23 = vsel %vm266_vm14, %v202_v9, %v330_v17  ;;  %1047 = vst [vmem:[%s1506_s3 + $0xb0] sm:$0xff] %v979_v20   ;;  %vm268_vm0 = vcmp.gt.f32.partialorder %v204_v22, 0.0  ;;  %v332_v29 = vmul.f32 0.2, %v204_v22  ;;  %v137_v30 = vmul.f32 %v1086_v2, %v66_v19  ;;  %v75_v9 = vld [vmem:[%s1503_s0 + $0x1e8] sm:$0xff] }
  0x47   :  { %v395_v28 = vsel %vm267_vm15, %v203_v12, %v331_v21  ;;  %vm269_vm1 = vcmp.gt.f32.partialorder %v205_v24, 0.0  ;;  %v333_v33 = vmul.f32 0.2, %v205_v24  ;;  %v206_v34 = vadd.f32 %v1093_v5, %v135_v25  ;;  %v77_v21 = vld [vmem:[%s1503_s0 + $0x1f8] sm:$0xff] }
  0x48   :  { %v984_v32 = vpack.c.bf16 %v395_v28, %v394_v23  ;;  %v396_v35 = vsel %vm268_vm0, %v204_v22, %v332_v29  ;;  %v207_v36 = vadd.f32 %v1093_v5, %v136_v26  ;;  %v138_v37 = vmul.f32 %v1086_v2, %v67_v27 }
  0x49   :  { %v208_v38 = vadd.f32 %v1093_v5, %v137_v30  ;;  %v397_v40 = vsel %vm269_vm1, %v205_v24, %v333_v33  ;;  %vm270_vm2 = vcmp.gt.f32.partialorder %v206_v34, 0.0  ;;  %v334_v41 = vmul.f32 0.2, %v206_v34 }
  0x4a   :  { %1048 = vst [vmem:[%s1506_s3 + $0xb8] sm:$0xff] %v984_v32   ;;  %v139_v42 = vmul.f32 %v1086_v2, %v68_v31  ;;  %v989_v43 = vpack.c.bf16 %v397_v40, %v396_v35  ;;  %vm271_vm3 = vcmp.gt.f32.partialorder %v207_v36, 0.0  ;;  %v335_v44 = vmul.f32 0.2, %v207_v36 }
  0x4b   :  { %v209_v45 = vadd.f32 %v1093_v5, %v138_v37  ;;  %v398_v47 = vsel %vm270_vm2, %v206_v34, %v334_v41  ;;  %vm272_vm4 = vcmp.gt.f32.partialorder %v208_v38, 0.0  ;;  %v336_v48 = vmul.f32 0.2, %v208_v38 }
  0x4c   :  { %v140_v49 = vmul.f32 %v1086_v2, %v69_v39  ;;  %1049 = vst [vmem:[%s1506_s3 + $0xc0] sm:$0xff] %v989_v43   ;;  %v399_v51 = vsel %vm271_vm3, %v207_v36, %v335_v44  ;;  %v210_v53 = vadd.f32 %v1093_v5, %v139_v42  ;;  %v141_v57 = vmul.f32 %v1086_v2, %v70_v46 }
  0x4d   :  { %vm273_vm5 = vcmp.gt.f32.partialorder %v209_v45, 0.0  ;;  %v337_v52 = vmul.f32 0.2, %v209_v45  ;;  %v994_v54 = vpack.c.bf16 %v399_v51, %v398_v47  ;;  %v400_v55 = vsel %vm272_vm4, %v208_v38, %v336_v48 }
  0x4e   :  { %v211_v56 = vadd.f32 %v1093_v5, %v140_v49  ;;  %vm274_vm6 = vcmp.gt.f32.partialorder %v210_v53, 0.0  ;;  %v338_v61 = vmul.f32 0.2, %v210_v53  ;;  %v142_v62 = vmul.f32 %v1086_v2, %v71_v50 }
  0x4f   :  { %v401_v60 = vsel %vm273_vm5, %v209_v45, %v337_v52  ;;  %1050 = vst [vmem:[%s1506_s3 + $0xc8] sm:$0xff] %v994_v54   ;;  %v212_v3 = vadd.f32 %v1093_v5, %v141_v57  ;;  %v143_v7 = vmul.f32 %v1086_v2, %v72_v58  ;;  %v144_v8 = vmul.f32 %v1086_v2, %v73_v59 }
  0x50   :  { %v999_v0 = vpack.c.bf16 %v401_v60, %v400_v55  ;;  %vm275_vm7 = vcmp.gt.f32.partialorder %v211_v56, 0.0  ;;  %v339_v1 = vmul.f32 0.2, %v211_v56  ;;  %v402_v4 = vsel %vm274_vm6, %v210_v53, %v338_v61 }
  0x51   :  { %v213_v6 = vadd.f32 %v1093_v5, %v142_v62  ;;  %vm276_vm8 = vcmp.gt.f32.partialorder %v212_v3, 0.0  ;;  %v340_v11 = vmul.f32 0.2, %v212_v3  ;;  %v145_v12 = vmul.f32 %v1086_v2, %v74_v63 }
  0x52   :  { %1051 = vst [vmem:[%s1506_s3 + $0xd0] sm:$0xff] %v999_v0   ;;  %v403_v10 = vsel %vm275_vm7, %v211_v56, %v339_v1  ;;  %v214_v16 = vadd.f32 %v1093_v5, %v143_v7  ;;  %v215_v18 = vadd.f32 %v1093_v5, %v144_v8  ;;  %v146_v19 = vmul.f32 %v1086_v2, %v75_v9 }
  0x53   :  { %v1004_v14 = vpack.c.bf16 %v403_v10, %v402_v4  ;;  %vm277_vm9 = vcmp.gt.f32.partialorder %v213_v6, 0.0  ;;  %v341_v15 = vmul.f32 0.2, %v213_v6  ;;  %v404_v17 = vsel %vm276_vm8, %v212_v3, %v340_v11 }
  0x54   :  { %v216_v20 = vadd.f32 %v1093_v5, %v145_v12  ;;  %vm278_vm10 = vcmp.gt.f32.partialorder %v214_v16, 0.0  ;;  %v342_v23 = vmul.f32 0.2, %v214_v16  ;;  %v147_v24 = vmul.f32 %v1086_v2, %v76_v13 }
  0x55   :  { %1052 = vst [vmem:[%s1506_s3 + $0xd8] sm:$0xff] %v1004_v14   ;;  %v405_v22 = vsel %vm277_vm9, %v213_v6, %v341_v15  ;;  %vm279_vm11 = vcmp.gt.f32.partialorder %v215_v18, 0.0  ;;  %v343_v26 = vmul.f32 0.2, %v215_v18  ;;  %v217_v27 = vadd.f32 %v1093_v5, %v146_v19 }
  0x56   :  { %v1009_v25 = vpack.c.bf16 %v405_v22, %v404_v17  ;;  %v406_v28 = vsel %vm278_vm10, %v214_v16, %v342_v23  ;;  %vm280_vm12 = vcmp.gt.f32.partialorder %v216_v20, 0.0  ;;  %v344_v29 = vmul.f32 0.2, %v216_v20 }
  0x57   :  { %v148_v30 = vmul.f32 %v1086_v2, %v77_v21  ;;  %v407_v31 = vsel %vm279_vm11, %v215_v18, %v343_v26  ;;  %vm281_vm13 = vcmp.gt.f32.partialorder %v217_v27, 0.0  ;;  %v345_v32 = vmul.f32 0.2, %v217_v27 }
  0x58   :  { %1053 = vst [vmem:[%s1506_s3 + $0xe0] sm:$0xff] %v1009_v25   ;;  %v218_v33 = vadd.f32 %v1093_v5, %v147_v24  ;;  %v1014_v34 = vpack.c.bf16 %v407_v31, %v406_v28  ;;  %v408_v35 = vsel %vm280_vm12, %v216_v20, %v344_v29 }
  0x59   :  { %v219_v36 = vadd.f32 %v1093_v5, %v148_v30  ;;  %v409_v37 = vsel %vm281_vm13, %v217_v27, %v345_v32 }
  0x5a   :  { %vm282_vm14 = vcmp.gt.f32.partialorder %v218_v33, 0.0  ;;  %v346_v38 = vmul.f32 0.2, %v218_v33  ;;  %1054 = vst [vmem:[%s1506_s3 + $0xe8] sm:$0xff] %v1014_v34   ;;  %v1019_v2 = vpack.c.bf16 %v409_v37, %v408_v35 }
  0x5b   :  { %vm283_vm15 = vcmp.gt.f32.partialorder %v219_v36, 0.0  ;;  %v347_v39 = vmul.f32 0.2, %v219_v36 }
  0x5c   :  { %v410_v40 = vsel %vm282_vm14, %v218_v33, %v346_v38  ;;  %1055 = vst [vmem:[%s1506_s3 + $0xf0] sm:$0xff] %v1019_v2  }
  0x5d   :  { %v411_v41 = vsel %vm283_vm15, %v219_v36, %v347_v39 }
  0x5e   :  { %v1024_v42 = vpack.c.bf16 %v411_v41, %v410_v40 }
  0x60   :  { %1056 = vst [vmem:[%s1506_s3 + $0xf8] sm:$0xff] %v1024_v42  }

// kernel: _lambda_.13
= control target key start
LH: loop header
LB: loop body
LE: loop exit
PB: predicated region body
PF: predicated region fallthrough
CT: control target
= control target key end

     0   :  { %v2282_v0 = vmov 0   ;;  %s3156_s1 = inlined_call_operand.vmem [shape: bf16[512,128], index: 1, kind: input, shape index: {}]   ;;  %s3157_s0 = inlined_call_operand.vmem [shape: bf16[512,512], index: 0, kind: input, shape index: {}]   ;;  %s3158_s2 = inlined_call_operand.vmem [shape: f32[512,128], index: 2, kind: output, shape index: {0}]   ;;  %s3159_s3 = inlined_call_operand.vmem [shape: f32[1,1,128], index: 3, kind: output, shape index: {1}]   ;;  %s3160_s4 = inlined_call_operand.vmem [shape: f32[1,1,128], index: 4, kind: output, shape index: {2}]  }
   0x1   :  { %1039 = vmatprep.subr.bf16.mxu0 %v2282_v0  ;;  %1328 = vmatprep.subr.bf16.mxu1 %v2282_v0  ;;  %v2058_v1 = vld [vmem:[%s3156_s1 + $0x38] sm:$0xff]   ;;  %v2060_v3 = vld [vmem:[%s3156_s1 + $0x30] sm:$0xff]   ;;  %v2062_v5 = vld [vmem:[%s3156_s1 + $0x28] sm:$0xff]  }
   0x2   :  { %v2059_v2 = vld [vmem:[%s3156_s1 + $0xb8] sm:$0xff]   ;;  %1040 = vmatpush1.bf16.msra.mxu0 %v2058_v1  ;;  %v2061_v4 = vld [vmem:[%s3156_s1 + $0xb0] sm:$0xff]   ;;  %v2063_v6 = vld [vmem:[%s3156_s1 + $0xa8] sm:$0xff]  }
   0x3   :  { %1329 = vmatpush1.bf16.msra.mxu1 %v2059_v2  ;;  %1041 = vmatprep.subr.bf16.mxu0 %v2282_v0  ;;  %v2064_v7 = vld [vmem:[%s3156_s1 + $0x20] sm:$0xff]   ;;  %v2066_v9 = vld [vmem:[%s3156_s1 + $0x18] sm:$0xff]   ;;  %v2068_v11 = vld [vmem:[%s3156_s1 + $0x10] sm:$0xff]  }
   0x4   :  { %1330 = vmatprep.subr.bf16.mxu1 %v2282_v0  ;;  %v2065_v8 = vld [vmem:[%s3156_s1 + $0xa0] sm:$0xff]   ;;  %v2067_v10 = vld [vmem:[%s3156_s1 + $0x98] sm:$0xff]   ;;  %v2069_v12 = vld [vmem:[%s3156_s1 + $0x90] sm:$0xff]  }
   0x5   :  { %v2070_v13 = vld [vmem:[%s3156_s1 + $0x8] sm:$0xff]   ;;  %v2072_v15 = vld [vmem:[%s3156_s1] sm:$0xff]   ;;  %v2074_v17 = vld [vmem:[%s3156_s1 + $0x78] sm:$0xff]  }
   0x6   :  { %1042 = vmatpush1.bf16.msra.mxu0 %v2060_v3  ;;  %v2071_v14 = vld [vmem:[%s3156_s1 + $0x88] sm:$0xff]   ;;  %v2073_v16 = vld [vmem:[%s3156_s1 + $0x80] sm:$0xff]   ;;  %v2075_v18 = vld [vmem:[%s3156_s1 + $0xf8] sm:$0xff]  }
   0x7   :  { %1331 = vmatpush1.bf16.msra.mxu1 %v2061_v4  ;;  %1043 = vmatprep.subr.bf16.mxu0 %v2282_v0  ;;  %v2092_v19 = vld [vmem:[%s3157_s0 + $0x4] ss:$16 sps:$4 sm:$0xff]   ;;  %v2095_v21 = vld [vmem:[%s3157_s0 + $0xc] ss:$16 sps:$4 sm:$0xff]   ;;  %v2090_v35 = vld [vmem:[%s3157_s0] ss:$16 sps:$4 sm:$0xff]  }
   0x8   :  { %1332 = vmatprep.subr.bf16.mxu1 %v2282_v0  ;;  %v2076_v20 = vld [vmem:[%s3156_s1 + $0x70] sm:$0xff]   ;;  %1071 = vmatprep.mubr.bf16.mxu0 %v2092_v19  ;;  %v2078_v23 = vld [vmem:[%s3156_s1 + $0x68] sm:$0xff]   ;;  %v2080_v25 = vld [vmem:[%s3156_s1 + $0x60] sm:$0xff]  }
   0x9   :  { %v2077_v22 = vld [vmem:[%s3156_s1 + $0xf0] sm:$0xff]   ;;  %1360 = vmatprep.mubr.bf16.mxu1 %v2095_v21  ;;  %v2079_v24 = vld [vmem:[%s3156_s1 + $0xe8] sm:$0xff]   ;;  %v2081_v26 = vld [vmem:[%s3156_s1 + $0xe0] sm:$0xff]  }
   0xa   :  { %1044 = vmatpush1.bf16.msra.mxu0 %v2062_v5  ;;  %v2082_v27 = vld [vmem:[%s3156_s1 + $0x58] sm:$0xff]   ;;  %v2084_v29 = vld [vmem:[%s3156_s1 + $0x50] sm:$0xff]   ;;  %v2086_v31 = vld [vmem:[%s3156_s1 + $0x48] sm:$0xff]  }
   0xb   :  { %1333 = vmatpush1.bf16.msra.mxu1 %v2063_v6  ;;  %1045 = vmatprep.subr.bf16.mxu0 %v2282_v0  ;;  %v2083_v28 = vld [vmem:[%s3156_s1 + $0xd8] sm:$0xff]   ;;  %v2085_v30 = vld [vmem:[%s3156_s1 + $0xd0] sm:$0xff]   ;;  %v2087_v32 = vld [vmem:[%s3156_s1 + $0xc8] sm:$0xff]  }
   0xc   :  { %1334 = vmatprep.subr.bf16.mxu1 %v2282_v0  ;;  %v2088_v33 = vld [vmem:[%s3156_s1 + $0x40] sm:$0xff]   ;;  %v2093_v36 = vld [vmem:[%s3157_s0 + $0x8] ss:$16 sps:$4 sm:$0xff]   ;;  %v2098_v38 = vld [vmem:[%s3157_s0 + $0x2c] ss:$16 sps:$4 sm:$0xff]  }
   0xd   :  { %v2089_v34 = vld [vmem:[%s3156_s1 + $0xc0] sm:$0xff]   ;;  %v2101_v40 = vld [vmem:[%s3157_s0 + $0x28] ss:$16 sps:$4 sm:$0xff]   ;;  %v2104_v42 = vld [vmem:[%s3157_s0 + $0x4c] ss:$16 sps:$4 sm:$0xff]  }
   0xe   :  { %1046 = vmatpush1.bf16.msra.mxu0 %v2064_v7  ;;  %v2096_v37 = vld [vmem:[%s3157_s0 + $0x24] ss:$16 sps:$4 sm:$0xff]   ;;  %v2100_v39 = vld [vmem:[%s3157_s0 + $0x20] ss:$16 sps:$4 sm:$0xff]   ;;  %v2107_v44 = vld [vmem:[%s3157_s0 + $0x48] ss:$16 sps:$4 sm:$0xff]  }
   0xf   :  { %1335 = vmatpush1.bf16.msra.mxu1 %v2065_v8  ;;  %1047 = vmatprep.subr.bf16.mxu0 %v2282_v0  ;;  %v2102_v41 = vld [vmem:[%s3157_s0 + $0x44] ss:$16 sps:$4 sm:$0xff]   ;;  %v2106_v43 = vld [vmem:[%s3157_s0 + $0x40] ss:$16 sps:$4 sm:$0xff]   ;;  %v2110_v46 = vld [vmem:[%s3157_s0 + $0x6c] ss:$16 sps:$4 sm:$0xff]  }
  0x10   :  { %1336 = vmatprep.subr.bf16.mxu1 %v2282_v0  ;;  %v2108_v45 = vld [vmem:[%s3157_s0 + $0x64] ss:$16 sps:$4 sm:$0xff]   ;;  %v2112_v47 = vld [vmem:[%s3157_s0 + $0x60] ss:$16 sps:$4 sm:$0xff]   ;;  %v2113_v48 = vld [vmem:[%s3157_s0 + $0x68] ss:$16 sps:$4 sm:$0xff]  }
  0x11   :  { %v2114_v49 = vld [vmem:[%s3157_s0 + $0x84] ss:$16 sps:$4 sm:$0xff]   ;;  %v2116_v50 = vld [vmem:[%s3157_s0 + $0x8c] ss:$16 sps:$4 sm:$0xff]   ;;  %v2118_v51 = vld [vmem:[%s3157_s0 + $0x80] ss:$16 sps:$4 sm:$0xff]  }
  0x12   :  { %1048 = vmatpush1.bf16.msra.mxu0 %v2066_v9  ;;  %v2119_v52 = vld [vmem:[%s3157_s0 + $0x88] ss:$16 sps:$4 sm:$0xff]   ;;  %v2120_v53 = vld [vmem:[%s3157_s0 + $0xa4] ss:$16 sps:$4 sm:$0xff]   ;;  %v2122_v54 = vld [vmem:[%s3157_s0 + $0xac] ss:$16 sps:$4 sm:$0xff]  }
  0x13   :  { %1337 = vmatpush1.bf16.msra.mxu1 %v2067_v10  ;;  %1049 = vmatprep.subr.bf16.mxu0 %v2282_v0  ;;  %v2124_v55 = vld [vmem:[%s3157_s0 + $0xa0] ss:$16 sps:$4 sm:$0xff]   ;;  %v2125_v56 = vld [vmem:[%s3157_s0 + $0xa8] ss:$16 sps:$4 sm:$0xff]   ;;  %v2126_v57 = vld [vmem:[%s3157_s0 + $0xc4] ss:$16 sps:$4 sm:$0xff]  }
  0x14   :  { %1338 = vmatprep.subr.bf16.mxu1 %v2282_v0  ;;  %v2128_v58 = vld [vmem:[%s3157_s0 + $0xcc] ss:$16 sps:$4 sm:$0xff]   ;;  %v2130_v59 = vld [vmem:[%s3157_s0 + $0xc0] ss:$16 sps:$4 sm:$0xff]   ;;  %v2131_v60 = vld [vmem:[%s3157_s0 + $0xc8] ss:$16 sps:$4 sm:$0xff]  }
  0x15   :  { %v2132_v61 = vld [vmem:[%s3157_s0 + $0xe4] ss:$16 sps:$4 sm:$0xff]   ;;  %v2134_v62 = vld [vmem:[%s3157_s0 + $0xec] ss:$16 sps:$4 sm:$0xff]   ;;  %v2136_v63 = vld [vmem:[%s3157_s0 + $0xe0] ss:$16 sps:$4 sm:$0xff]  }
  0x16   :  { %1050 = vmatpush1.bf16.msra.mxu0 %v2068_v11  ;;  %v2138_v1 = vld [vmem:[%s3157_s0 + $0x104] ss:$16 sps:$4 sm:$0xff]   ;;  %v2140_v2 = vld [vmem:[%s3157_s0 + $0x10c] ss:$16 sps:$4 sm:$0xff]   ;;  %v2142_v3 = vld [vmem:[%s3157_s0 + $0x100] ss:$16 sps:$4 sm:$0xff]  }
  0x17   :  { %1339 = vmatpush1.bf16.msra.mxu1 %v2069_v12  ;;  %1051 = vmatprep.subr.bf16.mxu0 %v2282_v0  ;;  %v2143_v4 = vld [vmem:[%s3157_s0 + $0x108] ss:$16 sps:$4 sm:$0xff]   ;;  %v2144_v5 = vld [vmem:[%s3157_s0 + $0x124] ss:$16 sps:$4 sm:$0xff]   ;;  %v2146_v6 = vld [vmem:[%s3157_s0 + $0x12c] ss:$16 sps:$4 sm:$0xff]  }
  0x18   :  { %1340 = vmatprep.subr.bf16.mxu1 %v2282_v0  ;;  %v2148_v7 = vld [vmem:[%s3157_s0 + $0x120] ss:$16 sps:$4 sm:$0xff]   ;;  %v2149_v8 = vld [vmem:[%s3157_s0 + $0x128] ss:$16 sps:$4 sm:$0xff]   ;;  %v2150_v9 = vld [vmem:[%s3157_s0 + $0x144] ss:$16 sps:$4 sm:$0xff]  }
  0x19   :  { %v2152_v10 = vld [vmem:[%s3157_s0 + $0x14c] ss:$16 sps:$4 sm:$0xff]   ;;  %v2154_v11 = vld [vmem:[%s3157_s0 + $0x140] ss:$16 sps:$4 sm:$0xff]   ;;  %v2155_v12 = vld [vmem:[%s3157_s0 + $0x148] ss:$16 sps:$4 sm:$0xff]  }
  0x1a   :  { %1052 = vmatpush1.bf16.msra.mxu0 %v2070_v13  ;;  %v2156_v13 = vld [vmem:[%s3157_s0 + $0x164] ss:$16 sps:$4 sm:$0xff]   ;;  %v2166_v19 = vld [vmem:[%s3157_s0 + $0x180] ss:$16 sps:$4 sm:$0xff]  }
  0x1b   :  { %1341 = vmatpush1.bf16.msra.mxu1 %v2071_v14  ;;  %1053 = vmatprep.subr.bf16.mxu0 %v2282_v0  ;;  %v2158_v14 = vld [vmem:[%s3157_s0 + $0x16c] ss:$16 sps:$4 sm:$0xff]   ;;  %v2168_v21 = vld [vmem:[%s3157_s0 + $0x1a4] ss:$16 sps:$4 sm:$0xff]  }
  0x1c   :  { %1342 = vmatprep.subr.bf16.mxu1 %v2282_v0 }
  0x1e   :  { %1054 = vmatpush1.bf16.msra.mxu0 %v2072_v15  ;;  %v2160_v15 = vld [vmem:[%s3157_s0 + $0x160] ss:$16 sps:$4 sm:$0xff]  }
  0x1f   :  { %1343 = vmatpush1.bf16.msra.mxu1 %v2073_v16  ;;  %1055 = vmatprep.subr.bf16.mxu0 %v2282_v0  ;;  %v2161_v16 = vld [vmem:[%s3157_s0 + $0x168] ss:$16 sps:$4 sm:$0xff]  }
  0x20   :  { %1344 = vmatprep.subr.bf16.mxu1 %v2282_v0 }
  0x22   :  { %1056 = vmatpush2.bf16.msra.mxu0 %v2074_v17  ;;  %v2162_v17 = vld [vmem:[%s3157_s0 + $0x184] ss:$16 sps:$4 sm:$0xff]  }
  0x23   :  { %1345 = vmatpush2.bf16.msra.mxu1 %v2075_v18  ;;  %1057 = vmatprep.subr.bf16.mxu0 %v2282_v0  ;;  %v2164_v18 = vld [vmem:[%s3157_s0 + $0x18c] ss:$16 sps:$4 sm:$0xff]  }
  0x24   :  { %1346 = vmatprep.subr.bf16.mxu1 %v2282_v0 }
  0x26   :  { %1058 = vmatpush2.bf16.msra.mxu0 %v2076_v20  ;;  %v2167_v20 = vld [vmem:[%s3157_s0 + $0x188] ss:$16 sps:$4 sm:$0xff]  }
  0x27   :  { %1347 = vmatpush2.bf16.msra.mxu1 %v2077_v22  ;;  %1059 = vmatprep.subr.bf16.mxu0 %v2282_v0  ;;  %v2170_v22 = vld [vmem:[%s3157_s0 + $0x1ac] ss:$16 sps:$4 sm:$0xff]  }
  0x28   :  { %1348 = vmatprep.subr.bf16.mxu1 %v2282_v0 }
  0x2a   :  { %1060 = vmatpush2.bf16.msra.mxu0 %v2078_v23  ;;  %v2172_v23 = vld [vmem:[%s3157_s0 + $0x1a0] ss:$16 sps:$4 sm:$0xff]  }
  0x2b   :  { %1349 = vmatpush2.bf16.msra.mxu1 %v2079_v24  ;;  %1061 = vmatprep.subr.bf16.mxu0 %v2282_v0  ;;  %v2173_v24 = vld [vmem:[%s3157_s0 + $0x1a8] ss:$16 sps:$4 sm:$0xff]  }
  0x2c   :  { %1350 = vmatprep.subr.bf16.mxu1 %v2282_v0 }
  0x2e   :  { %1062 = vmatpush2.bf16.msra.mxu0 %v2080_v25  ;;  %v2174_v25 = vld [vmem:[%s3157_s0 + $0x1c4] ss:$16 sps:$4 sm:$0xff]  }
  0x2f   :  { %1351 = vmatpush2.bf16.msra.mxu1 %v2081_v26  ;;  %1063 = vmatprep.subr.bf16.mxu0 %v2282_v0  ;;  %v2176_v26 = vld [vmem:[%s3157_s0 + $0x1cc] ss:$16 sps:$4 sm:$0xff]  }
  0x30   :  { %1352 = vmatprep.subr.bf16.mxu1 %v2282_v0 }
  0x32   :  { %1064 = vmatpush2.bf16.msra.mxu0 %v2082_v27  ;;  %v2178_v27 = vld [vmem:[%s3157_s0 + $0x1c0] ss:$16 sps:$4 sm:$0xff]  }
  0x33   :  { %1353 = vmatpush2.bf16.msra.mxu1 %v2083_v28  ;;  %1065 = vmatprep.subr.bf16.mxu0 %v2282_v0  ;;  %v2179_v28 = vld [vmem:[%s3157_s0 + $0x1c8] ss:$16 sps:$4 sm:$0xff]  }
  0x34   :  { %1354 = vmatprep.subr.bf16.mxu1 %v2282_v0 }
  0x36   :  { %1066 = vmatpush2.bf16.msra.mxu0 %v2084_v29  ;;  %v2180_v29 = vld [vmem:[%s3157_s0 + $0x1e4] ss:$16 sps:$4 sm:$0xff]  }
  0x37   :  { %1355 = vmatpush2.bf16.msra.mxu1 %v2085_v30  ;;  %1067 = vmatprep.subr.bf16.mxu0 %v2282_v0  ;;  %v2182_v30 = vld [vmem:[%s3157_s0 + $0x1ec] ss:$16 sps:$4 sm:$0xff]  }
  0x38   :  { %1356 = vmatprep.subr.bf16.mxu1 %v2282_v0 }
  0x3a   :  { %1068 = vmatpush2.bf16.msra.mxu0 %v2086_v31  ;;  %v2184_v31 = vld [vmem:[%s3157_s0 + $0x1e0] ss:$16 sps:$4 sm:$0xff]  }
  0x3b   :  { %1357 = vmatpush2.bf16.msra.mxu1 %v2087_v32  ;;  %1069 = vmatprep.subr.bf16.mxu0 %v2282_v0  ;;  %v2185_v32 = vld [vmem:[%s3157_s0 + $0x1e8] ss:$16 sps:$4 sm:$0xff]  }
  0x3c   :  { %1358 = vmatprep.subr.bf16.mxu1 %v2282_v0  ;;  %v2137_v0 = vld [vmem:[%s3157_s0 + $0xe8] ss:$16 sps:$4 sm:$0xff]  }
  0x3e   :  { %1070 = vmatpush2.bf16.msra.mxu0 %v2088_v33  ;;  %v2186_v33 = vld [vmem:[%s3157_s0 + $0x204] ss:$16 sps:$4 sm:$0xff]  }
  0x3f   :  { %1359 = vmatpush2.bf16.msra.mxu1 %v2089_v34  ;;  %v2188_v34 = vld [vmem:[%s3157_s0 + $0x20c] ss:$16 sps:$4 sm:$0xff]  }
  0x41   :  { %1072 = vmatmul.mubr.bf16.vlgmr.msra.gmra.mxu0 %v2090_v35  ;;  %v2190_v35 = vld [vmem:[%s3157_s0 + $0x200] ss:$16 sps:$4 sm:$0xff]  }
  0x42   :  { %1361 = vmatmul.mubr.bf16.vlgmr.msra.gmra.mxu1 %v2093_v36  ;;  %1079 = vmatprep.mubr.bf16.mxu0 %v2096_v37  ;;  %v2191_v36 = vld [vmem:[%s3157_s0 + $0x208] ss:$16 sps:$4 sm:$0xff]   ;;  %v2192_v37 = vld [vmem:[%s3157_s0 + $0x224] ss:$16 sps:$4 sm:$0xff]  }
  0x43   :  { %1368 = vmatprep.mubr.bf16.mxu1 %v2098_v38  ;;  %v2194_v38 = vld [vmem:[%s3157_s0 + $0x22c] ss:$16 sps:$4 sm:$0xff]  }
  0x49   :  { %1080 = vmatmul.mubr.bf16.gmra.mxu0 %v2100_v39  ;;  %v2196_v39 = vld [vmem:[%s3157_s0 + $0x220] ss:$16 sps:$4 sm:$0xff]  }
  0x4a   :  { %1369 = vmatmul.mubr.bf16.gmra.mxu1 %v2101_v40  ;;  %1087 = vmatprep.mubr.bf16.mxu0 %v2102_v41  ;;  %v2197_v40 = vld [vmem:[%s3157_s0 + $0x228] ss:$16 sps:$4 sm:$0xff]   ;;  %v2198_v41 = vld [vmem:[%s3157_s0 + $0x244] ss:$16 sps:$4 sm:$0xff]  }
  0x4b   :  { %1376 = vmatprep.mubr.bf16.mxu1 %v2104_v42  ;;  %v2200_v42 = vld [vmem:[%s3157_s0 + $0x24c] ss:$16 sps:$4 sm:$0xff]  }
  0x51   :  { %1088 = vmatmul.mubr.bf16.gmra.mxu0 %v2106_v43  ;;  %v2202_v43 = vld [vmem:[%s3157_s0 + $0x240] ss:$16 sps:$4 sm:$0xff]  }
  0x52   :  { %1377 = vmatmul.mubr.bf16.gmra.mxu1 %v2107_v44  ;;  %1095 = vmatprep.mubr.bf16.mxu0 %v2108_v45  ;;  %v2203_v44 = vld [vmem:[%s3157_s0 + $0x248] ss:$16 sps:$4 sm:$0xff]   ;;  %v2204_v45 = vld [vmem:[%s3157_s0 + $0x264] ss:$16 sps:$4 sm:$0xff]  }
  0x53   :  { %1384 = vmatprep.mubr.bf16.mxu1 %v2110_v46  ;;  %v2206_v46 = vld [vmem:[%s3157_s0 + $0x26c] ss:$16 sps:$4 sm:$0xff]  }
  0x59   :  { %1096 = vmatmul.mubr.bf16.gmra.mxu0 %v2112_v47  ;;  %v2208_v47 = vld [vmem:[%s3157_s0 + $0x260] ss:$16 sps:$4 sm:$0xff]  }
  0x5a   :  { %1385 = vmatmul.mubr.bf16.gmra.mxu1 %v2113_v48  ;;  %1103 = vmatprep.mubr.bf16.mxu0 %v2114_v49  ;;  %v2209_v48 = vld [vmem:[%s3157_s0 + $0x268] ss:$16 sps:$4 sm:$0xff]   ;;  %v2210_v49 = vld [vmem:[%s3157_s0 + $0x284] ss:$16 sps:$4 sm:$0xff]  }
  0x5b   :  { %1392 = vmatprep.mubr.bf16.mxu1 %v2116_v50  ;;  %v2212_v50 = vld [vmem:[%s3157_s0 + $0x28c] ss:$16 sps:$4 sm:$0xff]  }
  0x61   :  { %1104 = vmatmul.mubr.bf16.gmra.mxu0 %v2118_v51  ;;  %v2214_v51 = vld [vmem:[%s3157_s0 + $0x280] ss:$16 sps:$4 sm:$0xff]  }
  0x62   :  { %1393 = vmatmul.mubr.bf16.gmra.mxu1 %v2119_v52  ;;  %1111 = vmatprep.mubr.bf16.mxu0 %v2120_v53  ;;  %v2215_v52 = vld [vmem:[%s3157_s0 + $0x288] ss:$16 sps:$4 sm:$0xff]   ;;  %v2216_v53 = vld [vmem:[%s3157_s0 + $0x2a4] ss:$16 sps:$4 sm:$0xff]  }
  0x63   :  { %1400 = vmatprep.mubr.bf16.mxu1 %v2122_v54  ;;  %v2218_v54 = vld [vmem:[%s3157_s0 + $0x2ac] ss:$16 sps:$4 sm:$0xff]  }
  0x69   :  { %1112 = vmatmul.mubr.bf16.gmra.mxu0 %v2124_v55  ;;  %v2220_v55 = vld [vmem:[%s3157_s0 + $0x2a0] ss:$16 sps:$4 sm:$0xff]  }
  0x6a   :  { %1401 = vmatmul.mubr.bf16.gmra.mxu1 %v2125_v56  ;;  %1119 = vmatprep.mubr.bf16.mxu0 %v2126_v57  ;;  %v2221_v56 = vld [vmem:[%s3157_s0 + $0x2a8] ss:$16 sps:$4 sm:$0xff]   ;;  %v2222_v57 = vld [vmem:[%s3157_s0 + $0x2c4] ss:$16 sps:$4 sm:$0xff]  }
  0x6b   :  { %1408 = vmatprep.mubr.bf16.mxu1 %v2128_v58  ;;  %v2224_v58 = vld [vmem:[%s3157_s0 + $0x2cc] ss:$16 sps:$4 sm:$0xff]  }
  0x71   :  { %1120 = vmatmul.mubr.bf16.gmra.mxu0 %v2130_v59  ;;  %v2226_v59 = vld [vmem:[%s3157_s0 + $0x2c0] ss:$16 sps:$4 sm:$0xff]  }
  0x72   :  { %1409 = vmatmul.mubr.bf16.gmra.mxu1 %v2131_v60  ;;  %1127 = vmatprep.mubr.bf16.mxu0 %v2132_v61  ;;  %v2227_v60 = vld [vmem:[%s3157_s0 + $0x2c8] ss:$16 sps:$4 sm:$0xff]   ;;  %v2228_v61 = vld [vmem:[%s3157_s0 + $0x2e4] ss:$16 sps:$4 sm:$0xff]  }
  0x73   :  { %1416 = vmatprep.mubr.bf16.mxu1 %v2134_v62  ;;  %v2230_v62 = vld [vmem:[%s3157_s0 + $0x2ec] ss:$16 sps:$4 sm:$0xff]  }
  0x79   :  { %1128 = vmatmul.mubr.bf16.gmra.mxu0 %v2136_v63  ;;  %v2232_v63 = vld [vmem:[%s3157_s0 + $0x2e0] ss:$16 sps:$4 sm:$0xff]  }
  0x7a   :  { %1417 = vmatmul.mubr.bf16.gmra.mxu1 %v2137_v0  ;;  %1135 = vmatprep.mubr.bf16.mxu0 %v2138_v1  ;;  %v2233_v0 = vld [vmem:[%s3157_s0 + $0x2e8] ss:$16 sps:$4 sm:$0xff]   ;;  %v2234_v1 = vld [vmem:[%s3157_s0 + $0x304] ss:$16 sps:$4 sm:$0xff]  }
  0x7b   :  { %1424 = vmatprep.mubr.bf16.mxu1 %v2140_v2  ;;  %v2236_v2 = vld [vmem:[%s3157_s0 + $0x30c] ss:$16 sps:$4 sm:$0xff]  }
  0x81   :  { %1136 = vmatmul.mubr.bf16.gmra.mxu0 %v2142_v3  ;;  %v2238_v3 = vld [vmem:[%s3157_s0 + $0x300] ss:$16 sps:$4 sm:$0xff]  }
  0x82   :  { %1425 = vmatmul.mubr.bf16.gmra.mxu1 %v2143_v4  ;;  %1143 = vmatprep.mubr.bf16.mxu0 %v2144_v5  ;;  %v2239_v4 = vld [vmem:[%s3157_s0 + $0x308] ss:$16 sps:$4 sm:$0xff]   ;;  %v2240_v5 = vld [vmem:[%s3157_s0 + $0x324] ss:$16 sps:$4 sm:$0xff]  }
  0x83   :  { %1432 = vmatprep.mubr.bf16.mxu1 %v2146_v6  ;;  %v2242_v6 = vld [vmem:[%s3157_s0 + $0x32c] ss:$16 sps:$4 sm:$0xff]  }
  0x89   :  { %1144 = vmatmul.mubr.bf16.gmra.mxu0 %v2148_v7 }
  0x8a   :  { %1433 = vmatmul.mubr.bf16.gmra.mxu1 %v2149_v8  ;;  %1151 = vmatprep.mubr.bf16.mxu0 %v2150_v9 }
  0x8b   :  { %1440 = vmatprep.mubr.bf16.mxu1 %v2152_v10 }
  0x91   :  { %1152 = vmatmul.mubr.bf16.gmra.mxu0 %v2154_v11 }
  0x92   :  { %1441 = vmatmul.mubr.bf16.gmra.mxu1 %v2155_v12  ;;  %1159 = vmatprep.mubr.bf16.mxu0 %v2156_v13  ;;  %v2244_v13 = vld [vmem:[%s3157_s0 + $0x320] ss:$16 sps:$4 sm:$0xff]  }
  0x93   :  { %1448 = vmatprep.mubr.bf16.mxu1 %v2158_v14 }
  0x99   :  { %1160 = vmatmul.mubr.bf16.gmra.mxu0 %v2160_v15  ;;  %v2245_v15 = vld [vmem:[%s3157_s0 + $0x328] ss:$16 sps:$4 sm:$0xff]  }
  0x9a   :  { %1449 = vmatmul.mubr.bf16.gmra.mxu1 %v2161_v16  ;;  %1167 = vmatprep.mubr.bf16.mxu0 %v2162_v17  ;;  %v2246_v16 = vld [vmem:[%s3157_s0 + $0x344] ss:$16 sps:$4 sm:$0xff]  }
  0x9b   :  { %1456 = vmatprep.mubr.bf16.mxu1 %v2164_v18 }
  0xa1   :  { %1168 = vmatmul.mubr.bf16.gmra.mxu0 %v2166_v19  ;;  %v2248_v19 = vld [vmem:[%s3157_s0 + $0x34c] ss:$16 sps:$4 sm:$0xff]  }
  0xa2   :  { %1457 = vmatmul.mubr.bf16.gmra.mxu1 %v2167_v20  ;;  %1175 = vmatprep.mubr.bf16.mxu0 %v2168_v21 }
  0xa3   :  { %1464 = vmatprep.mubr.bf16.mxu1 %v2170_v22 }
  0xa9   :  { %1176 = vmatmul.mubr.bf16.gmra.mxu0 %v2172_v23 }
  0xaa   :  { %1465 = vmatmul.mubr.bf16.gmra.mxu1 %v2173_v24  ;;  %1183 = vmatprep.mubr.bf16.mxu0 %v2174_v25 }
  0xab   :  { %1472 = vmatprep.mubr.bf16.mxu1 %v2176_v26 }
  0xb1   :  { %1184 = vmatmul.mubr.bf16.gmra.mxu0 %v2178_v27 }
  0xb2   :  { %1473 = vmatmul.mubr.bf16.gmra.mxu1 %v2179_v28  ;;  %1191 = vmatprep.mubr.bf16.mxu0 %v2180_v29 }
  0xb3   :  { %1480 = vmatprep.mubr.bf16.mxu1 %v2182_v30 }
  0xb9   :  { %1192 = vmatmul.mubr.bf16.gmra.mxu0 %v2184_v31 }
  0xba   :  { %1481 = vmatmul.mubr.bf16.gmra.mxu1 %v2185_v32  ;;  %1199 = vmatprep.mubr.bf16.mxu0 %v2186_v33  ;;  %v2250_v33 = vld [vmem:[%s3157_s0 + $0x340] ss:$16 sps:$4 sm:$0xff]  }
  0xbb   :  { %1488 = vmatprep.mubr.bf16.mxu1 %v2188_v34 }
  0xc1   :  { %1200 = vmatmul.mubr.bf16.gmra.mxu0 %v2190_v35  ;;  %v2251_v35 = vld [vmem:[%s3157_s0 + $0x348] ss:$16 sps:$4 sm:$0xff]  }
  0xc2   :  { %1489 = vmatmul.mubr.bf16.gmra.mxu1 %v2191_v36  ;;  %1207 = vmatprep.mubr.bf16.mxu0 %v2192_v37  ;;  %v2252_v36 = vld [vmem:[%s3157_s0 + $0x364] ss:$16 sps:$4 sm:$0xff]  }
  0xc3   :  { %1496 = vmatprep.mubr.bf16.mxu1 %v2194_v38 }
  0xc9   :  { %1208 = vmatmul.mubr.bf16.gmra.mxu0 %v2196_v39 }
  0xca   :  { %1497 = vmatmul.mubr.bf16.gmra.mxu1 %v2197_v40  ;;  %1215 = vmatprep.mubr.bf16.mxu0 %v2198_v41  ;;  %v2254_v40 = vld [vmem:[%s3157_s0 + $0x36c] ss:$16 sps:$4 sm:$0xff]  }
  0xcb   :  { %1504 = vmatprep.mubr.bf16.mxu1 %v2200_v42 }
  0xd1   :  { %1216 = vmatmul.mubr.bf16.gmra.mxu0 %v2202_v43 }
  0xd2   :  { %1505 = vmatmul.mubr.bf16.gmra.mxu1 %v2203_v44  ;;  %1223 = vmatprep.mubr.bf16.mxu0 %v2204_v45 }
  0xd3   :  { %1512 = vmatprep.mubr.bf16.mxu1 %v2206_v46 }
  0xd9   :  { %1224 = vmatmul.mubr.bf16.gmra.mxu0 %v2208_v47 }
  0xda   :  { %1513 = vmatmul.mubr.bf16.gmra.mxu1 %v2209_v48  ;;  %1231 = vmatprep.mubr.bf16.mxu0 %v2210_v49 }
  0xdb   :  { %1520 = vmatprep.mubr.bf16.mxu1 %v2212_v50 }
  0xe1   :  { %1232 = vmatmul.mubr.bf16.gmra.mxu0 %v2214_v51 }
  0xe2   :  { %1521 = vmatmul.mubr.bf16.gmra.mxu1 %v2215_v52  ;;  %1239 = vmatprep.mubr.bf16.mxu0 %v2216_v53  ;;  %v2256_v53 = vld [vmem:[%s3157_s0 + $0x360] ss:$16 sps:$4 sm:$0xff]  }
  0xe3   :  { %1528 = vmatprep.mubr.bf16.mxu1 %v2218_v54 }
  0xe9   :  { %1240 = vmatmul.mubr.bf16.gmra.mxu0 %v2220_v55  ;;  %v2257_v55 = vld [vmem:[%s3157_s0 + $0x368] ss:$16 sps:$4 sm:$0xff]  }
  0xea   :  { %1529 = vmatmul.mubr.bf16.gmra.mxu1 %v2221_v56  ;;  %1247 = vmatprep.mubr.bf16.mxu0 %v2222_v57  ;;  %v2260_v56 = vld [vmem:[%s3157_s0 + $0x384] ss:$16 sps:$4 sm:$0xff]  }
  0xeb   :  { %1536 = vmatprep.mubr.bf16.mxu1 %v2224_v58 }
  0xf1   :  { %1248 = vmatmul.mubr.bf16.gmra.mxu0 %v2226_v59 }
  0xf2   :  { %1537 = vmatmul.mubr.bf16.gmra.mxu1 %v2227_v60  ;;  %1255 = vmatprep.mubr.bf16.mxu0 %v2228_v61  ;;  %v2263_v60 = vld [vmem:[%s3157_s0 + $0x38c] ss:$16 sps:$4 sm:$0xff]  }
  0xf3   :  { %1544 = vmatprep.mubr.bf16.mxu1 %v2230_v62 }
  0xf9   :  { %1256 = vmatmul.mubr.bf16.gmra.mxu0 %v2232_v63 }
  0xfa   :  { %1545 = vmatmul.mubr.bf16.gmra.mxu1 %v2233_v0  ;;  %1263 = vmatprep.mubr.bf16.mxu0 %v2234_v1 }
  0xfb   :  { %1552 = vmatprep.mubr.bf16.mxu1 %v2236_v2 }
 0x101   :  { %v1073_v7 = vpop.f32.mrf.mxu0  ;;  %1264 = vmatmul.mubr.bf16.gmra.mxu0 %v2238_v3 }
 0x102   :  { %v1362_v8 = vpop.f32.mrf.mxu1  ;;  %1553 = vmatmul.mubr.bf16.gmra.mxu1 %v2239_v4  ;;  %1271 = vmatprep.mubr.bf16.mxu0 %v2240_v5 }
 0x103   :  { %v1363_v9 = vadd.f32 %v1362_v8, %v1073_v7  ;;  %v1075_v10 = vpop.f32.mrf.mxu0  ;;  %1560 = vmatprep.mubr.bf16.mxu1 %v2242_v6 }
 0x104   :  { %v1364_v11 = vpop.f32.mrf.mxu1 }
 0x105   :  { %1617 = vst [vmem:[%s3158_s2] sm:$0xff] %v1363_v9  ;;  %v1076_v12 = vpop.f32.mrf.mxu0  ;;  %v1750_v21 = vmul.f32 %v1363_v9, %v1363_v9  ;;  %v2261_v11 = vld [vmem:[%s3157_s0 + $0x388] ss:$16 sps:$4 sm:$0xff]  }
 0x106   :  { %v1365_v14 = vpop.f32.mrf.mxu1 }
 0x107   :  { %v1366_v17 = vadd.f32 %v1365_v14, %v1076_v12  ;;  %v1078_v18 = vpop.f32.mrf.mxu0  ;;  %v2266_v12 = vld [vmem:[%s3157_s0 + $0x3a4] ss:$16 sps:$4 sm:$0xff]  }
 0x108   :  { %v1367_v20 = vpop.f32.mrf.mxu1 }
 0x109   :  { %1618 = vst [vmem:[%s3158_s2 + $0x8] sm:$0xff] %v1366_v17  ;;  %v1681_v22 = vadd.f32 %v1366_v17, %v1363_v9  ;;  %v1751_v23 = vmul.f32 %v1366_v17, %v1366_v17  ;;  %v1081_v24 = vpop.f32.mrf.mxu0  ;;  %1272 = vmatmul.mubr.bf16.gmra.mxu0 %v2244_v13  ;;  %v2258_v9 = vld [vmem:[%s3157_s0 + $0x380] ss:$16 sps:$4 sm:$0xff]  }
 0x10a   :  { %v1370_v25 = vpop.f32.mrf.mxu1  ;;  %1561 = vmatmul.mubr.bf16.gmra.mxu1 %v2245_v15  ;;  %1279 = vmatprep.mubr.bf16.mxu0 %v2246_v16  ;;  %v2269_v16 = vld [vmem:[%s3157_s0 + $0x3ac] ss:$16 sps:$4 sm:$0xff]  }
 0x10b   :  { %v1814_v26 = vadd.f32 %v1751_v23, %v1750_v21  ;;  %v1371_v27 = vadd.f32 %v1370_v25, %v1081_v24  ;;  %v1083_v28 = vpop.f32.mrf.mxu0  ;;  %1568 = vmatprep.mubr.bf16.mxu1 %v2248_v19 }
 0x10c   :  { %v1372_v29 = vpop.f32.mrf.mxu1 }
 0x10d   :  { %1619 = vst [vmem:[%s3158_s2 + $0x10] sm:$0xff] %v1371_v27  ;;  %v1682_v30 = vadd.f32 %v1681_v22, %v1371_v27  ;;  %v1752_v31 = vmul.f32 %v1371_v27, %v1371_v27  ;;  %v1084_v32 = vpop.f32.mrf.mxu0  ;;  %v2264_v29 = vld [vmem:[%s3157_s0 + $0x3a0] ss:$16 sps:$4 sm:$0xff]  }
 0x10e   :  { %v1373_v34 = vpop.f32.mrf.mxu1 }
 0x10f   :  { %v1815_v37 = vadd.f32 %v1814_v26, %v1752_v31  ;;  %v1374_v38 = vadd.f32 %v1373_v34, %v1084_v32  ;;  %v1086_v39 = vpop.f32.mrf.mxu0  ;;  %v2267_v31 = vld [vmem:[%s3157_s0 + $0x3a8] ss:$16 sps:$4 sm:$0xff]   ;;  %v2272_v32 = vld [vmem:[%s3157_s0 + $0x3c4] ss:$16 sps:$4 sm:$0xff]  }
 0x110   :  { %v1375_v41 = vpop.f32.mrf.mxu1 }
 0x111   :  { %1620 = vst [vmem:[%s3158_s2 + $0x18] sm:$0xff] %v1374_v38  ;;  %v1683_v42 = vadd.f32 %v1682_v30, %v1374_v38  ;;  %v1753_v43 = vmul.f32 %v1374_v38, %v1374_v38  ;;  %v1089_v44 = vpop.f32.mrf.mxu0  ;;  %1280 = vmatmul.mubr.bf16.gmra.mxu0 %v2250_v33 }
 0x112   :  { %v1378_v45 = vpop.f32.mrf.mxu1  ;;  %1569 = vmatmul.mubr.bf16.gmra.mxu1 %v2251_v35  ;;  %1287 = vmatprep.mubr.bf16.mxu0 %v2252_v36  ;;  %v2275_v36 = vld [vmem:[%s3157_s0 + $0x3cc] ss:$16 sps:$4 sm:$0xff]  }
 0x113   :  { %v1816_v46 = vadd.f32 %v1815_v37, %v1753_v43  ;;  %v1379_v47 = vadd.f32 %v1378_v45, %v1089_v44  ;;  %v1091_v48 = vpop.f32.mrf.mxu0  ;;  %1576 = vmatprep.mubr.bf16.mxu1 %v2254_v40 }
 0x114   :  { %v1380_v49 = vpop.f32.mrf.mxu1 }
 0x115   :  { %1621 = vst [vmem:[%s3158_s2 + $0x20] sm:$0xff] %v1379_v47  ;;  %v1684_v50 = vadd.f32 %v1683_v42, %v1379_v47  ;;  %v1754_v51 = vmul.f32 %v1379_v47, %v1379_v47  ;;  %v1092_v52 = vpop.f32.mrf.mxu0  ;;  %v2270_v49 = vld [vmem:[%s3157_s0 + $0x3c0] ss:$16 sps:$4 sm:$0xff]  }
 0x116   :  { %v1381_v54 = vpop.f32.mrf.mxu1 }
 0x117   :  { %v1817_v57 = vadd.f32 %v1816_v46, %v1754_v51  ;;  %v1382_v58 = vadd.f32 %v1381_v54, %v1092_v52  ;;  %v1094_v59 = vpop.f32.mrf.mxu0  ;;  %v2273_v51 = vld [vmem:[%s3157_s0 + $0x3c8] ss:$16 sps:$4 sm:$0xff]   ;;  %v2278_v52 = vld [vmem:[%s3157_s0 + $0x3e4] ss:$16 sps:$4 sm:$0xff]  }
 0x118   :  { %v1383_v61 = vpop.f32.mrf.mxu1 }
 0x119   :  { %1622 = vst [vmem:[%s3158_s2 + $0x28] sm:$0xff] %v1382_v58  ;;  %v1685_v62 = vadd.f32 %v1684_v50, %v1382_v58  ;;  %v1755_v63 = vmul.f32 %v1382_v58, %v1382_v58  ;;  %v1097_v0 = vpop.f32.mrf.mxu0  ;;  %1288 = vmatmul.mubr.bf16.gmra.mxu0 %v2256_v53 }
 0x11a   :  { %v1386_v1 = vpop.f32.mrf.mxu1  ;;  %1577 = vmatmul.mubr.bf16.gmra.mxu1 %v2257_v55  ;;  %1295 = vmatprep.mubr.bf16.mxu0 %v2260_v56  ;;  %v2281_v56 = vld [vmem:[%s3157_s0 + $0x3ec] ss:$16 sps:$4 sm:$0xff]  }
 0x11b   :  { %v1818_v2 = vadd.f32 %v1817_v57, %v1755_v63  ;;  %v1387_v3 = vadd.f32 %v1386_v1, %v1097_v0  ;;  %v1099_v4 = vpop.f32.mrf.mxu0  ;;  %1584 = vmatprep.mubr.bf16.mxu1 %v2263_v60 }
 0x11c   :  { %v1388_v5 = vpop.f32.mrf.mxu1 }
 0x11d   :  { %1623 = vst [vmem:[%s3158_s2 + $0x30] sm:$0xff] %v1387_v3  ;;  %v1686_v6 = vadd.f32 %v1685_v62, %v1387_v3  ;;  %v1756_v7 = vmul.f32 %v1387_v3, %v1387_v3  ;;  %v1100_v8 = vpop.f32.mrf.mxu0  ;;  %v2276_v5 = vld [vmem:[%s3157_s0 + $0x3e0] ss:$16 sps:$4 sm:$0xff]  }
 0x11e   :  { %v1389_v10 = vpop.f32.mrf.mxu1 }
 0x11f   :  { %v1819_v13 = vadd.f32 %v1818_v2, %v1756_v7  ;;  %v1390_v14 = vadd.f32 %v1389_v10, %v1100_v8  ;;  %v1102_v15 = vpop.f32.mrf.mxu0  ;;  %v2279_v7 = vld [vmem:[%s3157_s0 + $0x3e8] ss:$16 sps:$4 sm:$0xff]  }
 0x120   :  { %v1391_v17 = vpop.f32.mrf.mxu1 }
 0x121   :  { %1624 = vst [vmem:[%s3158_s2 + $0x38] sm:$0xff] %v1390_v14  ;;  %v1687_v18 = vadd.f32 %v1686_v6, %v1390_v14  ;;  %v1757_v19 = vmul.f32 %v1390_v14, %v1390_v14  ;;  %v1105_v20 = vpop.f32.mrf.mxu0  ;;  %1296 = vmatmul.mubr.bf16.gmra.mxu0 %v2258_v9 }
 0x122   :  { %v1394_v21 = vpop.f32.mrf.mxu1  ;;  %1585 = vmatmul.mubr.bf16.gmra.mxu1 %v2261_v11  ;;  %1303 = vmatprep.mubr.bf16.mxu0 %v2266_v12 }
 0x123   :  { %v1820_v22 = vadd.f32 %v1819_v13, %v1757_v19  ;;  %v1395_v23 = vadd.f32 %v1394_v21, %v1105_v20  ;;  %v1107_v24 = vpop.f32.mrf.mxu0  ;;  %1592 = vmatprep.mubr.bf16.mxu1 %v2269_v16 }
 0x124   :  { %v1396_v25 = vpop.f32.mrf.mxu1 }
 0x125   :  { %1625 = vst [vmem:[%s3158_s2 + $0x40] sm:$0xff] %v1395_v23  ;;  %v1688_v26 = vadd.f32 %v1687_v18, %v1395_v23  ;;  %v1758_v27 = vmul.f32 %v1395_v23, %v1395_v23  ;;  %v1108_v28 = vpop.f32.mrf.mxu0 }
 0x126   :  { %v1397_v30 = vpop.f32.mrf.mxu1 }
 0x127   :  { %v1821_v33 = vadd.f32 %v1820_v22, %v1758_v27  ;;  %v1398_v34 = vadd.f32 %v1397_v30, %v1108_v28  ;;  %v1110_v35 = vpop.f32.mrf.mxu0 }
 0x128   :  { %v1399_v37 = vpop.f32.mrf.mxu1 }
 0x129   :  { %1626 = vst [vmem:[%s3158_s2 + $0x48] sm:$0xff] %v1398_v34  ;;  %v1689_v38 = vadd.f32 %v1688_v26, %v1398_v34  ;;  %v1759_v39 = vmul.f32 %v1398_v34, %v1398_v34  ;;  %v1113_v40 = vpop.f32.mrf.mxu0  ;;  %1304 = vmatmul.mubr.bf16.gmra.mxu0 %v2264_v29 }
 0x12a   :  { %v1402_v41 = vpop.f32.mrf.mxu1  ;;  %1593 = vmatmul.mubr.bf16.gmra.mxu1 %v2267_v31  ;;  %1311 = vmatprep.mubr.bf16.mxu0 %v2272_v32 }
 0x12b   :  { %v1822_v42 = vadd.f32 %v1821_v33, %v1759_v39  ;;  %v1403_v43 = vadd.f32 %v1402_v41, %v1113_v40  ;;  %v1115_v44 = vpop.f32.mrf.mxu0  ;;  %1600 = vmatprep.mubr.bf16.mxu1 %v2275_v36 }
 0x12c   :  { %v1404_v45 = vpop.f32.mrf.mxu1 }
 0x12d   :  { %1627 = vst [vmem:[%s3158_s2 + $0x50] sm:$0xff] %v1403_v43  ;;  %v1690_v46 = vadd.f32 %v1689_v38, %v1403_v43  ;;  %v1760_v47 = vmul.f32 %v1403_v43, %v1403_v43  ;;  %v1116_v48 = vpop.f32.mrf.mxu0 }
 0x12e   :  { %v1405_v50 = vpop.f32.mrf.mxu1 }
 0x12f   :  { %v1823_v53 = vadd.f32 %v1822_v42, %v1760_v47  ;;  %v1406_v54 = vadd.f32 %v1405_v50, %v1116_v48  ;;  %v1118_v55 = vpop.f32.mrf.mxu0 }
 0x130   :  { %v1407_v57 = vpop.f32.mrf.mxu1 }
 0x131   :  { %1628 = vst [vmem:[%s3158_s2 + $0x58] sm:$0xff] %v1406_v54  ;;  %v1691_v58 = vadd.f32 %v1690_v46, %v1406_v54  ;;  %v1761_v59 = vmul.f32 %v1406_v54, %v1406_v54  ;;  %v1121_v60 = vpop.f32.mrf.mxu0  ;;  %1312 = vmatmul.mubr.bf16.gmra.mxu0 %v2270_v49 }
 0x132   :  { %v1410_v61 = vpop.f32.mrf.mxu1  ;;  %1601 = vmatmul.mubr.bf16.gmra.mxu1 %v2273_v51  ;;  %1319 = vmatprep.mubr.bf16.mxu0 %v2278_v52 }
 0x133   :  { %v1824_v62 = vadd.f32 %v1823_v53, %v1761_v59  ;;  %v1411_v63 = vadd.f32 %v1410_v61, %v1121_v60  ;;  %v1123_v0 = vpop.f32.mrf.mxu0  ;;  %1608 = vmatprep.mubr.bf16.mxu1 %v2281_v56 }
 0x134   :  { %v1412_v1 = vpop.f32.mrf.mxu1 }
 0x135   :  { %1629 = vst [vmem:[%s3158_s2 + $0x60] sm:$0xff] %v1411_v63  ;;  %v1692_v2 = vadd.f32 %v1691_v58, %v1411_v63  ;;  %v1762_v3 = vmul.f32 %v1411_v63, %v1411_v63  ;;  %v1124_v4 = vpop.f32.mrf.mxu0 }
 0x136   :  { %v1413_v6 = vpop.f32.mrf.mxu1 }
 0x137   :  { %v1825_v8 = vadd.f32 %v1824_v62, %v1762_v3  ;;  %v1414_v9 = vadd.f32 %v1413_v6, %v1124_v4  ;;  %v1126_v10 = vpop.f32.mrf.mxu0 }
 0x138   :  { %v1415_v11 = vpop.f32.mrf.mxu1 }
 0x139   :  { %1630 = vst [vmem:[%s3158_s2 + $0x68] sm:$0xff] %v1414_v9  ;;  %v1693_v12 = vadd.f32 %v1692_v2, %v1414_v9  ;;  %v1763_v13 = vmul.f32 %v1414_v9, %v1414_v9  ;;  %v1129_v14 = vpop.f32.mrf.mxu0  ;;  %1320 = vmatmul.mubr.bf16.gmra.mxu0 %v2276_v5 }
 0x13a   :  { %v1418_v15 = vpop.f32.mrf.mxu1  ;;  %1609 = vmatmul.mubr.bf16.gmra.mxu1 %v2279_v7 }
 0x13b   :  { %v1826_v16 = vadd.f32 %v1825_v8, %v1763_v13  ;;  %v1419_v17 = vadd.f32 %v1418_v15, %v1129_v14  ;;  %v1131_v18 = vpop.f32.mrf.mxu0 }
 0x13c   :  { %v1420_v19 = vpop.f32.mrf.mxu1 }
 0x13d   :  { %1631 = vst [vmem:[%s3158_s2 + $0x70] sm:$0xff] %v1419_v17  ;;  %v1694_v20 = vadd.f32 %v1693_v12, %v1419_v17  ;;  %v1764_v21 = vmul.f32 %v1419_v17, %v1419_v17  ;;  %v1132_v22 = vpop.f32.mrf.mxu0 }
 0x13e   :  { %v1421_v23 = vpop.f32.mrf.mxu1 }
 0x13f   :  { %v1827_v24 = vadd.f32 %v1826_v16, %v1764_v21  ;;  %v1422_v25 = vadd.f32 %v1421_v23, %v1132_v22  ;;  %v1134_v26 = vpop.f32.mrf.mxu0 }
 0x140   :  { %v1423_v27 = vpop.f32.mrf.mxu1 }
 0x141   :  { %1632 = vst [vmem:[%s3158_s2 + $0x78] sm:$0xff] %v1422_v25  ;;  %v1695_v28 = vadd.f32 %v1694_v20, %v1422_v25  ;;  %v1765_v29 = vmul.f32 %v1422_v25, %v1422_v25  ;;  %v1137_v30 = vpop.f32.mrf.mxu0 }
 0x142   :  { %v1426_v31 = vpop.f32.mrf.mxu1 }
 0x143   :  { %v1828_v32 = vadd.f32 %v1827_v24, %v1765_v29  ;;  %v1427_v33 = vadd.f32 %v1426_v31, %v1137_v30  ;;  %v1139_v34 = vpop.f32.mrf.mxu0 }
 0x144   :  { %v1428_v35 = vpop.f32.mrf.mxu1 }
 0x145   :  { %1633 = vst [vmem:[%s3158_s2 + $0x80] sm:$0xff] %v1427_v33  ;;  %v1696_v36 = vadd.f32 %v1695_v28, %v1427_v33  ;;  %v1766_v37 = vmul.f32 %v1427_v33, %v1427_v33  ;;  %v1140_v38 = vpop.f32.mrf.mxu0 }
 0x146   :  { %v1429_v39 = vpop.f32.mrf.mxu1 }
 0x147   :  { %v1829_v40 = vadd.f32 %v1828_v32, %v1766_v37  ;;  %v1430_v41 = vadd.f32 %v1429_v39, %v1140_v38  ;;  %v1142_v42 = vpop.f32.mrf.mxu0 }
 0x148   :  { %v1431_v43 = vpop.f32.mrf.mxu1 }
 0x149   :  { %1634 = vst [vmem:[%s3158_s2 + $0x88] sm:$0xff] %v1430_v41  ;;  %v1697_v44 = vadd.f32 %v1696_v36, %v1430_v41  ;;  %v1767_v45 = vmul.f32 %v1430_v41, %v1430_v41  ;;  %v1145_v46 = vpop.f32.mrf.mxu0 }
 0x14a   :  { %v1434_v47 = vpop.f32.mrf.mxu1 }
 0x14b   :  { %v1830_v48 = vadd.f32 %v1829_v40, %v1767_v45  ;;  %v1435_v49 = vadd.f32 %v1434_v47, %v1145_v46  ;;  %v1147_v50 = vpop.f32.mrf.mxu0 }
 0x14c   :  { %v1436_v51 = vpop.f32.mrf.mxu1 }
 0x14d   :  { %1635 = vst [vmem:[%s3158_s2 + $0x90] sm:$0xff] %v1435_v49  ;;  %v1698_v52 = vadd.f32 %v1697_v44, %v1435_v49  ;;  %v1768_v53 = vmul.f32 %v1435_v49, %v1435_v49  ;;  %v1148_v54 = vpop.f32.mrf.mxu0 }
 0x14e   :  { %v1437_v55 = vpop.f32.mrf.mxu1 }
 0x14f   :  { %v1831_v56 = vadd.f32 %v1830_v48, %v1768_v53  ;;  %v1438_v57 = vadd.f32 %v1437_v55, %v1148_v54  ;;  %v1150_v58 = vpop.f32.mrf.mxu0 }
 0x150   :  { %v1439_v59 = vpop.f32.mrf.mxu1 }
 0x151   :  { %1636 = vst [vmem:[%s3158_s2 + $0x98] sm:$0xff] %v1438_v57  ;;  %v1699_v60 = vadd.f32 %v1698_v52, %v1438_v57  ;;  %v1769_v61 = vmul.f32 %v1438_v57, %v1438_v57  ;;  %v1153_v62 = vpop.f32.mrf.mxu0 }
 0x152   :  { %v1442_v63 = vpop.f32.mrf.mxu1 }
 0x153   :  { %v1832_v0 = vadd.f32 %v1831_v56, %v1769_v61  ;;  %v1443_v1 = vadd.f32 %v1442_v63, %v1153_v62  ;;  %v1155_v2 = vpop.f32.mrf.mxu0 }
 0x154   :  { %v1444_v3 = vpop.f32.mrf.mxu1 }
 0x155   :  { %1637 = vst [vmem:[%s3158_s2 + $0xa0] sm:$0xff] %v1443_v1  ;;  %v1700_v4 = vadd.f32 %v1699_v60, %v1443_v1  ;;  %v1770_v5 = vmul.f32 %v1443_v1, %v1443_v1  ;;  %v1156_v6 = vpop.f32.mrf.mxu0 }
 0x156   :  { %v1445_v7 = vpop.f32.mrf.mxu1 }
 0x157   :  { %v1833_v8 = vadd.f32 %v1832_v0, %v1770_v5  ;;  %v1446_v9 = vadd.f32 %v1445_v7, %v1156_v6  ;;  %v1158_v10 = vpop.f32.mrf.mxu0 }
 0x158   :  { %v1447_v11 = vpop.f32.mrf.mxu1 }
 0x159   :  { %1638 = vst [vmem:[%s3158_s2 + $0xa8] sm:$0xff] %v1446_v9  ;;  %v1701_v12 = vadd.f32 %v1700_v4, %v1446_v9  ;;  %v1771_v13 = vmul.f32 %v1446_v9, %v1446_v9  ;;  %v1161_v14 = vpop.f32.mrf.mxu0 }
 0x15a   :  { %v1450_v15 = vpop.f32.mrf.mxu1 }
 0x15b   :  { %v1834_v16 = vadd.f32 %v1833_v8, %v1771_v13  ;;  %v1451_v17 = vadd.f32 %v1450_v15, %v1161_v14  ;;  %v1163_v18 = vpop.f32.mrf.mxu0 }
 0x15c   :  { %v1452_v19 = vpop.f32.mrf.mxu1 }
 0x15d   :  { %1639 = vst [vmem:[%s3158_s2 + $0xb0] sm:$0xff] %v1451_v17  ;;  %v1702_v20 = vadd.f32 %v1701_v12, %v1451_v17  ;;  %v1772_v21 = vmul.f32 %v1451_v17, %v1451_v17  ;;  %v1164_v22 = vpop.f32.mrf.mxu0 }
 0x15e   :  { %v1453_v23 = vpop.f32.mrf.mxu1 }
 0x15f   :  { %v1835_v24 = vadd.f32 %v1834_v16, %v1772_v21  ;;  %v1454_v25 = vadd.f32 %v1453_v23, %v1164_v22  ;;  %v1166_v26 = vpop.f32.mrf.mxu0 }
 0x160   :  { %v1455_v27 = vpop.f32.mrf.mxu1 }
 0x161   :  { %1640 = vst [vmem:[%s3158_s2 + $0xb8] sm:$0xff] %v1454_v25  ;;  %v1703_v28 = vadd.f32 %v1702_v20, %v1454_v25  ;;  %v1773_v29 = vmul.f32 %v1454_v25, %v1454_v25  ;;  %v1169_v30 = vpop.f32.mrf.mxu0 }
 0x162   :  { %v1458_v31 = vpop.f32.mrf.mxu1 }
 0x163   :  { %v1836_v32 = vadd.f32 %v1835_v24, %v1773_v29  ;;  %v1459_v33 = vadd.f32 %v1458_v31, %v1169_v30  ;;  %v1171_v34 = vpop.f32.mrf.mxu0 }
 0x164   :  { %v1460_v35 = vpop.f32.mrf.mxu1 }
 0x165   :  { %1641 = vst [vmem:[%s3158_s2 + $0xc0] sm:$0xff] %v1459_v33  ;;  %v1704_v36 = vadd.f32 %v1703_v28, %v1459_v33  ;;  %v1774_v37 = vmul.f32 %v1459_v33, %v1459_v33  ;;  %v1172_v38 = vpop.f32.mrf.mxu0 }
 0x166   :  { %v1461_v39 = vpop.f32.mrf.mxu1 }
 0x167   :  { %v1837_v40 = vadd.f32 %v1836_v32, %v1774_v37  ;;  %v1462_v41 = vadd.f32 %v1461_v39, %v1172_v38  ;;  %v1174_v42 = vpop.f32.mrf.mxu0 }
 0x168   :  { %v1463_v43 = vpop.f32.mrf.mxu1 }
 0x169   :  { %1642 = vst [vmem:[%s3158_s2 + $0xc8] sm:$0xff] %v1462_v41  ;;  %v1705_v44 = vadd.f32 %v1704_v36, %v1462_v41  ;;  %v1775_v45 = vmul.f32 %v1462_v41, %v1462_v41  ;;  %v1177_v46 = vpop.f32.mrf.mxu0 }
 0x16a   :  { %v1466_v47 = vpop.f32.mrf.mxu1 }
 0x16b   :  { %v1838_v48 = vadd.f32 %v1837_v40, %v1775_v45  ;;  %v1467_v49 = vadd.f32 %v1466_v47, %v1177_v46  ;;  %v1179_v50 = vpop.f32.mrf.mxu0 }
 0x16c   :  { %v1468_v51 = vpop.f32.mrf.mxu1 }
 0x16d   :  { %1643 = vst [vmem:[%s3158_s2 + $0xd0] sm:$0xff] %v1467_v49  ;;  %v1706_v52 = vadd.f32 %v1705_v44, %v1467_v49  ;;  %v1776_v53 = vmul.f32 %v1467_v49, %v1467_v49  ;;  %v1180_v54 = vpop.f32.mrf.mxu0 }
 0x16e   :  { %v1469_v55 = vpop.f32.mrf.mxu1 }
 0x16f   :  { %v1839_v56 = vadd.f32 %v1838_v48, %v1776_v53  ;;  %v1470_v57 = vadd.f32 %v1469_v55, %v1180_v54  ;;  %v1182_v58 = vpop.f32.mrf.mxu0 }
 0x170   :  { %v1471_v59 = vpop.f32.mrf.mxu1 }
 0x171   :  { %1644 = vst [vmem:[%s3158_s2 + $0xd8] sm:$0xff] %v1470_v57  ;;  %v1707_v60 = vadd.f32 %v1706_v52, %v1470_v57  ;;  %v1777_v61 = vmul.f32 %v1470_v57, %v1470_v57  ;;  %v1185_v62 = vpop.f32.mrf.mxu0 }
 0x172   :  { %v1474_v63 = vpop.f32.mrf.mxu1 }
 0x173   :  { %v1840_v0 = vadd.f32 %v1839_v56, %v1777_v61  ;;  %v1475_v1 = vadd.f32 %v1474_v63, %v1185_v62  ;;  %v1187_v2 = vpop.f32.mrf.mxu0 }
 0x174   :  { %v1476_v3 = vpop.f32.mrf.mxu1 }
 0x175   :  { %1645 = vst [vmem:[%s3158_s2 + $0xe0] sm:$0xff] %v1475_v1  ;;  %v1708_v4 = vadd.f32 %v1707_v60, %v1475_v1  ;;  %v1778_v5 = vmul.f32 %v1475_v1, %v1475_v1  ;;  %v1188_v6 = vpop.f32.mrf.mxu0 }
 0x176   :  { %v1477_v7 = vpop.f32.mrf.mxu1 }
 0x177   :  { %v1841_v8 = vadd.f32 %v1840_v0, %v1778_v5  ;;  %v1478_v9 = vadd.f32 %v1477_v7, %v1188_v6  ;;  %v1190_v10 = vpop.f32.mrf.mxu0 }
 0x178   :  { %v1479_v11 = vpop.f32.mrf.mxu1 }
 0x179   :  { %1646 = vst [vmem:[%s3158_s2 + $0xe8] sm:$0xff] %v1478_v9  ;;  %v1709_v12 = vadd.f32 %v1708_v4, %v1478_v9  ;;  %v1779_v13 = vmul.f32 %v1478_v9, %v1478_v9  ;;  %v1193_v14 = vpop.f32.mrf.mxu0 }
 0x17a   :  { %v1482_v15 = vpop.f32.mrf.mxu1 }
 0x17b   :  { %v1842_v16 = vadd.f32 %v1841_v8, %v1779_v13  ;;  %v1483_v17 = vadd.f32 %v1482_v15, %v1193_v14  ;;  %v1195_v18 = vpop.f32.mrf.mxu0 }
 0x17c   :  { %v1484_v19 = vpop.f32.mrf.mxu1 }
 0x17d   :  { %1647 = vst [vmem:[%s3158_s2 + $0xf0] sm:$0xff] %v1483_v17  ;;  %v1710_v20 = vadd.f32 %v1709_v12, %v1483_v17  ;;  %v1780_v21 = vmul.f32 %v1483_v17, %v1483_v17  ;;  %v1196_v22 = vpop.f32.mrf.mxu0 }
 0x17e   :  { %v1485_v23 = vpop.f32.mrf.mxu1 }
 0x17f   :  { %v1843_v24 = vadd.f32 %v1842_v16, %v1780_v21  ;;  %v1486_v25 = vadd.f32 %v1485_v23, %v1196_v22  ;;  %v1198_v26 = vpop.f32.mrf.mxu0 }
 0x180   :  { %v1487_v27 = vpop.f32.mrf.mxu1 }
 0x181   :  { %1648 = vst [vmem:[%s3158_s2 + $0xf8] sm:$0xff] %v1486_v25  ;;  %v2916_v28 = vadd.f32 %v1710_v20, %v1486_v25  ;;  %v1781_v29 = vmul.f32 %v1486_v25, %v1486_v25  ;;  %v1201_v30 = vpop.f32.mrf.mxu0 }
 0x182   :  { %v1490_v31 = vpop.f32.mrf.mxu1 }
 0x183   :  { %v2918_v32 = vadd.f32 %v1843_v24, %v1781_v29  ;;  %v2920_v33 = vadd.f32 %v1490_v31, %v1201_v30  ;;  %v1203_v34 = vpop.f32.mrf.mxu0 }
 0x184   :  { %v1492_v35 = vpop.f32.mrf.mxu1 }
 0x185   :  { %1649 = vst [vmem:[%s3158_s2 + $0x100] sm:$0xff] %v2920_v33  ;;  %v1204_v36 = vpop.f32.mrf.mxu0 }
 0x186   :  { %v1493_v37 = vpop.f32.mrf.mxu1 }
 0x187   :  { %v2926_v38 = vadd.f32 %v1493_v37, %v1204_v36  ;;  %v1206_v39 = vpop.f32.mrf.mxu0 }
 0x188   :  { %v1495_v40 = vpop.f32.mrf.mxu1 }
 0x189   :  { %1650 = vst [vmem:[%s3158_s2 + $0x108] sm:$0xff] %v2926_v38  ;;  %v1209_v41 = vpop.f32.mrf.mxu0 }
 0x18a   :  { %v1498_v42 = vpop.f32.mrf.mxu1 }
 0x18b   :  { %v2932_v43 = vadd.f32 %v1498_v42, %v1209_v41  ;;  %v1211_v44 = vpop.f32.mrf.mxu0 }
 0x18c   :  { %v1500_v45 = vpop.f32.mrf.mxu1 }
 0x18d   :  { %1651 = vst [vmem:[%s3158_s2 + $0x110] sm:$0xff] %v2932_v43  ;;  %v1212_v46 = vpop.f32.mrf.mxu0 }
 0x18e   :  { %v1501_v47 = vpop.f32.mrf.mxu1 }
 0x18f   :  { %v2938_v48 = vadd.f32 %v1501_v47, %v1212_v46  ;;  %v1214_v49 = vpop.f32.mrf.mxu0 }
 0x190   :  { %v1503_v50 = vpop.f32.mrf.mxu1 }
 0x191   :  { %1652 = vst [vmem:[%s3158_s2 + $0x118] sm:$0xff] %v2938_v48  ;;  %v1217_v51 = vpop.f32.mrf.mxu0 }
 0x192   :  { %v1506_v52 = vpop.f32.mrf.mxu1 }
 0x193   :  { %v2944_v53 = vadd.f32 %v1506_v52, %v1217_v51  ;;  %v1219_v54 = vpop.f32.mrf.mxu0 }
 0x194   :  { %v1508_v55 = vpop.f32.mrf.mxu1  ;;  %v1782_v54 = vmul.f32 %v2920_v33, %v2920_v33 }
 0x195   :  { %1653 = vst [vmem:[%s3158_s2 + $0x120] sm:$0xff] %v2944_v53  ;;  %v1220_v56 = vpop.f32.mrf.mxu0 }
 0x196   :  { %v1509_v57 = vpop.f32.mrf.mxu1 }
 0x197   :  { %v2950_v58 = vadd.f32 %v1509_v57, %v1220_v56  ;;  %v1222_v59 = vpop.f32.mrf.mxu0  ;;  %v1712_v57 = vadd.f32 %v2916_v28, %v2920_v33 }
 0x198   :  { %v1511_v60 = vpop.f32.mrf.mxu1  ;;  %v1783_v59 = vmul.f32 %v2926_v38, %v2926_v38 }
 0x199   :  { %1654 = vst [vmem:[%s3158_s2 + $0x128] sm:$0xff] %v2950_v58  ;;  %v1225_v61 = vpop.f32.mrf.mxu0 }
 0x19a   :  { %v1514_v62 = vpop.f32.mrf.mxu1 }
 0x19b   :  { %v2956_v63 = vadd.f32 %v1514_v62, %v1225_v61  ;;  %v1227_v0 = vpop.f32.mrf.mxu0 }
 0x19c   :  { %v1516_v1 = vpop.f32.mrf.mxu1  ;;  %v1845_v0 = vadd.f32 %v2918_v32, %v1782_v54 }
 0x19d   :  { %1655 = vst [vmem:[%s3158_s2 + $0x130] sm:$0xff] %v2956_v63  ;;  %v1228_v2 = vpop.f32.mrf.mxu0  ;;  %v1713_v1 = vadd.f32 %v1712_v57, %v2926_v38 }
 0x19e   :  { %v1517_v3 = vpop.f32.mrf.mxu1 }
 0x19f   :  { %v2962_v4 = vadd.f32 %v1517_v3, %v1228_v2  ;;  %v1230_v5 = vpop.f32.mrf.mxu0  ;;  %v1784_v2 = vmul.f32 %v2932_v43, %v2932_v43  ;;  %v1846_v3 = vadd.f32 %v1845_v0, %v1783_v59 }
 0x1a0   :  { %v1519_v6 = vpop.f32.mrf.mxu1  ;;  %v1714_v5 = vadd.f32 %v1713_v1, %v2932_v43 }
 0x1a1   :  { %1656 = vst [vmem:[%s3158_s2 + $0x138] sm:$0xff] %v2962_v4  ;;  %v1233_v7 = vpop.f32.mrf.mxu0  ;;  %v1785_v6 = vmul.f32 %v2938_v48, %v2938_v48 }
 0x1a2   :  { %v1522_v8 = vpop.f32.mrf.mxu1 }
 0x1a3   :  { %v2968_v9 = vadd.f32 %v1522_v8, %v1233_v7  ;;  %v1235_v10 = vpop.f32.mrf.mxu0  ;;  %v1847_v8 = vadd.f32 %v1846_v3, %v1784_v2 }
 0x1a4   :  { %v1524_v11 = vpop.f32.mrf.mxu1  ;;  %v1715_v10 = vadd.f32 %v1714_v5, %v2938_v48 }
 0x1a5   :  { %1657 = vst [vmem:[%s3158_s2 + $0x140] sm:$0xff] %v2968_v9  ;;  %v1236_v12 = vpop.f32.mrf.mxu0  ;;  %v1786_v11 = vmul.f32 %v2944_v53, %v2944_v53 }
 0x1a6   :  { %v1525_v13 = vpop.f32.mrf.mxu1 }
 0x1a7   :  { %v2974_v14 = vadd.f32 %v1525_v13, %v1236_v12  ;;  %v1238_v15 = vpop.f32.mrf.mxu0  ;;  %v1848_v13 = vadd.f32 %v1847_v8, %v1785_v6 }
 0x1a8   :  { %v1527_v16 = vpop.f32.mrf.mxu1  ;;  %v1716_v15 = vadd.f32 %v1715_v10, %v2944_v53 }
 0x1a9   :  { %1658 = vst [vmem:[%s3158_s2 + $0x148] sm:$0xff] %v2974_v14  ;;  %v1241_v17 = vpop.f32.mrf.mxu0  ;;  %v1787_v16 = vmul.f32 %v2950_v58, %v2950_v58 }
 0x1aa   :  { %v1530_v18 = vpop.f32.mrf.mxu1 }
 0x1ab   :  { %v2980_v19 = vadd.f32 %v1530_v18, %v1241_v17  ;;  %v1243_v20 = vpop.f32.mrf.mxu0 }
 0x1ac   :  { %v1532_v21 = vpop.f32.mrf.mxu1  ;;  %v1849_v20 = vadd.f32 %v1848_v13, %v1786_v11 }
 0x1ad   :  { %1659 = vst [vmem:[%s3158_s2 + $0x150] sm:$0xff] %v2980_v19  ;;  %v1244_v22 = vpop.f32.mrf.mxu0  ;;  %v1717_v21 = vadd.f32 %v1716_v15, %v2950_v58 }
 0x1ae   :  { %v1533_v23 = vpop.f32.mrf.mxu1 }
 0x1af   :  { %v2986_v24 = vadd.f32 %v1533_v23, %v1244_v22  ;;  %v1246_v25 = vpop.f32.mrf.mxu0  ;;  %v1788_v22 = vmul.f32 %v2956_v63, %v2956_v63 }
 0x1b0   :  { %v1535_v26 = vpop.f32.mrf.mxu1  ;;  %v1850_v25 = vadd.f32 %v1849_v20, %v1787_v16 }
 0x1b1   :  { %1660 = vst [vmem:[%s3158_s2 + $0x158] sm:$0xff] %v2986_v24  ;;  %v1249_v27 = vpop.f32.mrf.mxu0  ;;  %v1718_v26 = vadd.f32 %v1717_v21, %v2956_v63 }
 0x1b2   :  { %v1538_v29 = vpop.f32.mrf.mxu1 }
 0x1b3   :  { %v2992_v30 = vadd.f32 %v1538_v29, %v1249_v27  ;;  %v1251_v31 = vpop.f32.mrf.mxu0  ;;  %v1789_v27 = vmul.f32 %v2962_v4, %v2962_v4 }
 0x1b4   :  { %v1540_v34 = vpop.f32.mrf.mxu1 }
 0x1b5   :  { %1661 = vst [vmem:[%s3158_s2 + $0x160] sm:$0xff] %v2992_v30  ;;  %v1252_v35 = vpop.f32.mrf.mxu0  ;;  %v1851_v34 = vadd.f32 %v1850_v25, %v1788_v22  ;;  %v1794_v0 = vmul.f32 %v2992_v30, %v2992_v30 }
 0x1b6   :  { %v1541_v36 = vpop.f32.mrf.mxu1 }
 0x1b7   :  { %v2998_v37 = vadd.f32 %v1541_v36, %v1252_v35  ;;  %v1254_v39 = vpop.f32.mrf.mxu0  ;;  %v1719_v35 = vadd.f32 %v1718_v26, %v2962_v4  ;;  %v1790_v36 = vmul.f32 %v2968_v9, %v2968_v9 }
 0x1b8   :  { %v1543_v40 = vpop.f32.mrf.mxu1 }
 0x1b9   :  { %1662 = vst [vmem:[%s3158_s2 + $0x168] sm:$0xff] %v2998_v37  ;;  %v1257_v41 = vpop.f32.mrf.mxu0  ;;  %v1852_v40 = vadd.f32 %v1851_v34, %v1789_v27 }
 0x1ba   :  { %v1546_v42 = vpop.f32.mrf.mxu1 }
 0x1bb   :  { %v3004_v44 = vadd.f32 %v1546_v42, %v1257_v41  ;;  %v1259_v45 = vpop.f32.mrf.mxu0  ;;  %v1720_v41 = vadd.f32 %v1719_v35, %v2968_v9  ;;  %v1791_v42 = vmul.f32 %v2974_v14, %v2974_v14 }
 0x1bc   :  { %v1548_v46 = vpop.f32.mrf.mxu1 }
 0x1bd   :  { %1663 = vst [vmem:[%s3158_s2 + $0x170] sm:$0xff] %v3004_v44  ;;  %v1260_v47 = vpop.f32.mrf.mxu0 }
 0x1be   :  { %v1549_v49 = vpop.f32.mrf.mxu1 }
 0x1bf   :  { %v3010_v50 = vadd.f32 %v1549_v49, %v1260_v47  ;;  %v1262_v51 = vpop.f32.mrf.mxu0  ;;  %v1853_v47 = vadd.f32 %v1852_v40, %v1790_v36  ;;  %v1721_v49 = vadd.f32 %v1720_v41, %v2974_v14 }
 0x1c0   :  { %v1551_v52 = vpop.f32.mrf.mxu1  ;;  %v1792_v51 = vmul.f32 %v2980_v19, %v2980_v19 }
 0x1c1   :  { %1664 = vst [vmem:[%s3158_s2 + $0x178] sm:$0xff] %v3010_v50  ;;  %v1265_v55 = vpop.f32.mrf.mxu0  ;;  %v1854_v54 = vadd.f32 %v1853_v47, %v1791_v42 }
 0x1c2   :  { %v1554_v56 = vpop.f32.mrf.mxu1 }
 0x1c3   :  { %v3022_v60 = vadd.f32 %v1554_v56, %v1265_v55  ;;  %v1267_v61 = vpop.f32.mrf.mxu0  ;;  %v1722_v55 = vadd.f32 %v1721_v49, %v2980_v19  ;;  %v1793_v56 = vmul.f32 %v2986_v24, %v2986_v24 }
 0x1c4   :  { %v1556_v62 = vpop.f32.mrf.mxu1  ;;  %v1855_v61 = vadd.f32 %v1854_v54, %v1792_v51 }
 0x1c5   :  { %1665 = vst [vmem:[%s3158_s2 + $0x180] sm:$0xff] %v3022_v60  ;;  %v1268_v28 = vpop.f32.mrf.mxu0  ;;  %v1723_v62 = vadd.f32 %v1722_v55, %v2986_v24 }
 0x1c6   :  { %v1557_v33 = vpop.f32.mrf.mxu1  ;;  %v1856_v2 = vadd.f32 %v1855_v61, %v1793_v56 }
 0x1c7   :  { %v3035_v7 = vadd.f32 %v1557_v33, %v1268_v28  ;;  %v1270_v32 = vpop.f32.mrf.mxu0  ;;  %v1724_v28 = vadd.f32 %v1723_v62, %v2992_v30  ;;  %v1795_v33 = vmul.f32 %v2998_v37, %v2998_v37 }
 0x1c8   :  { %v1559_v38 = vpop.f32.mrf.mxu1  ;;  %v1857_v24 = vadd.f32 %v1856_v2, %v1794_v0 }
 0x1c9   :  { %1666 = vst [vmem:[%s3158_s2 + $0x188] sm:$0xff] %v3035_v7  ;;  %v1273_v12 = vpop.f32.mrf.mxu0  ;;  %v1725_v32 = vadd.f32 %v1724_v28, %v2998_v37  ;;  %v1796_v38 = vmul.f32 %v3004_v44, %v3004_v44  ;;  %v1799_v22 = vmul.f32 %v3035_v7, %v3035_v7 }
 0x1ca   :  { %v1562_v43 = vpop.f32.mrf.mxu1  ;;  %v1858_v11 = vadd.f32 %v1857_v24, %v1795_v33 }
 0x1cb   :  { %v3047_v17 = vadd.f32 %v1562_v43, %v1273_v12  ;;  %v1275_v18 = vpop.f32.mrf.mxu0  ;;  %v1726_v30 = vadd.f32 %v1725_v32, %v3004_v44  ;;  %v1797_v12 = vmul.f32 %v3010_v50, %v3010_v50 }
 0x1cc   :  { %v1564_v48 = vpop.f32.mrf.mxu1  ;;  %v1859_v16 = vadd.f32 %v1858_v11, %v1796_v38  ;;  %v1798_v18 = vmul.f32 %v3022_v60, %v3022_v60 }
 0x1cd   :  { %1667 = vst [vmem:[%s3158_s2 + $0x190] sm:$0xff] %v3047_v17  ;;  %v1276_v23 = vpop.f32.mrf.mxu0  ;;  %v1727_v37 = vadd.f32 %v1726_v30, %v3010_v50  ;;  %v1800_v27 = vmul.f32 %v3047_v17, %v3047_v17 }
 0x1ce   :  { %v1565_v53 = vpop.f32.mrf.mxu1  ;;  %v1860_v21 = vadd.f32 %v1859_v16, %v1797_v12 }
 0x1cf   :  { %v3059_v29 = vadd.f32 %v1565_v53, %v1276_v23  ;;  %v1278_v31 = vpop.f32.mrf.mxu0  ;;  %v1728_v44 = vadd.f32 %v1727_v37, %v3022_v60 }
 0x1d0   :  { %v1567_v58 = vpop.f32.mrf.mxu1  ;;  %v1861_v26 = vadd.f32 %v1860_v21, %v1798_v18 }
 0x1d1   :  { %1668 = vst [vmem:[%s3158_s2 + $0x198] sm:$0xff] %v3059_v29  ;;  %v1281_v39 = vpop.f32.mrf.mxu0  ;;  %v1729_v50 = vadd.f32 %v1728_v44, %v3035_v7  ;;  %v1801_v35 = vmul.f32 %v3059_v29, %v3059_v29 }
 0x1d2   :  { %v1570_v63 = vpop.f32.mrf.mxu1  ;;  %v1862_v34 = vadd.f32 %v1861_v26, %v1799_v22 }
 0x1d3   :  { %v3071_v45 = vadd.f32 %v1570_v63, %v1281_v39  ;;  %v1283_v46 = vpop.f32.mrf.mxu0  ;;  %v1730_v60 = vadd.f32 %v1729_v50, %v3047_v17 }
 0x1d4   :  { %v1572_v4 = vpop.f32.mrf.mxu1  ;;  %v1863_v40 = vadd.f32 %v1862_v34, %v1800_v27 }
 0x1d5   :  { %1669 = vst [vmem:[%s3158_s2 + $0x1a0] sm:$0xff] %v3071_v45  ;;  %v1284_v52 = vpop.f32.mrf.mxu0  ;;  %v1731_v7 = vadd.f32 %v1730_v60, %v3059_v29  ;;  %v1802_v41 = vmul.f32 %v3071_v45, %v3071_v45 }
 0x1d6   :  { %v1573_v9 = vpop.f32.mrf.mxu1  ;;  %v1864_v4 = vadd.f32 %v1863_v40, %v1801_v35 }
 0x1d7   :  { %v3083_v57 = vadd.f32 %v1573_v9, %v1284_v52  ;;  %v1286_v59 = vpop.f32.mrf.mxu0  ;;  %v1732_v17 = vadd.f32 %v1731_v7, %v3071_v45 }
 0x1d8   :  { %v1575_v14 = vpop.f32.mrf.mxu1  ;;  %v1865_v9 = vadd.f32 %v1864_v4, %v1802_v41 }
 0x1d9   :  { %1670 = vst [vmem:[%s3158_s2 + $0x1a8] sm:$0xff] %v3083_v57  ;;  %v1289_v1 = vpop.f32.mrf.mxu0  ;;  %v1803_v47 = vmul.f32 %v3083_v57, %v3083_v57  ;;  %v1733_v29 = vadd.f32 %v1732_v17, %v3083_v57 }
 0x1da   :  { %v1578_v19 = vpop.f32.mrf.mxu1 }
 0x1db   :  { %v1579_v3 = vadd.f32 %v1578_v19, %v1289_v1  ;;  %v1291_v5 = vpop.f32.mrf.mxu0  ;;  %v1866_v59 = vadd.f32 %v1865_v9, %v1803_v47 }
 0x1dc   :  { %v1580_v6 = vpop.f32.mrf.mxu1 }
 0x1dd   :  { %1671 = vst [vmem:[%s3158_s2 + $0x1b0] sm:$0xff] %v1579_v3  ;;  %v1292_v8 = vpop.f32.mrf.mxu0  ;;  %v1804_v54 = vmul.f32 %v1579_v3, %v1579_v3  ;;  %v1734_v14 = vadd.f32 %v1733_v29, %v1579_v3 }
 0x1de   :  { %v1581_v10 = vpop.f32.mrf.mxu1 }
 0x1df   :  { %v1582_v43 = vadd.f32 %v1581_v10, %v1292_v8  ;;  %v1294_v13 = vpop.f32.mrf.mxu0  ;;  %v1867_v1 = vadd.f32 %v1866_v59, %v1804_v54 }
 0x1e0   :  { %v1583_v15 = vpop.f32.mrf.mxu1 }
 0x1e1   :  { %1672 = vst [vmem:[%s3158_s2 + $0x1b8] sm:$0xff] %v1582_v43  ;;  %v1297_v48 = vpop.f32.mrf.mxu0  ;;  %v1805_v61 = vmul.f32 %v1582_v43, %v1582_v43  ;;  %v1735_v19 = vadd.f32 %v1734_v14, %v1582_v43 }
 0x1e2   :  { %v1586_v20 = vpop.f32.mrf.mxu1 }
 0x1e3   :  { %v1587_v23 = vadd.f32 %v1586_v20, %v1297_v48  ;;  %v1299_v53 = vpop.f32.mrf.mxu0  ;;  %v1868_v33 = vadd.f32 %v1867_v1, %v1805_v61 }
 0x1e4   :  { %v1588_v25 = vpop.f32.mrf.mxu1 }
 0x1e5   :  { %1673 = vst [vmem:[%s3158_s2 + $0x1c0] sm:$0xff] %v1587_v23  ;;  %v1300_v31 = vpop.f32.mrf.mxu0  ;;  %v1806_v2 = vmul.f32 %v1587_v23, %v1587_v23  ;;  %v1736_v5 = vadd.f32 %v1735_v19, %v1587_v23 }
 0x1e6   :  { %v1589_v58 = vpop.f32.mrf.mxu1 }
 0x1e7   :  { %v1590_v36 = vadd.f32 %v1589_v58, %v1300_v31  ;;  %v1302_v39 = vpop.f32.mrf.mxu0  ;;  %v1869_v3 = vadd.f32 %v1868_v33, %v1806_v2 }
 0x1e8   :  { %v1591_v63 = vpop.f32.mrf.mxu1 }
 0x1e9   :  { %1674 = vst [vmem:[%s3158_s2 + $0x1c8] sm:$0xff] %v1590_v36  ;;  %v1305_v42 = vpop.f32.mrf.mxu0  ;;  %v1807_v6 = vmul.f32 %v1590_v36, %v1590_v36  ;;  %v1737_v8 = vadd.f32 %v1736_v5, %v1590_v36 }
 0x1ea   :  { %v1594_v46 = vpop.f32.mrf.mxu1 }
 0x1eb   :  { %v1595_v49 = vadd.f32 %v1594_v46, %v1305_v42  ;;  %v1307_v51 = vpop.f32.mrf.mxu0  ;;  %v1870_v12 = vadd.f32 %v1869_v3, %v1807_v6 }
 0x1ec   :  { %v1596_v52 = vpop.f32.mrf.mxu1 }
 0x1ed   :  { %1675 = vst [vmem:[%s3158_s2 + $0x1d0] sm:$0xff] %v1595_v49  ;;  %v1308_v55 = vpop.f32.mrf.mxu0  ;;  %v1808_v10 = vmul.f32 %v1595_v49, %v1595_v49  ;;  %v1738_v43 = vadd.f32 %v1737_v8, %v1595_v49 }
 0x1ee   :  { %v1597_v56 = vpop.f32.mrf.mxu1 }
 0x1ef   :  { %v1598_v45 = vadd.f32 %v1597_v56, %v1308_v55  ;;  %v1310_v62 = vpop.f32.mrf.mxu0  ;;  %v1871_v18 = vadd.f32 %v1870_v12, %v1808_v10 }
 0x1f0   :  { %v1599_v0 = vpop.f32.mrf.mxu1 }
 0x1f1   :  { %1676 = vst [vmem:[%s3158_s2 + $0x1d8] sm:$0xff] %v1598_v45  ;;  %v1313_v57 = vpop.f32.mrf.mxu0  ;;  %v1809_v13 = vmul.f32 %v1598_v45, %v1598_v45  ;;  %v1739_v48 = vadd.f32 %v1738_v43, %v1598_v45 }
 0x1f2   :  { %v1602_v28 = vpop.f32.mrf.mxu1 }
 0x1f3   :  { %v1603_v24 = vadd.f32 %v1602_v28, %v1313_v57  ;;  %v1315_v32 = vpop.f32.mrf.mxu0  ;;  %v1872_v22 = vadd.f32 %v1871_v18, %v1809_v13 }
 0x1f4   :  { %v1604_v38 = vpop.f32.mrf.mxu1 }
 0x1f5   :  { %1677 = vst [vmem:[%s3158_s2 + $0x1e0] sm:$0xff] %v1603_v24  ;;  %v1316_v11 = vpop.f32.mrf.mxu0  ;;  %v1810_v20 = vmul.f32 %v1603_v24, %v1603_v24  ;;  %v1740_v23 = vadd.f32 %v1739_v48, %v1603_v24 }
 0x1f6   :  { %v1605_v30 = vpop.f32.mrf.mxu1 }
 0x1f7   :  { %v1606_v15 = vadd.f32 %v1605_v30, %v1316_v11  ;;  %v1318_v16 = vpop.f32.mrf.mxu0  ;;  %v1873_v27 = vadd.f32 %v1872_v22, %v1810_v20 }
 0x1f8   :  { %v1607_v37 = vpop.f32.mrf.mxu1 }
 0x1f9   :  { %1678 = vst [vmem:[%s3158_s2 + $0x1e8] sm:$0xff] %v1606_v15  ;;  %v1321_v21 = vpop.f32.mrf.mxu0  ;;  %v1811_v53 = vmul.f32 %v1606_v15, %v1606_v15  ;;  %v1741_v31 = vadd.f32 %v1740_v23, %v1606_v15 }
 0x1fa   :  { %v1610_v44 = vpop.f32.mrf.mxu1 }
 0x1fb   :  { %v1611_v25 = vadd.f32 %v1610_v44, %v1321_v21  ;;  %v1323_v26 = vpop.f32.mrf.mxu0  ;;  %v1874_v35 = vadd.f32 %v1873_v27, %v1811_v53 }
 0x1fc   :  { %v1612_v50 = vpop.f32.mrf.mxu1 }
 0x1fd   :  { %1679 = vst [vmem:[%s3158_s2 + $0x1f0] sm:$0xff] %v1611_v25  ;;  %v1812_v58 = vmul.f32 %v1611_v25, %v1611_v25  ;;  %v1324_v34 = vpop.f32.mrf.mxu0  ;;  %v1742_v36 = vadd.f32 %v1741_v31, %v1611_v25 }
 0x1fe   :  { %v1613_v60 = vpop.f32.mrf.mxu1 }
 0x1ff   :  { %v1614_v39 = vadd.f32 %v1613_v60, %v1324_v34  ;;  %v1326_v63 = vpop.f32.mrf.mxu0  ;;  %v1875_v7 = vadd.f32 %v1874_v35, %v1812_v58 }
 0x200   :  { %v1615_v40 = vpop.f32.mrf.mxu1 }
 0x201   :  { %1680 = vst [vmem:[%s3158_s2 + $0x1f8] sm:$0xff] %v1614_v39  ;;  %v1743_v41 = vadd.f32 %v1742_v36, %v1614_v39  ;;  %v1813_v42 = vmul.f32 %v1614_v39, %v1614_v39 }
 0x203   :  { %v1744_v46 = vrot.slane %v1743_v41, 4  ;;  %v1876_v4 = vadd.f32 %v1875_v7, %v1813_v42 }
 0x205   :  { %v1745_v17 = vadd.f32 %v1744_v46, %v1743_v41  ;;  %v1877_v47 = vrot.slane %v1876_v4, 4 }
 0x207   :  { %v1746_v49 = vrot.slane %v1745_v17, 2  ;;  %v1878_v51 = vadd.f32 %v1877_v47, %v1876_v4 }
 0x209   :  { %v1747_v52 = vadd.f32 %v1746_v49, %v1745_v17  ;;  %v1879_v9 = vrot.slane %v1878_v51, 2 }
 0x20b   :  { %v1748_v29 = vrot.slane %v1747_v52, 1  ;;  %v1880_v54 = vadd.f32 %v1879_v9, %v1878_v51 }
 0x20d   :  { %v1749_v55 = vadd.f32 %v1748_v29, %v1747_v52  ;;  %v1881_v56 = vrot.slane %v1880_v54, 1 }
 0x20f   :  { %v1882_v59 = vadd.f32 %v1881_v56, %v1880_v54  ;;  %1883 = vst [vmem:[%s3159_s3] sm:$0x1] %v1749_v55 }
 0x211   :  { %1884 = vst [vmem:[%s3160_s4] sm:$0x1] %v1882_v59 }

// kernel: _lambda_.16
= control target key start
LH: loop header
LB: loop body
LE: loop exit
PB: predicated region body
PF: predicated region fallthrough
CT: control target
= control target key end

     0   :  { %s223_s0 = inlined_call_operand.vmem [shape: f32[64,128], index: 0, kind: input, shape index: {}]   ;;  %s224_s1 = inlined_call_operand.vmem [shape: f32[1,128], index: 1, kind: input, shape index: {}]   ;;  %s225_s2 = inlined_call_operand.vmem [shape: f32[1,128], index: 2, kind: input, shape index: {}]   ;;  %s226_s3 = inlined_call_operand.vmem [shape: bf16[64,128], index: 3, kind: output, shape index: {}]  }
   0x1   :  { %v14_v0 = vld [vmem:[%s223_s0] sm:$0xff]  ;;  %v15_v1 = vld [vmem:[%s223_s0 + $0x8] sm:$0xff]  ;;  %v16_v6 = vld [vmem:[%s223_s0 + $0x10] sm:$0xff] }
   0x2   :  { %v120_v2 = vld [vmem:[%s224_s1] ss:$0 sm:$0xff]  ;;  %v17_v7 = vld [vmem:[%s223_s0 + $0x18] sm:$0xff]  ;;  %v19_v11 = vld [vmem:[%s223_s0 + $0x28] sm:$0xff] }
   0x3   :  { %v29_v3 = vmul.f32 %v120_v2, %v14_v0  ;;  %v30_v4 = vmul.f32 %v120_v2, %v15_v1  ;;  %v121_v5 = vld [vmem:[%s225_s2] ss:$0 sm:$0xff]  ;;  %v31_v8 = vmul.f32 %v120_v2, %v16_v6  ;;  %v32_v9 = vmul.f32 %v120_v2, %v17_v7  ;;  %v20_v12 = vld [vmem:[%s223_s0 + $0x30] sm:$0xff]  ;;  %v21_v17 = vld [vmem:[%s223_s0 + $0x38] sm:$0xff] }
   0x4   :  { %v18_v10 = vld [vmem:[%s223_s0 + $0x20] sm:$0xff]  ;;  %v34_v16 = vmul.f32 %v120_v2, %v19_v11  ;;  %v35_v20 = vmul.f32 %v120_v2, %v20_v12  ;;  %v36_v21 = vmul.f32 %v120_v2, %v21_v17 }
   0x5   :  { %v44_v13 = vadd.f32 %v121_v5, %v29_v3  ;;  %v45_v14 = vadd.f32 %v121_v5, %v30_v4  ;;  %v33_v15 = vmul.f32 %v120_v2, %v18_v10  ;;  %v46_v18 = vadd.f32 %v121_v5, %v31_v8 }
   0x6   :  { %v47_v19 = vadd.f32 %v121_v5, %v32_v9  ;;  %v49_v29 = vadd.f32 %v121_v5, %v34_v16  ;;  %v50_v33 = vadd.f32 %v121_v5, %v35_v20  ;;  %v51_v37 = vadd.f32 %v121_v5, %v36_v21 }
   0x7   :  { %vm52_vm0 = vcmp.gt.f32.partialorder %v44_v13, 0.0  ;;  %vm53_vm1 = vcmp.gt.f32.partialorder %v45_v14, 0.0  ;;  %v60_v22 = vmul.f32 0.2, %v44_v13  ;;  %v61_v23 = vmul.f32 0.2, %v45_v14 }
   0x8   :  { %vm54_vm2 = vcmp.gt.f32.partialorder %v46_v18, 0.0  ;;  %vm55_vm3 = vcmp.gt.f32.partialorder %v47_v19, 0.0  ;;  %v62_v24 = vmul.f32 0.2, %v46_v18  ;;  %v63_v25 = vmul.f32 0.2, %v47_v19 }
   0x9   :  { %v68_v26 = vsel %vm52_vm0, %v44_v13, %v60_v22  ;;  %v69_v27 = vsel %vm53_vm1, %v45_v14, %v61_v23  ;;  %v48_v28 = vadd.f32 %v121_v5, %v33_v15  ;;  %vm57_vm5 = vcmp.gt.f32.partialorder %v49_v29, 0.0 }
   0xa   :  { %v141_v30 = vpack.c.bf16 %v69_v27, %v68_v26  ;;  %v70_v31 = vsel %vm54_vm2, %v46_v18, %v62_v24  ;;  %v71_v32 = vsel %vm55_vm3, %v47_v19, %v63_v25  ;;  %v65_v36 = vmul.f32 0.2, %v49_v29 }
   0xb   :  { %v146_v34 = vpack.c.bf16 %v71_v32, %v70_v31  ;;  %vm56_vm4 = vcmp.gt.f32.partialorder %v48_v28, 0.0  ;;  %v64_v35 = vmul.f32 0.2, %v48_v28  ;;  %vm58_vm6 = vcmp.gt.f32.partialorder %v50_v33, 0.0 }
   0xc   :  { %142 = vst [vmem:[%s226_s3] sm:$0xff] %v141_v30   ;;  %v66_v38 = vmul.f32 0.2, %v50_v33  ;;  %v73_v40 = vsel %vm57_vm5, %v49_v29, %v65_v36  ;;  %vm59_vm7 = vcmp.gt.f32.partialorder %v51_v37, 0.0  ;;  %v67_v41 = vmul.f32 0.2, %v51_v37 }
   0xd   :  { %158 = vst [vmem:[%s226_s3 + $0x8] sm:$0xff] %v146_v34   ;;  %v72_v39 = vsel %vm56_vm4, %v48_v28, %v64_v35 }
   0xe   :  { %v74_v42 = vsel %vm58_vm6, %v50_v33, %v66_v38  ;;  %v151_v43 = vpack.c.bf16 %v73_v40, %v72_v39  ;;  %v75_v44 = vsel %vm59_vm7, %v51_v37, %v67_v41 }
   0xf   :  { %v156_v45 = vpack.c.bf16 %v75_v44, %v74_v42 }
  0x10   :  { %159 = vst [vmem:[%s226_s3 + $0x10] sm:$0xff] %v151_v43  }
  0x11   :  { %160 = vst [vmem:[%s226_s3 + $0x18] sm:$0xff] %v156_v45  }

// kernel: _lambda_.15
= control target key start
LH: loop header
LB: loop body
LE: loop exit
PB: predicated region body
PF: predicated region fallthrough
CT: control target
= control target key end

     0   :  { %s1728_s1 = inlined_call_operand.vmem [shape: bf16[1024,128], index: 1, kind: input, shape index: {}]   ;;  %s1729_s0 = inlined_call_operand.vmem [shape: bf16[64,1024], index: 0, kind: input, shape index: {}]   ;;  %s1730_s2 = inlined_call_operand.vmem [shape: f32[64,128], index: 2, kind: output, shape index: {0}]   ;;  %s1731_s3 = inlined_call_operand.vmem [shape: f32[1,1,128], index: 3, kind: output, shape index: {1}]   ;;  %s1732_s4 = inlined_call_operand.vmem [shape: f32[1,1,128], index: 4, kind: output, shape index: {2}]  }
   0x1   :  { %v1291_v0 = vld [vmem:[%s1728_s1 + $0x78] sm:$0xff]   ;;  %v1295_v4 = vld [vmem:[%s1728_s1 + $0x70] sm:$0xff]   ;;  %v1299_v8 = vld [vmem:[%s1728_s1 + $0x68] sm:$0xff]  }
   0x2   :  { %v1292_v1 = vld [vmem:[%s1728_s1 + $0xf8] sm:$0xff]   ;;  %1131 = vmatprep.subr.bf16.mxu0 %v1291_v0  ;;  %v1296_v5 = vld [vmem:[%s1728_s1 + $0xf0] sm:$0xff]   ;;  %v1300_v9 = vld [vmem:[%s1728_s1 + $0xe8] sm:$0xff]  }
   0x3   :  { %v1293_v2 = vld [vmem:[%s1728_s1 + $0x38] sm:$0xff]   ;;  %1171 = vmatprep.subr.bf16.mxu1 %v1292_v1  ;;  %v1297_v6 = vld [vmem:[%s1728_s1 + $0x30] sm:$0xff]   ;;  %v1301_v10 = vld [vmem:[%s1728_s1 + $0x28] sm:$0xff]  }
   0x4   :  { %v1294_v3 = vld [vmem:[%s1728_s1 + $0xb8] sm:$0xff]   ;;  %1132 = vmatpush3.bf16.msra.mxu0 %v1293_v2  ;;  %v1298_v7 = vld [vmem:[%s1728_s1 + $0xb0] sm:$0xff]   ;;  %v1302_v11 = vld [vmem:[%s1728_s1 + $0xa8] sm:$0xff]  }
   0x5   :  { %1172 = vmatpush3.bf16.msra.mxu1 %v1294_v3  ;;  %1133 = vmatprep.subr.bf16.mxu0 %v1295_v4  ;;  %v1303_v12 = vld [vmem:[%s1728_s1 + $0x60] sm:$0xff]   ;;  %v1307_v16 = vld [vmem:[%s1728_s1 + $0x58] sm:$0xff]   ;;  %v1311_v20 = vld [vmem:[%s1728_s1 + $0x50] sm:$0xff]  }
   0x6   :  { %1173 = vmatprep.subr.bf16.mxu1 %v1296_v5  ;;  %v1304_v13 = vld [vmem:[%s1728_s1 + $0xe0] sm:$0xff]   ;;  %v1308_v17 = vld [vmem:[%s1728_s1 + $0xd8] sm:$0xff]   ;;  %v1312_v21 = vld [vmem:[%s1728_s1 + $0xd0] sm:$0xff]  }
   0x7   :  { %v1305_v14 = vld [vmem:[%s1728_s1 + $0x20] sm:$0xff]   ;;  %v1309_v18 = vld [vmem:[%s1728_s1 + $0x18] sm:$0xff]   ;;  %v1313_v22 = vld [vmem:[%s1728_s1 + $0x10] sm:$0xff]  }
   0x8   :  { %1134 = vmatpush3.bf16.msra.mxu0 %v1297_v6  ;;  %v1306_v15 = vld [vmem:[%s1728_s1 + $0xa0] sm:$0xff]   ;;  %v1310_v19 = vld [vmem:[%s1728_s1 + $0x98] sm:$0xff]   ;;  %v1314_v23 = vld [vmem:[%s1728_s1 + $0x90] sm:$0xff]  }
   0x9   :  { %1174 = vmatpush3.bf16.msra.mxu1 %v1298_v7  ;;  %1135 = vmatprep.subr.bf16.mxu0 %v1299_v8  ;;  %v1315_v24 = vld [vmem:[%s1728_s1 + $0x48] sm:$0xff]   ;;  %v1319_v28 = vld [vmem:[%s1728_s1 + $0x40] sm:$0xff]   ;;  %v1323_v40 = vld [vmem:[%s1728_s1 + $0x178] sm:$0xff]  }
   0xa   :  { %1175 = vmatprep.subr.bf16.mxu1 %v1300_v9  ;;  %v1316_v25 = vld [vmem:[%s1728_s1 + $0xc8] sm:$0xff]   ;;  %v1320_v29 = vld [vmem:[%s1728_s1 + $0xc0] sm:$0xff]   ;;  %v1324_v41 = vld [vmem:[%s1728_s1 + $0x1f8] sm:$0xff]  }
   0xb   :  { %v1317_v26 = vld [vmem:[%s1728_s1 + $0x8] sm:$0xff]   ;;  %v1321_v30 = vld [vmem:[%s1728_s1] sm:$0xff]   ;;  %v1325_v42 = vld [vmem:[%s1728_s1 + $0x138] sm:$0xff]  }
   0xc   :  { %1136 = vmatpush3.bf16.msra.mxu0 %v1301_v10  ;;  %v1318_v27 = vld [vmem:[%s1728_s1 + $0x88] sm:$0xff]   ;;  %v1322_v31 = vld [vmem:[%s1728_s1 + $0x80] sm:$0xff]   ;;  %v1326_v43 = vld [vmem:[%s1728_s1 + $0x1b8] sm:$0xff]  }
   0xd   :  { %1176 = vmatpush3.bf16.msra.mxu1 %v1302_v11  ;;  %1137 = vmatprep.subr.bf16.mxu0 %v1303_v12  ;;  %v15_v32 = vld [vmem:[%s1729_s0] sm:$0xff]  ;;  %v16_v34 = vld [vmem:[%s1729_s0 + $0x8] sm:$0xff]  ;;  %v1327_v44 = vld [vmem:[%s1728_s1 + $0x170] sm:$0xff]  }
   0xe   :  { %1177 = vmatprep.subr.bf16.mxu1 %v1304_v13  ;;  %v19_v33 = vld [vmem:[%s1729_s0 + $0x20] sm:$0xff]  ;;  %v20_v37 = vld [vmem:[%s1729_s0 + $0x28] sm:$0xff]  ;;  %v1328_v45 = vld [vmem:[%s1728_s1 + $0x1f0] sm:$0xff]  }
   0xf   :  { %v1035_v35 = vcombine.low %v15_v32, %v19_v33  ;;  %v1036_v36 = vcombine.high %v15_v32, %v19_v33  ;;  %v1037_v38 = vcombine.low %v16_v34, %v20_v37  ;;  %v1038_v39 = vcombine.high %v16_v34, %v20_v37  ;;  %v1329_v46 = vld [vmem:[%s1728_s1 + $0x130] sm:$0xff]   ;;  %v23_v48 = vld [vmem:[%s1729_s0 + $0x40] sm:$0xff]  ;;  %v24_v51 = vld [vmem:[%s1729_s0 + $0x48] sm:$0xff] }
  0x10   :  { %1138 = vmatpush3.bf16.msra.mxu0 %v1305_v14  ;;  %v1330_v47 = vld [vmem:[%s1728_s1 + $0x1b0] sm:$0xff]   ;;  %v27_v49 = vld [vmem:[%s1729_s0 + $0x60] sm:$0xff]  ;;  %v28_v52 = vld [vmem:[%s1729_s0 + $0x68] sm:$0xff] }
  0x11   :  { %1178 = vmatpush3.bf16.msra.mxu1 %v1306_v15  ;;  %1139 = vmatprep.subr.bf16.mxu0 %v1307_v16  ;;  %v1044_v50 = vcombine.high %v23_v48, %v27_v49  ;;  %v1043_v53 = vcombine.low %v23_v48, %v27_v49  ;;  %v1046_v54 = vcombine.high %v24_v51, %v28_v52  ;;  %v1331_v56 = vld [vmem:[%s1728_s1 + $0x168] sm:$0xff]   ;;  %v1335_v60 = vld [vmem:[%s1728_s1 + $0x160] sm:$0xff]   ;;  %v1339_v8 = vld [vmem:[%s1728_s1 + $0x158] sm:$0xff]  }
  0x12   :  { %1179 = vmatprep.subr.bf16.mxu1 %v1308_v17  ;;  %751 = vmatprep.mubr.bf16.mxu0 %v1036_v36  ;;  %v1045_v55 = vcombine.low %v24_v51, %v28_v52  ;;  %v1332_v57 = vld [vmem:[%s1728_s1 + $0x1e8] sm:$0xff]   ;;  %v1336_v61 = vld [vmem:[%s1728_s1 + $0x1e0] sm:$0xff]   ;;  %v1340_v9 = vld [vmem:[%s1728_s1 + $0x1d8] sm:$0xff]  }
  0x13   :  { %816 = vmatprep.mubr.bf16.mxu1 %v1038_v39  ;;  %v1333_v58 = vld [vmem:[%s1728_s1 + $0x128] sm:$0xff]   ;;  %v1337_v62 = vld [vmem:[%s1728_s1 + $0x120] sm:$0xff]   ;;  %v1341_v10 = vld [vmem:[%s1728_s1 + $0x118] sm:$0xff]  }
  0x14   :  { %1140 = vmatpush3.bf16.msra.mxu0 %v1309_v18  ;;  %v1334_v59 = vld [vmem:[%s1728_s1 + $0x1a8] sm:$0xff]   ;;  %v1338_v63 = vld [vmem:[%s1728_s1 + $0x1a0] sm:$0xff]   ;;  %v1342_v11 = vld [vmem:[%s1728_s1 + $0x198] sm:$0xff]  }
  0x15   :  { %1180 = vmatpush3.bf16.msra.mxu1 %v1310_v19  ;;  %1141 = vmatprep.subr.bf16.mxu0 %v1311_v20  ;;  %v31_v0 = vld [vmem:[%s1729_s0 + $0x80] sm:$0xff]  ;;  %v32_v2 = vld [vmem:[%s1729_s0 + $0x88] sm:$0xff]  ;;  %v1343_v12 = vld [vmem:[%s1728_s1 + $0x150] sm:$0xff]  }
  0x16   :  { %1181 = vmatprep.subr.bf16.mxu1 %v1312_v21  ;;  %v35_v1 = vld [vmem:[%s1729_s0 + $0xa0] sm:$0xff]  ;;  %v36_v3 = vld [vmem:[%s1729_s0 + $0xa8] sm:$0xff]  ;;  %v1344_v13 = vld [vmem:[%s1728_s1 + $0x1d0] sm:$0xff]  }
  0x17   :  { %v1052_v4 = vcombine.high %v31_v0, %v35_v1  ;;  %v1054_v5 = vcombine.high %v32_v2, %v36_v3  ;;  %v1051_v6 = vcombine.low %v31_v0, %v35_v1  ;;  %v1053_v7 = vcombine.low %v32_v2, %v36_v3  ;;  %v1345_v14 = vld [vmem:[%s1728_s1 + $0x110] sm:$0xff]   ;;  %v39_v16 = vld [vmem:[%s1729_s0 + $0xc0] sm:$0xff]  ;;  %v40_v18 = vld [vmem:[%s1729_s0 + $0xc8] sm:$0xff] }
  0x18   :  { %1142 = vmatpush3.bf16.msra.mxu0 %v1313_v22  ;;  %v1346_v15 = vld [vmem:[%s1728_s1 + $0x190] sm:$0xff]   ;;  %v43_v17 = vld [vmem:[%s1729_s0 + $0xe0] sm:$0xff]  ;;  %v44_v20 = vld [vmem:[%s1729_s0 + $0xe8] sm:$0xff] }
  0x19   :  { %1182 = vmatpush3.bf16.msra.mxu1 %v1314_v23  ;;  %1143 = vmatprep.subr.bf16.mxu0 %v1315_v24  ;;  %v1060_v19 = vcombine.high %v39_v16, %v43_v17  ;;  %v1059_v21 = vcombine.low %v39_v16, %v43_v17  ;;  %v1062_v22 = vcombine.high %v40_v18, %v44_v20  ;;  %v1347_v24 = vld [vmem:[%s1728_s1 + $0x148] sm:$0xff]   ;;  %v17_v32 = vld [vmem:[%s1729_s0 + $0x10] sm:$0xff]  ;;  %v18_v36 = vld [vmem:[%s1729_s0 + $0x18] sm:$0xff] }
  0x1a   :  { %1183 = vmatprep.subr.bf16.mxu1 %v1316_v25  ;;  %v1061_v23 = vcombine.low %v40_v18, %v44_v20  ;;  %v1348_v25 = vld [vmem:[%s1728_s1 + $0x1c8] sm:$0xff]   ;;  %v21_v33 = vld [vmem:[%s1729_s0 + $0x30] sm:$0xff]  ;;  %v22_v37 = vld [vmem:[%s1729_s0 + $0x38] sm:$0xff] }
  0x1b   :  { %v1039_v34 = vcombine.low %v17_v32, %v21_v33  ;;  %v1041_v39 = vcombine.low %v18_v36, %v22_v37  ;;  %v34_v48 = vld [vmem:[%s1729_s0 + $0x98] sm:$0xff] }
  0x1c   :  { %1144 = vmatpush3.bf16.msra.mxu0 %v1317_v26  ;;  %v1349_v26 = vld [vmem:[%s1728_s1 + $0x108] sm:$0xff]   ;;  %v38_v49 = vld [vmem:[%s1729_s0 + $0xb8] sm:$0xff] }
  0x1d   :  { %1184 = vmatpush3.bf16.msra.mxu1 %v1318_v27  ;;  %1145 = vmatprep.subr.bf16.mxu0 %v1319_v28  ;;  %v1350_v27 = vld [vmem:[%s1728_s1 + $0x188] sm:$0xff]   ;;  %v1351_v28 = vld [vmem:[%s1728_s1 + $0x140] sm:$0xff]  }
  0x1e   :  { %1185 = vmatprep.subr.bf16.mxu1 %v1320_v29  ;;  %v1352_v29 = vld [vmem:[%s1728_s1 + $0x1c0] sm:$0xff]  }
  0x20   :  { %1146 = vmatpush3.bf16.msra.mxu0 %v1321_v30  ;;  %v1353_v30 = vld [vmem:[%s1728_s1 + $0x100] sm:$0xff]  }
  0x21   :  { %1186 = vmatpush3.bf16.msra.mxu1 %v1322_v31  ;;  %1211 = vmatprep.subr.bf16.mxu0 %v1323_v40  ;;  %v1354_v31 = vld [vmem:[%s1728_s1 + $0x180] sm:$0xff]   ;;  %v1042_v40 = vcombine.high %v18_v36, %v22_v37 }
  0x22   :  { %1251 = vmatprep.subr.bf16.mxu1 %v1324_v41  ;;  %v29_v41 = vld [vmem:[%s1729_s0 + $0x70] sm:$0xff] }
  0x23   :  { %752 = vmatmul.mubr.bf16.vlgmr.msra.gmra.mxu0 %v1035_v35  ;;  %v1040_v35 = vcombine.high %v17_v32, %v21_v33 }
  0x24   :  { %817 = vmatmul.mubr.bf16.vlgmr.msra.gmra.mxu1 %v1037_v38  ;;  %1212 = vmatpush3.bf16.msra.mxu0 %v1325_v42  ;;  %v25_v38 = vld [vmem:[%s1729_s0 + $0x50] sm:$0xff]  ;;  %v26_v42 = vld [vmem:[%s1729_s0 + $0x58] sm:$0xff] }
  0x25   :  { %1252 = vmatpush3.bf16.msra.mxu1 %v1326_v43  ;;  %1213 = vmatprep.subr.bf16.mxu0 %v1327_v44  ;;  %v30_v43 = vld [vmem:[%s1729_s0 + $0x78] sm:$0xff]  ;;  %v1048_v44 = vcombine.high %v25_v38, %v29_v41 }
  0x26   :  { %1253 = vmatprep.subr.bf16.mxu1 %v1328_v45  ;;  %759 = vmatprep.mubr.bf16.mxu0 %v1044_v50  ;;  %v1050_v45 = vcombine.high %v26_v42, %v30_v43  ;;  %v1047_v50 = vcombine.low %v25_v38, %v29_v41  ;;  %v1049_v51 = vcombine.low %v26_v42, %v30_v43 }
  0x27   :  { %824 = vmatprep.mubr.bf16.mxu1 %v1046_v54  ;;  %v41_v54 = vld [vmem:[%s1729_s0 + $0xd0] sm:$0xff] }
  0x28   :  { %1214 = vmatpush3.bf16.msra.mxu0 %v1329_v46  ;;  %v33_v46 = vld [vmem:[%s1729_s0 + $0x90] sm:$0xff] }
  0x29   :  { %1254 = vmatpush3.bf16.msra.mxu1 %v1330_v47  ;;  %1215 = vmatprep.subr.bf16.mxu0 %v1331_v56  ;;  %v37_v47 = vld [vmem:[%s1729_s0 + $0xb0] sm:$0xff]  ;;  %v42_v56 = vld [vmem:[%s1729_s0 + $0xd8] sm:$0xff] }
  0x2a   :  { %1255 = vmatprep.subr.bf16.mxu1 %v1332_v57  ;;  %v1056_v52 = vcombine.high %v33_v46, %v37_v47  ;;  %v46_v57 = vld [vmem:[%s1729_s0 + $0xf8] sm:$0xff] }
  0x2b   :  { %760 = vmatmul.mubr.bf16.gmra.mxu0 %v1043_v53  ;;  %v1058_v53 = vcombine.high %v34_v48, %v38_v49 }
  0x2c   :  { %825 = vmatmul.mubr.bf16.gmra.mxu1 %v1045_v55  ;;  %1216 = vmatpush3.bf16.msra.mxu0 %v1333_v58  ;;  %v45_v55 = vld [vmem:[%s1729_s0 + $0xf0] sm:$0xff]  ;;  %v1055_v58 = vcombine.low %v33_v46, %v37_v47 }
  0x2d   :  { %1256 = vmatpush3.bf16.msra.mxu1 %v1334_v59  ;;  %1217 = vmatprep.subr.bf16.mxu0 %v1335_v60  ;;  %v1057_v59 = vcombine.low %v34_v48, %v38_v49  ;;  %v1064_v60 = vcombine.high %v41_v54, %v45_v55 }
  0x2e   :  { %1257 = vmatprep.subr.bf16.mxu1 %v1336_v61  ;;  %767 = vmatprep.mubr.bf16.mxu0 %v1052_v4  ;;  %v1066_v61 = vcombine.high %v42_v56, %v46_v57 }
  0x2f   :  { %832 = vmatprep.mubr.bf16.mxu1 %v1054_v5 }
  0x30   :  { %1218 = vmatpush3.bf16.msra.mxu0 %v1337_v62  ;;  %v1063_v62 = vcombine.low %v41_v54, %v45_v55 }
  0x31   :  { %1258 = vmatpush3.bf16.msra.mxu1 %v1338_v63  ;;  %1219 = vmatprep.subr.bf16.mxu0 %v1339_v8  ;;  %v1065_v63 = vcombine.low %v42_v56, %v46_v57 }
  0x32   :  { %1259 = vmatprep.subr.bf16.mxu1 %v1340_v9 }
  0x33   :  { %768 = vmatmul.mubr.bf16.gmra.mxu0 %v1051_v6 }
  0x34   :  { %833 = vmatmul.mubr.bf16.gmra.mxu1 %v1053_v7  ;;  %1220 = vmatpush3.bf16.msra.mxu0 %v1341_v10 }
  0x35   :  { %1260 = vmatpush3.bf16.msra.mxu1 %v1342_v11  ;;  %1221 = vmatprep.subr.bf16.mxu0 %v1343_v12 }
  0x36   :  { %1261 = vmatprep.subr.bf16.mxu1 %v1344_v13  ;;  %775 = vmatprep.mubr.bf16.mxu0 %v1060_v19 }
  0x37   :  { %840 = vmatprep.mubr.bf16.mxu1 %v1062_v22 }
  0x38   :  { %1222 = vmatpush3.bf16.msra.mxu0 %v1345_v14 }
  0x39   :  { %1262 = vmatpush3.bf16.msra.mxu1 %v1346_v15  ;;  %1223 = vmatprep.subr.bf16.mxu0 %v1347_v24 }
  0x3a   :  { %1263 = vmatprep.subr.bf16.mxu1 %v1348_v25 }
  0x3b   :  { %776 = vmatmul.mubr.bf16.gmra.mxu0 %v1059_v21 }
  0x3c   :  { %841 = vmatmul.mubr.bf16.gmra.mxu1 %v1061_v23  ;;  %1224 = vmatpush3.bf16.msra.mxu0 %v1349_v26 }
  0x3d   :  { %1264 = vmatpush3.bf16.msra.mxu1 %v1350_v27  ;;  %1225 = vmatprep.subr.bf16.mxu0 %v1351_v28 }
  0x3e   :  { %1265 = vmatprep.subr.bf16.mxu1 %v1352_v29  ;;  %881 = vmatprep.mubr.bf16.mxu0 %v1040_v35 }
  0x3f   :  { %946 = vmatprep.mubr.bf16.mxu1 %v1042_v40 }
  0x40   :  { %1226 = vmatpush3.bf16.msra.mxu0 %v1353_v30 }
  0x41   :  { %1266 = vmatpush3.bf16.msra.mxu1 %v1354_v31 }
  0x43   :  { %882 = vmatmul.mubr.bf16.vlgmr.msra.gmra.mxu0 %v1039_v34 }
  0x44   :  { %947 = vmatmul.mubr.bf16.vlgmr.msra.gmra.mxu1 %v1041_v39  ;;  %889 = vmatprep.mubr.bf16.mxu0 %v1048_v44 }
  0x45   :  { %954 = vmatprep.mubr.bf16.mxu1 %v1050_v45 }
  0x4b   :  { %890 = vmatmul.mubr.bf16.gmra.mxu0 %v1047_v50 }
  0x4c   :  { %955 = vmatmul.mubr.bf16.gmra.mxu1 %v1049_v51  ;;  %897 = vmatprep.mubr.bf16.mxu0 %v1056_v52 }
  0x4d   :  { %962 = vmatprep.mubr.bf16.mxu1 %v1058_v53 }
  0x53   :  { %898 = vmatmul.mubr.bf16.gmra.mxu0 %v1055_v58 }
  0x54   :  { %963 = vmatmul.mubr.bf16.gmra.mxu1 %v1057_v59  ;;  %905 = vmatprep.mubr.bf16.mxu0 %v1064_v60 }
  0x55   :  { %970 = vmatprep.mubr.bf16.mxu1 %v1066_v61 }
  0x5b   :  { %906 = vmatmul.mubr.bf16.gmra.mxu0 %v1063_v62 }
  0x5c   :  { %971 = vmatmul.mubr.bf16.gmra.mxu1 %v1065_v63 }
  0xe3   :  { %v1147_v0 = vpop.f32.mrf.mxu0 }
  0xe4   :  { %v1187_v1 = vpop.f32.mrf.mxu1 }
  0xe5   :  { %v1148_v2 = vpop.f32.mrf.mxu0 }
  0xe6   :  { %v1188_v3 = vpop.f32.mrf.mxu1  ;;  %v1149_v32 = vadd.f32 %v1148_v2, %v1147_v0 }
  0xe7   :  { %v1150_v4 = vpop.f32.mrf.mxu0  ;;  %v1189_v33 = vadd.f32 %v1188_v3, %v1187_v1 }
  0xe8   :  { %v1190_v5 = vpop.f32.mrf.mxu1 }
  0xe9   :  { %v1151_v6 = vpop.f32.mrf.mxu0  ;;  %v819_v39 = vadd.f32 %v1189_v33, %v1149_v32 }
  0xea   :  { %v1191_v7 = vpop.f32.mrf.mxu1  ;;  %v1152_v36 = vadd.f32 %v1151_v6, %v1150_v4 }
  0xeb   :  { %v1153_v8 = vpop.f32.mrf.mxu0  ;;  %v1192_v37 = vadd.f32 %v1191_v7, %v1190_v5 }
  0xec   :  { %v1193_v9 = vpop.f32.mrf.mxu1 }
  0xed   :  { %v1154_v10 = vpop.f32.mrf.mxu0  ;;  %v822_v46 = vadd.f32 %v1192_v37, %v1152_v36 }
  0xee   :  { %v1194_v11 = vpop.f32.mrf.mxu1  ;;  %v1155_v48 = vadd.f32 %v1154_v10, %v1153_v8 }
  0xef   :  { %v1156_v12 = vpop.f32.mrf.mxu0  ;;  %v1195_v49 = vadd.f32 %v1194_v11, %v1193_v9 }
  0xf0   :  { %v1196_v13 = vpop.f32.mrf.mxu1 }
  0xf1   :  { %v1157_v14 = vpop.f32.mrf.mxu0  ;;  %v827_v60 = vadd.f32 %v1195_v49, %v1155_v48 }
  0xf2   :  { %v1197_v15 = vpop.f32.mrf.mxu1  ;;  %v1158_v57 = vadd.f32 %v1157_v14, %v1156_v12 }
  0xf3   :  { %v1159_v16 = vpop.f32.mrf.mxu0  ;;  %v1198_v58 = vadd.f32 %v1197_v15, %v1196_v13 }
  0xf4   :  { %v1199_v17 = vpop.f32.mrf.mxu1 }
  0xf5   :  { %v1160_v18 = vpop.f32.mrf.mxu0  ;;  %v830_v4 = vadd.f32 %v1198_v58, %v1158_v57 }
  0xf6   :  { %v1200_v19 = vpop.f32.mrf.mxu1  ;;  %v1161_v6 = vadd.f32 %v1160_v18, %v1159_v16 }
  0xf7   :  { %v1668_v20 = vpop.f32.mrf.mxu0  ;;  %v1201_v7 = vadd.f32 %v1200_v19, %v1199_v17 }
  0xf8   :  { %v1670_v21 = vpop.f32.mrf.mxu1 }
  0xf9   :  { %v1163_v22 = vpop.f32.mrf.mxu0 }
  0xfa   :  { %v1203_v23 = vpop.f32.mrf.mxu1  ;;  %v1164_v15 = vadd.f32 %v1163_v22, %v1668_v20 }
  0xfb   :  { %v1672_v24 = vpop.f32.mrf.mxu0  ;;  %v1204_v32 = vadd.f32 %v1203_v23, %v1670_v21 }
  0xfc   :  { %v1674_v25 = vpop.f32.mrf.mxu1 }
  0xfd   :  { %v1676_v26 = vpop.f32.mrf.mxu0 }
  0xfe   :  { %v1678_v27 = vpop.f32.mrf.mxu1  ;;  %v1167_v20 = vadd.f32 %v1676_v26, %v1672_v24 }
  0xff   :  { %v1680_v28 = vpop.f32.mrf.mxu0  ;;  %v1207_v21 = vadd.f32 %v1678_v27, %v1674_v25 }
 0x100   :  { %v1682_v29 = vpop.f32.mrf.mxu1 }
 0x101   :  { %v1684_v30 = vpop.f32.mrf.mxu0 }
 0x102   :  { %v1686_v31 = vpop.f32.mrf.mxu1  ;;  %v1170_v24 = vadd.f32 %v1684_v30, %v1680_v28 }
 0x103   :  { %v1227_v34 = vpop.f32.mrf.mxu0  ;;  %v1210_v25 = vadd.f32 %v1686_v31, %v1682_v29 }
 0x104   :  { %v1267_v35 = vpop.f32.mrf.mxu1 }
 0x105   :  { %v1228_v38 = vpop.f32.mrf.mxu0  ;;  %v846_v29 = vadd.f32 %v1210_v25, %v1170_v24 }
 0x106   :  { %v1229_v40 = vadd.f32 %v1228_v38, %v1227_v34  ;;  %v1268_v41 = vpop.f32.mrf.mxu1  ;;  %v835_v34 = vadd.f32 %v1201_v7, %v1161_v6  ;;  %v838_v38 = vadd.f32 %v1204_v32, %v1164_v15 }
 0x107   :  { %v1230_v42 = vpop.f32.mrf.mxu0  ;;  %v1269_v44 = vadd.f32 %v1268_v41, %v1267_v35 }
 0x108   :  { %v884_v43 = vadd.f32 %v1229_v40, %v819_v39  ;;  %v1270_v45 = vpop.f32.mrf.mxu1 }
 0x109   :  { %v1231_v47 = vpop.f32.mrf.mxu0 }
 0x10a   :  { %v949_v50 = vadd.f32 %v1269_v44, %v884_v43  ;;  %v1232_v51 = vadd.f32 %v1231_v47, %v1230_v42  ;;  %v1271_v52 = vpop.f32.mrf.mxu1 }
 0x10b   :  { %v1233_v53 = vpop.f32.mrf.mxu0  ;;  %v1272_v55 = vadd.f32 %v1271_v52, %v1270_v45 }
 0x10c   :  { %979 = vst [vmem:[%s1730_s2] sm:$0xff] %v949_v50  ;;  %v887_v54 = vadd.f32 %v1232_v51, %v822_v46  ;;  %v1273_v56 = vpop.f32.mrf.mxu1  ;;  %v1000_v42 = vmul.f32 %v949_v50, %v949_v50  ;;  %v843_v51 = vadd.f32 %v1207_v21, %v1167_v20 }
 0x10d   :  { %v1234_v59 = vpop.f32.mrf.mxu0 }
 0x10e   :  { %v952_v61 = vadd.f32 %v1272_v55, %v887_v54  ;;  %v1235_v62 = vadd.f32 %v1234_v59, %v1233_v53  ;;  %v1274_v63 = vpop.f32.mrf.mxu1 }
 0x10f   :  { %v1236_v0 = vpop.f32.mrf.mxu0  ;;  %v1275_v2 = vadd.f32 %v1274_v63, %v1273_v56 }
 0x110   :  { %980 = vst [vmem:[%s1730_s2 + $0x8] sm:$0xff] %v952_v61  ;;  %v892_v1 = vadd.f32 %v1235_v62, %v827_v60  ;;  %v1276_v3 = vpop.f32.mrf.mxu1  ;;  %v1001_v39 = vmul.f32 %v952_v61, %v952_v61  ;;  %v987_v45 = vadd.f32 %v952_v61, %v949_v50 }
 0x111   :  { %v1237_v5 = vpop.f32.mrf.mxu0 }
 0x112   :  { %v957_v8 = vadd.f32 %v1275_v2, %v892_v1  ;;  %v1238_v9 = vadd.f32 %v1237_v5, %v1236_v0  ;;  %v1277_v10 = vpop.f32.mrf.mxu1  ;;  %v1008_v26 = vadd.f32 %v1001_v39, %v1000_v42 }
 0x113   :  { %v1239_v11 = vpop.f32.mrf.mxu0  ;;  %v1278_v13 = vadd.f32 %v1277_v10, %v1276_v3 }
 0x114   :  { %981 = vst [vmem:[%s1730_s2 + $0x10] sm:$0xff] %v957_v8  ;;  %v895_v12 = vadd.f32 %v1238_v9, %v830_v4  ;;  %v1279_v14 = vpop.f32.mrf.mxu1  ;;  %v1002_v43 = vmul.f32 %v957_v8, %v957_v8  ;;  %v988_v52 = vadd.f32 %v987_v45, %v957_v8 }
 0x115   :  { %v1240_v33 = vpop.f32.mrf.mxu0 }
 0x116   :  { %v960_v35 = vadd.f32 %v1278_v13, %v895_v12  ;;  %v1241_v16 = vadd.f32 %v1240_v33, %v1239_v11  ;;  %v1280_v17 = vpop.f32.mrf.mxu1  ;;  %v1009_v55 = vadd.f32 %v1008_v26, %v1002_v43 }
 0x117   :  { %v1242_v18 = vpop.f32.mrf.mxu0  ;;  %v1281_v36 = vadd.f32 %v1280_v17, %v1279_v14 }
 0x118   :  { %982 = vst [vmem:[%s1730_s2 + $0x18] sm:$0xff] %v960_v35  ;;  %v900_v19 = vadd.f32 %v1241_v16, %v835_v34  ;;  %v1282_v37 = vpop.f32.mrf.mxu1  ;;  %v1003_v27 = vmul.f32 %v960_v35, %v960_v35  ;;  %v989_v58 = vadd.f32 %v988_v52, %v960_v35 }
 0x119   :  { %v1243_v40 = vpop.f32.mrf.mxu0 }
 0x11a   :  { %v965_v22 = vadd.f32 %v1281_v36, %v900_v19  ;;  %v1244_v23 = vadd.f32 %v1243_v40, %v1242_v18  ;;  %v1283_v41 = vpop.f32.mrf.mxu1  ;;  %v1010_v31 = vadd.f32 %v1009_v55, %v1003_v27 }
 0x11b   :  { %v1245_v44 = vpop.f32.mrf.mxu0  ;;  %v1284_v47 = vadd.f32 %v1283_v41, %v1282_v37 }
 0x11c   :  { %983 = vst [vmem:[%s1730_s2 + $0x20] sm:$0xff] %v965_v22  ;;  %v903_v46 = vadd.f32 %v1244_v23, %v838_v38  ;;  %v1285_v48 = vpop.f32.mrf.mxu1  ;;  %v1004_v56 = vmul.f32 %v965_v22, %v965_v22  ;;  %v990_v61 = vadd.f32 %v989_v58, %v965_v22 }
 0x11d   :  { %v1246_v49 = vpop.f32.mrf.mxu0 }
 0x11e   :  { %v968_v53 = vadd.f32 %v1284_v47, %v903_v46  ;;  %v1247_v50 = vadd.f32 %v1246_v49, %v1245_v44  ;;  %v1286_v54 = vpop.f32.mrf.mxu1  ;;  %v1011_v2 = vadd.f32 %v1010_v31, %v1004_v56 }
 0x11f   :  { %v1248_v57 = vpop.f32.mrf.mxu0  ;;  %v1287_v30 = vadd.f32 %v1286_v54, %v1285_v48 }
 0x120   :  { %984 = vst [vmem:[%s1730_s2 + $0x28] sm:$0xff] %v968_v53  ;;  %v908_v28 = vadd.f32 %v1247_v50, %v843_v51  ;;  %v1288_v59 = vpop.f32.mrf.mxu1  ;;  %v1005_v62 = vmul.f32 %v968_v53, %v968_v53  ;;  %v991_v3 = vadd.f32 %v990_v61, %v968_v53 }
 0x121   :  { %v1249_v60 = vpop.f32.mrf.mxu0 }
 0x122   :  { %v973_v63 = vadd.f32 %v1287_v30, %v908_v28  ;;  %v1250_v0 = vadd.f32 %v1249_v60, %v1248_v57  ;;  %v1289_v1 = vpop.f32.mrf.mxu1  ;;  %v1012_v7 = vadd.f32 %v1011_v2, %v1005_v62 }
 0x123   :  { %v1290_v6 = vadd.f32 %v1289_v1, %v1288_v59 }
 0x124   :  { %985 = vst [vmem:[%s1730_s2 + $0x30] sm:$0xff] %v973_v63  ;;  %v1006_v4 = vmul.f32 %v973_v63, %v973_v63  ;;  %v911_v5 = vadd.f32 %v1250_v0, %v846_v29  ;;  %v992_v8 = vadd.f32 %v991_v3, %v973_v63 }
 0x126   :  { %v976_v9 = vadd.f32 %v1290_v6, %v911_v5  ;;  %v1013_v10 = vadd.f32 %v1012_v7, %v1006_v4 }
 0x128   :  { %986 = vst [vmem:[%s1730_s2 + $0x38] sm:$0xff] %v976_v9  ;;  %v993_v11 = vadd.f32 %v992_v8, %v976_v9  ;;  %v1007_v12 = vmul.f32 %v976_v9, %v976_v9 }
 0x12a   :  { %v994_v13 = vrot.slane %v993_v11, 4  ;;  %v1014_v14 = vadd.f32 %v1013_v10, %v1007_v12 }
 0x12c   :  { %v995_v15 = vadd.f32 %v994_v13, %v993_v11  ;;  %v1015_v32 = vrot.slane %v1014_v14, 4 }
 0x12e   :  { %v996_v33 = vrot.slane %v995_v15, 2  ;;  %v1016_v34 = vadd.f32 %v1015_v32, %v1014_v14 }
 0x130   :  { %v997_v35 = vadd.f32 %v996_v33, %v995_v15  ;;  %v1017_v16 = vrot.slane %v1016_v34, 2 }
 0x132   :  { %v998_v17 = vrot.slane %v997_v35, 1  ;;  %v1018_v18 = vadd.f32 %v1017_v16, %v1016_v34 }
 0x134   :  { %v999_v19 = vadd.f32 %v998_v17, %v997_v35  ;;  %v1019_v36 = vrot.slane %v1018_v18, 1 }
 0x136   :  { %v1020_v37 = vadd.f32 %v1019_v36, %v1018_v18  ;;  %1021 = vst [vmem:[%s1731_s3] sm:$0x1] %v999_v19 }
 0x138   :  { %1022 = vst [vmem:[%s1732_s4] sm:$0x1] %v1020_v37 }

// kernel: _lambda_.17
= control target key start
LH: loop header
LB: loop body
LE: loop exit
PB: predicated region body
PF: predicated region fallthrough
CT: control target
= control target key end

     0   :  { %vm619_vm0 = vcmask 785408   ;;  %s1607_s1 = inlined_call_operand.vmem [shape: bf16[864,128], index: 1, kind: input, shape index: {}]   ;;  %s1608_s0 = inlined_call_operand.vmem [shape: bf16[64,864], index: 0, kind: input, shape index: {}]   ;;  %s1609_s2 = inlined_call_operand.vmem [shape: f32[64,128], index: 2, kind: output, shape index: {0}]   ;;  %s1610_s3 = inlined_call_operand.vmem [shape: f32[1,1,128], index: 3, kind: output, shape index: {1}]   ;;  %s1611_s4 = inlined_call_operand.vmem [shape: f32[1,1,128], index: 4, kind: output, shape index: {2}]  }
   0x1   :  { %v1184_v0 = vld [vmem:[%s1607_s1 + $0x78] sm:$0xff]   ;;  %v1188_v4 = vld [vmem:[%s1607_s1 + $0x70] sm:$0xff]   ;;  %v1192_v8 = vld [vmem:[%s1607_s1 + $0x68] sm:$0xff]  }
   0x2   :  { %v1185_v1 = vld [vmem:[%s1607_s1 + $0xf8] sm:$0xff]   ;;  %1034 = vmatprep.subr.bf16.mxu0 %v1184_v0  ;;  %v1189_v5 = vld [vmem:[%s1607_s1 + $0xf0] sm:$0xff]   ;;  %v1193_v9 = vld [vmem:[%s1607_s1 + $0xe8] sm:$0xff]  }
   0x3   :  { %v1186_v2 = vld [vmem:[%s1607_s1 + $0x38] sm:$0xff]   ;;  %1074 = vmatprep.subr.bf16.mxu1 %v1185_v1  ;;  %v1190_v6 = vld [vmem:[%s1607_s1 + $0x30] sm:$0xff]   ;;  %v1194_v10 = vld [vmem:[%s1607_s1 + $0x28] sm:$0xff]  }
   0x4   :  { %v1187_v3 = vld [vmem:[%s1607_s1 + $0xb8] sm:$0xff]   ;;  %1035 = vmatpush3.bf16.msra.mxu0 %v1186_v2  ;;  %v1191_v7 = vld [vmem:[%s1607_s1 + $0xb0] sm:$0xff]   ;;  %v1195_v11 = vld [vmem:[%s1607_s1 + $0xa8] sm:$0xff]  }
   0x5   :  { %1075 = vmatpush3.bf16.msra.mxu1 %v1187_v3  ;;  %1036 = vmatprep.subr.bf16.mxu0 %v1188_v4  ;;  %v1196_v12 = vld [vmem:[%s1607_s1 + $0x60] sm:$0xff]   ;;  %v1200_v16 = vld [vmem:[%s1607_s1 + $0x58] sm:$0xff]   ;;  %v1204_v20 = vld [vmem:[%s1607_s1 + $0x50] sm:$0xff]  }
   0x6   :  { %1076 = vmatprep.subr.bf16.mxu1 %v1189_v5  ;;  %v1197_v13 = vld [vmem:[%s1607_s1 + $0xe0] sm:$0xff]   ;;  %v1201_v17 = vld [vmem:[%s1607_s1 + $0xd8] sm:$0xff]   ;;  %v1205_v21 = vld [vmem:[%s1607_s1 + $0xd0] sm:$0xff]  }
   0x7   :  { %v1198_v14 = vld [vmem:[%s1607_s1 + $0x20] sm:$0xff]   ;;  %v1202_v18 = vld [vmem:[%s1607_s1 + $0x18] sm:$0xff]   ;;  %v1206_v22 = vld [vmem:[%s1607_s1 + $0x10] sm:$0xff]  }
   0x8   :  { %1037 = vmatpush3.bf16.msra.mxu0 %v1190_v6  ;;  %v1199_v15 = vld [vmem:[%s1607_s1 + $0xa0] sm:$0xff]   ;;  %v1203_v19 = vld [vmem:[%s1607_s1 + $0x98] sm:$0xff]   ;;  %v1207_v23 = vld [vmem:[%s1607_s1 + $0x90] sm:$0xff]  }
   0x9   :  { %1077 = vmatpush3.bf16.msra.mxu1 %v1191_v7  ;;  %1038 = vmatprep.subr.bf16.mxu0 %v1192_v8  ;;  %v1208_v24 = vld [vmem:[%s1607_s1 + $0x48] sm:$0xff]   ;;  %v1212_v28 = vld [vmem:[%s1607_s1 + $0x40] sm:$0xff]   ;;  %v1222_v36 = vld [vmem:[%s1607_s1 + $0x178] sm:$0xff]  }
   0xa   :  { %1078 = vmatprep.subr.bf16.mxu1 %v1193_v9  ;;  %v1209_v25 = vld [vmem:[%s1607_s1 + $0xc8] sm:$0xff]   ;;  %v1213_v29 = vld [vmem:[%s1607_s1 + $0xc0] sm:$0xff]   ;;  %v1223_v37 = vld [vmem:[%s1607_s1 + $0x138] sm:$0xff]  }
   0xb   :  { %v1210_v26 = vld [vmem:[%s1607_s1 + $0x8] sm:$0xff]   ;;  %v1214_v30 = vld [vmem:[%s1607_s1] sm:$0xff]   ;;  %v1224_v38 = vld [vmem:[%s1607_s1 + $0x170] sm:$0xff]  }
   0xc   :  { %1039 = vmatpush3.bf16.msra.mxu0 %v1194_v10  ;;  %v1211_v27 = vld [vmem:[%s1607_s1 + $0x88] sm:$0xff]   ;;  %v1215_v31 = vld [vmem:[%s1607_s1 + $0x80] sm:$0xff]   ;;  %v1225_v39 = vld [vmem:[%s1607_s1 + $0x130] sm:$0xff]  }
   0xd   :  { %1079 = vmatpush3.bf16.msra.mxu1 %v1195_v11  ;;  %1040 = vmatprep.subr.bf16.mxu0 %v1196_v12  ;;  %v1216_v32 = vld [vmem:[%s1608_s0] ss:$28 sps:$4 sm:$0xff]   ;;  %v1219_v34 = vld [vmem:[%s1608_s0 + $0x8] ss:$28 sps:$4 sm:$0xff]   ;;  %v1230_v42 = vld [vmem:[%s1608_s0 + $0x38] ss:$28 sps:$4 sm:$0xff]  }
   0xe   :  { %1080 = vmatprep.subr.bf16.mxu1 %v1197_v13  ;;  %v1218_v33 = vld [vmem:[%s1608_s0 + $0x4] ss:$28 sps:$4 sm:$0xff]   ;;  %v1221_v35 = vld [vmem:[%s1608_s0 + $0xc] ss:$28 sps:$4 sm:$0xff]   ;;  %v1226_v40 = vld [vmem:[%s1608_s0 + $0x3c] ss:$28 sps:$4 sm:$0xff]  }
   0xf   :  { %664 = vmatprep.mubr.bf16.mxu0 %v1218_v33  ;;  %729 = vmatprep.mubr.bf16.mxu1 %v1221_v35  ;;  %v1228_v41 = vld [vmem:[%s1608_s0 + $0x44] ss:$28 sps:$4 sm:$0xff]   ;;  %v1232_v44 = vld [vmem:[%s1607_s1 + $0x168] sm:$0xff]   ;;  %v1237_v49 = vld [vmem:[%s1608_s0 + $0x74] ss:$28 sps:$4 sm:$0xff]  }
  0x10   :  { %1041 = vmatpush3.bf16.msra.mxu0 %v1198_v14  ;;  %v1231_v43 = vld [vmem:[%s1608_s0 + $0x40] ss:$28 sps:$4 sm:$0xff]   ;;  %v1233_v45 = vld [vmem:[%s1607_s1 + $0x128] sm:$0xff]   ;;  %v1242_v52 = vld [vmem:[%s1608_s0 + $0x78] ss:$28 sps:$4 sm:$0xff]  }
  0x11   :  { %1081 = vmatpush3.bf16.msra.mxu1 %v1199_v15  ;;  %1042 = vmatprep.subr.bf16.mxu0 %v1200_v16  ;;  %v1234_v46 = vld [vmem:[%s1607_s1 + $0x160] sm:$0xff]   ;;  %v1235_v47 = vld [vmem:[%s1607_s1 + $0x1a8] sm:$0xff]   ;;  %v1239_v50 = vld [vmem:[%s1608_s0 + $0x7c] ss:$28 sps:$4 sm:$0xff]  }
  0x12   :  { %1082 = vmatprep.subr.bf16.mxu1 %v1201_v17  ;;  %v1236_v48 = vld [vmem:[%s1607_s1 + $0x120] sm:$0xff]   ;;  %v1241_v51 = vld [vmem:[%s1608_s0 + $0x70] ss:$28 sps:$4 sm:$0xff]   ;;  %v1243_v53 = vld [vmem:[%s1607_s1 + $0x158] sm:$0xff]  }
  0x13   :  { %v1244_v54 = vld [vmem:[%s1607_s1 + $0x1a0] sm:$0xff]   ;;  %v1245_v55 = vld [vmem:[%s1607_s1 + $0x118] sm:$0xff]   ;;  %v1246_v56 = vld [vmem:[%s1607_s1 + $0x150] sm:$0xff]  }
  0x14   :  { %1043 = vmatpush3.bf16.msra.mxu0 %v1202_v18  ;;  %v1247_v57 = vld [vmem:[%s1607_s1 + $0x198] sm:$0xff]   ;;  %v1248_v58 = vld [vmem:[%s1607_s1 + $0x110] sm:$0xff]   ;;  %v1249_v59 = vld [vmem:[%s1608_s0 + $0xac] ss:$28 sps:$4 sm:$0xff]  }
  0x15   :  { %1083 = vmatpush3.bf16.msra.mxu1 %v1203_v19  ;;  %1044 = vmatprep.subr.bf16.mxu0 %v1204_v20  ;;  %v1251_v60 = vld [vmem:[%s1608_s0 + $0xb4] ss:$28 sps:$4 sm:$0xff]   ;;  %v1253_v61 = vld [vmem:[%s1608_s0 + $0xa8] ss:$28 sps:$4 sm:$0xff]   ;;  %v1274_v14 = vld [vmem:[%s1608_s0 + $0xc0] ss:$28 sps:$4 sm:$0xff]  }
  0x16   :  { %1084 = vmatprep.subr.bf16.mxu1 %v1205_v21  ;;  %v1254_v62 = vld [vmem:[%s1608_s0 + $0xb0] ss:$28 sps:$4 sm:$0xff]   ;;  %v1258_v2 = vld [vmem:[%s1607_s1 + $0x140] sm:$0xff]   ;;  %v1265_v8 = vld [vmem:[%s1608_s0 + $0x18] ss:$28 sps:$4 sm:$0xff]  }
  0x17   :  { %v1255_v63 = vld [vmem:[%s1607_s1 + $0x148] sm:$0xff]   ;;  %v1256_v0 = vld [vmem:[%s1607_s1 + $0x190] sm:$0xff]   ;;  %v1260_v4 = vld [vmem:[%s1607_s1 + $0x100] sm:$0xff]  }
  0x18   :  { %1045 = vmatpush3.bf16.msra.mxu0 %v1206_v22  ;;  %v1257_v1 = vld [vmem:[%s1607_s1 + $0x108] sm:$0xff]   ;;  %v1263_v6 = vld [vmem:[%s1608_s0 + $0x14] ss:$28 sps:$4 sm:$0xff]   ;;  %v1264_v7 = vld [vmem:[%s1607_s1 + $0x180] sm:$0xff]  }
  0x19   :  { %1085 = vmatpush3.bf16.msra.mxu1 %v1207_v23  ;;  %1046 = vmatprep.subr.bf16.mxu0 %v1208_v24  ;;  %v1259_v3 = vld [vmem:[%s1607_s1 + $0x188] sm:$0xff]   ;;  %v1270_v13 = vld [vmem:[%s1608_s0 + $0x84] ss:$28 sps:$4 sm:$0xff]   ;;  %v1275_v16 = vld [vmem:[%s1608_s0 + $0xbc] ss:$28 sps:$4 sm:$0xff]  }
  0x1a   :  { %1086 = vmatprep.subr.bf16.mxu1 %v1209_v25  ;;  %v1261_v5 = vld [vmem:[%s1608_s0 + $0x10] ss:$28 sps:$4 sm:$0xff]   ;;  %v1273_v11 = vld [vmem:[%s1608_s0 + $0x88] ss:$28 sps:$4 sm:$0xff]   ;;  %v1272_v15 = vld [vmem:[%s1608_s0 + $0x80] ss:$28 sps:$4 sm:$0xff]  }
  0x1b   :  { %v1267_v9 = vld [vmem:[%s1608_s0 + $0x4c] ss:$28 sps:$4 sm:$0xff]   ;;  %v1277_v17 = vld [vmem:[%s1608_s0 + $0xb8] ss:$28 sps:$4 sm:$0xff]  }
  0x1c   :  { %1047 = vmatpush3.bf16.msra.mxu0 %v1210_v26  ;;  %v1266_v10 = vld [vmem:[%s1608_s0 + $0x50] ss:$28 sps:$4 sm:$0xff]   ;;  %v1269_v12 = vld [vmem:[%s1608_s0 + $0x48] ss:$28 sps:$4 sm:$0xff]  }
  0x1d   :  { %1087 = vmatpush3.bf16.msra.mxu1 %v1211_v27  ;;  %1048 = vmatprep.subr.bf16.mxu0 %v1212_v28 }
  0x1e   :  { %1088 = vmatprep.subr.bf16.mxu1 %v1213_v29 }
  0x20   :  { %1049 = vmatpush3.bf16.msra.mxu0 %v1214_v30 }
  0x21   :  { %1089 = vmatpush3.bf16.msra.mxu1 %v1215_v31  ;;  %1114 = vmatprep.subr.bf16.mxu0 %v1222_v36 }
  0x22   :  { %1164 = vmatprep.subr.bf16.mxu1 %v1235_v47 }
  0x23   :  { %665 = vmatmul.mubr.bf16.vlgmr.msra.gmra.mxu0 %v1216_v32 }
  0x24   :  { %730 = vmatmul.mubr.bf16.vlgmr.msra.gmra.mxu1 %v1219_v34  ;;  %1115 = vmatpush3.bf16.msra.mxu0 %v1223_v37 }
  0x25   :  { %1116 = vmatprep.subr.bf16.mxu0 %v1224_v38  ;;  %672 = vmatprep.mubr.bf16.mxu0 %v1226_v40 }
  0x26   :  { %737 = vmatprep.mubr.bf16.mxu1 %v1228_v41  ;;  %1165 = vmatpush3.bf16.msra.mxu1 %v1235_v47 }
  0x27   :  { %1166 = vmatprep.subr.bf16.mxu1 %v1244_v54 }
  0x28   :  { %1117 = vmatpush3.bf16.msra.mxu0 %v1225_v39 }
  0x29   :  { %1118 = vmatprep.subr.bf16.mxu0 %v1232_v44 }
  0x2a   :  { %1167 = vmatpush3.bf16.msra.mxu1 %v1244_v54 }
  0x2b   :  { %673 = vmatmul.mubr.bf16.gmra.mxu0 %v1230_v42  ;;  %1168 = vmatprep.subr.bf16.mxu1 %v1247_v57 }
  0x2c   :  { %738 = vmatmul.mubr.bf16.gmra.mxu1 %v1231_v43  ;;  %1119 = vmatpush3.bf16.msra.mxu0 %v1233_v45 }
  0x2d   :  { %1120 = vmatprep.subr.bf16.mxu0 %v1234_v46  ;;  %680 = vmatprep.mubr.bf16.mxu0 %v1237_v49 }
  0x2e   :  { %745 = vmatprep.mubr.bf16.mxu1 %v1239_v50  ;;  %1169 = vmatpush3.bf16.msra.mxu1 %v1247_v57 }
  0x2f   :  { %1170 = vmatprep.subr.bf16.mxu1 %v1256_v0 }
  0x30   :  { %1121 = vmatpush3.bf16.msra.mxu0 %v1236_v48 }
  0x31   :  { %1122 = vmatprep.subr.bf16.mxu0 %v1243_v53 }
  0x32   :  { %1171 = vmatpush3.bf16.msra.mxu1 %v1256_v0 }
  0x33   :  { %681 = vmatmul.mubr.bf16.gmra.mxu0 %v1241_v51  ;;  %1172 = vmatprep.subr.bf16.mxu1 %v1259_v3 }
  0x34   :  { %746 = vmatmul.mubr.bf16.gmra.mxu1 %v1242_v52  ;;  %1123 = vmatpush3.bf16.msra.mxu0 %v1245_v55 }
  0x35   :  { %1124 = vmatprep.subr.bf16.mxu0 %v1246_v56  ;;  %688 = vmatprep.mubr.bf16.mxu0 %v1249_v59 }
  0x36   :  { %753 = vmatprep.mubr.bf16.mxu1 %v1251_v60  ;;  %1173 = vmatpush3.bf16.msra.mxu1 %v1259_v3 }
  0x37   :  { %1174 = vmatprep.subr.bf16.mxu1 %v1264_v7 }
  0x38   :  { %1125 = vmatpush3.bf16.msra.mxu0 %v1248_v58 }
  0x39   :  { %1126 = vmatprep.subr.bf16.mxu0 %v1255_v63 }
  0x3a   :  { %1175 = vmatpush3.bf16.msra.mxu1 %v1264_v7 }
  0x3b   :  { %689 = vmatmul.mubr.bf16.gmra.mxu0 %v1253_v61 }
  0x3c   :  { %754 = vmatmul.mubr.bf16.gmra.mxu1 %v1254_v62  ;;  %1127 = vmatpush3.bf16.msra.mxu0 %v1257_v1 }
  0x3d   :  { %1128 = vmatprep.subr.bf16.mxu0 %v1258_v2  ;;  %794 = vmatprep.mubr.bf16.mxu0 %v1263_v6 }
  0x3e   :  { %1176 = vmatprep.mubr.msk.bf16.mxu1 %vm619_vm0, %v1265_v8 }
  0x40   :  { %1129 = vmatpush3.bf16.msra.mxu0 %v1260_v4 }
  0x43   :  { %795 = vmatmul.mubr.bf16.vlgmr.msra.gmra.mxu0 %v1261_v5 }
  0x44   :  { %802 = vmatprep.mubr.bf16.mxu0 %v1267_v9  ;;  %1177 = vmatmul.mubr.msk.bf16.vlgmr.msra.gmra.mxu1 %vm619_vm0, %v1266_v10 }
  0x45   :  { %1180 = vmatprep.mubr.msk.bf16.mxu1 %vm619_vm0, %v1273_v11 }
  0x4b   :  { %803 = vmatmul.mubr.bf16.gmra.mxu0 %v1269_v12 }
  0x4c   :  { %810 = vmatprep.mubr.bf16.mxu0 %v1270_v13  ;;  %1181 = vmatmul.mubr.msk.bf16.gmra.mxu1 %vm619_vm0, %v1274_v14 }
  0x53   :  { %811 = vmatmul.mubr.bf16.gmra.mxu0 %v1272_v15 }
  0x54   :  { %818 = vmatprep.mubr.bf16.mxu0 %v1275_v16 }
  0x5b   :  { %819 = vmatmul.mubr.bf16.gmra.mxu0 %v1277_v17 }
  0xe3   :  { %v1050_v18 = vpop.f32.mrf.mxu0 }
  0xe4   :  { %v1090_v19 = vpop.f32.mrf.mxu1 }
  0xe5   :  { %v1051_v20 = vpop.f32.mrf.mxu0 }
  0xe6   :  { %v1091_v21 = vpop.f32.mrf.mxu1  ;;  %v1052_v49 = vadd.f32 %v1051_v20, %v1050_v18 }
  0xe7   :  { %v1053_v22 = vpop.f32.mrf.mxu0  ;;  %v1092_v50 = vadd.f32 %v1091_v21, %v1090_v19 }
  0xe8   :  { %v1093_v23 = vpop.f32.mrf.mxu1 }
  0xe9   :  { %v1054_v24 = vpop.f32.mrf.mxu0  ;;  %v732_v56 = vadd.f32 %v1092_v50, %v1052_v49 }
  0xea   :  { %v1094_v25 = vpop.f32.mrf.mxu1  ;;  %v1055_v52 = vadd.f32 %v1054_v24, %v1053_v22 }
  0xeb   :  { %v1056_v26 = vpop.f32.mrf.mxu0  ;;  %v1095_v53 = vadd.f32 %v1094_v25, %v1093_v23 }
  0xec   :  { %v1096_v27 = vpop.f32.mrf.mxu1 }
  0xed   :  { %v1057_v28 = vpop.f32.mrf.mxu0  ;;  %v735_v61 = vadd.f32 %v1095_v53, %v1055_v52 }
  0xee   :  { %v1097_v29 = vpop.f32.mrf.mxu1  ;;  %v1058_v0 = vadd.f32 %v1057_v28, %v1056_v26 }
  0xef   :  { %v1059_v30 = vpop.f32.mrf.mxu0  ;;  %v1098_v1 = vadd.f32 %v1097_v29, %v1096_v27 }
  0xf0   :  { %v1099_v31 = vpop.f32.mrf.mxu1 }
  0xf1   :  { %v1060_v32 = vpop.f32.mrf.mxu0  ;;  %v740_v11 = vadd.f32 %v1098_v1, %v1058_v0 }
  0xf2   :  { %v1100_v33 = vpop.f32.mrf.mxu1  ;;  %v1061_v7 = vadd.f32 %v1060_v32, %v1059_v30 }
  0xf3   :  { %v1062_v34 = vpop.f32.mrf.mxu0  ;;  %v1101_v8 = vadd.f32 %v1100_v33, %v1099_v31 }
  0xf4   :  { %v1102_v35 = vpop.f32.mrf.mxu1 }
  0xf5   :  { %v1063_v36 = vpop.f32.mrf.mxu0  ;;  %v743_v16 = vadd.f32 %v1101_v8, %v1061_v7 }
  0xf6   :  { %v1103_v37 = vpop.f32.mrf.mxu1  ;;  %v1064_v19 = vadd.f32 %v1063_v36, %v1062_v34 }
  0xf7   :  { %v1065_v38 = vpop.f32.mrf.mxu0  ;;  %v1104_v20 = vadd.f32 %v1103_v37, %v1102_v35 }
  0xf8   :  { %v1105_v39 = vpop.f32.mrf.mxu1 }
  0xf9   :  { %v1066_v40 = vpop.f32.mrf.mxu0  ;;  %v748_v29 = vadd.f32 %v1104_v20, %v1064_v19 }
  0xfa   :  { %v1106_v41 = vpop.f32.mrf.mxu1  ;;  %v1067_v25 = vadd.f32 %v1066_v40, %v1065_v38 }
  0xfb   :  { %v1553_v42 = vpop.f32.mrf.mxu0  ;;  %v1107_v26 = vadd.f32 %v1106_v41, %v1105_v39 }
  0xfc   :  { %v1555_v43 = vpop.f32.mrf.mxu1 }
  0xfd   :  { %v1557_v44 = vpop.f32.mrf.mxu0  ;;  %v751_v34 = vadd.f32 %v1107_v26, %v1067_v25 }
  0xfe   :  { %v1559_v45 = vpop.f32.mrf.mxu1  ;;  %v1070_v49 = vadd.f32 %v1557_v44, %v1553_v42 }
  0xff   :  { %v1561_v46 = vpop.f32.mrf.mxu0  ;;  %v1110_v38 = vadd.f32 %v1559_v45, %v1555_v43 }
 0x100   :  { %v1565_v48 = vpop.f32.mrf.mxu1 }
 0x101   :  { %v1563_v47 = vpop.f32.mrf.mxu0 }
 0x102   :  { %v1567_v54 = vpop.f32.mrf.mxu1 }
 0x103   :  { %v1130_v51 = vpop.f32.mrf.mxu0  ;;  %v1113_v42 = vadd.f32 %v1567_v54, %v1565_v48 }
 0x104   :  { %v1178_v59 = vpop.f32.mrf.mxu1 }
 0x105   :  { %v1131_v55 = vpop.f32.mrf.mxu0 }
 0x106   :  { %v1132_v57 = vadd.f32 %v1131_v55, %v1130_v51  ;;  %v861_v63 = vpop.f32.mrf.mxu1  ;;  %v1073_v55 = vadd.f32 %v1563_v47, %v1561_v46 }
 0x107   :  { %v1133_v58 = vpop.f32.mrf.mxu0 }
 0x108   :  { %v797_v60 = vadd.f32 %v1132_v57, %v732_v56  ;;  %v1179_v5 = vpop.f32.mrf.mxu1  ;;  %v756_v57 = vadd.f32 %v1110_v38, %v1070_v49  ;;  %v759_v47 = vadd.f32 %v1113_v42, %v1073_v55 }
 0x109   :  { %v1134_v62 = vpop.f32.mrf.mxu0 }
 0x10a   :  { %v1135_v2 = vadd.f32 %v1134_v62, %v1133_v58  ;;  %v862_v3 = vadd.f32 %v861_v63, %v797_v60  ;;  %v864_v10 = vpop.f32.mrf.mxu1 }
 0x10b   :  { %v1136_v4 = vpop.f32.mrf.mxu0 }
 0x10c   :  { %892 = vst [vmem:[%s1609_s2] sm:$0xff] %v862_v3  ;;  %v800_v6 = vadd.f32 %v1135_v2, %v735_v61  ;;  %v1182_v18 = vpop.f32.mrf.mxu1  ;;  %v913_v41 = vmul.f32 %v862_v3, %v862_v3 }
 0x10d   :  { %v1137_v9 = vpop.f32.mrf.mxu0 }
 0x10e   :  { %v1138_v12 = vadd.f32 %v1137_v9, %v1136_v4  ;;  %v865_v13 = vadd.f32 %v864_v10, %v800_v6  ;;  %v877_v28 = vpop.f32.mrf.mxu1 }
 0x10f   :  { %v1139_v14 = vpop.f32.mrf.mxu0 }
 0x110   :  { %v805_v15 = vadd.f32 %v1138_v12, %v740_v11  ;;  %893 = vst [vmem:[%s1609_s2 + $0x8] sm:$0xff] %v865_v13  ;;  %v914_v35 = vmul.f32 %v865_v13, %v865_v13  ;;  %v1183_v37 = vpop.f32.mrf.mxu1  ;;  %v900_v52 = vadd.f32 %v865_v13, %v862_v3 }
 0x111   :  { %v1140_v17 = vpop.f32.mrf.mxu0 }
 0x112   :  { %v870_v21 = vadd.f32 %v1178_v59, %v805_v15  ;;  %v1141_v22 = vadd.f32 %v1140_v17, %v1139_v14  ;;  %v921_v44 = vadd.f32 %v914_v35, %v913_v41  ;;  %v880_v43 = vpop.f32.mrf.mxu1 }
 0x113   :  { %v1142_v23 = vpop.f32.mrf.mxu0 }
 0x114   :  { %894 = vst [vmem:[%s1609_s2 + $0x10] sm:$0xff] %v870_v21  ;;  %v808_v24 = vadd.f32 %v1141_v22, %v743_v16  ;;  %v915_v50 = vmul.f32 %v870_v21, %v870_v21  ;;  %v901_v58 = vadd.f32 %v900_v52, %v870_v21 }
 0x115   :  { %v1143_v27 = vpop.f32.mrf.mxu0 }
 0x116   :  { %v873_v30 = vadd.f32 %v1179_v5, %v808_v24  ;;  %v1144_v31 = vadd.f32 %v1143_v27, %v1142_v23  ;;  %v922_v61 = vadd.f32 %v921_v44, %v915_v50 }
 0x117   :  { %v1145_v32 = vpop.f32.mrf.mxu0 }
 0x118   :  { %895 = vst [vmem:[%s1609_s2 + $0x18] sm:$0xff] %v873_v30  ;;  %v813_v33 = vadd.f32 %v1144_v31, %v748_v29  ;;  %v916_v56 = vmul.f32 %v873_v30, %v873_v30  ;;  %v902_v63 = vadd.f32 %v901_v58, %v873_v30 }
 0x119   :  { %v1146_v36 = vpop.f32.mrf.mxu0 }
 0x11a   :  { %v878_v39 = vadd.f32 %v877_v28, %v813_v33  ;;  %v1147_v40 = vadd.f32 %v1146_v36, %v1145_v32  ;;  %v923_v1 = vadd.f32 %v922_v61, %v916_v56 }
 0x11b   :  { %v1148_v51 = vpop.f32.mrf.mxu0 }
 0x11c   :  { %896 = vst [vmem:[%s1609_s2 + $0x20] sm:$0xff] %v878_v39  ;;  %v816_v53 = vadd.f32 %v1147_v40, %v751_v34  ;;  %v917_v0 = vmul.f32 %v878_v39, %v878_v39  ;;  %v903_v54 = vadd.f32 %v902_v63, %v878_v39 }
 0x11d   :  { %v1149_v45 = vpop.f32.mrf.mxu0 }
 0x11e   :  { %v881_v59 = vadd.f32 %v880_v43, %v816_v53  ;;  %v1150_v60 = vadd.f32 %v1149_v45, %v1148_v51  ;;  %v924_v5 = vadd.f32 %v923_v1, %v917_v0 }
 0x11f   :  { %v1151_v62 = vpop.f32.mrf.mxu0 }
 0x120   :  { %897 = vst [vmem:[%s1609_s2 + $0x28] sm:$0xff] %v881_v59  ;;  %v821_v46 = vadd.f32 %v1150_v60, %v756_v57  ;;  %v918_v2 = vmul.f32 %v881_v59, %v881_v59  ;;  %v904_v6 = vadd.f32 %v903_v54, %v881_v59 }
 0x121   :  { %v1152_v48 = vpop.f32.mrf.mxu0 }
 0x122   :  { %v886_v3 = vadd.f32 %v1182_v18, %v821_v46  ;;  %v1153_v4 = vadd.f32 %v1152_v48, %v1151_v62  ;;  %v925_v9 = vadd.f32 %v924_v5, %v918_v2 }
 0x124   :  { %898 = vst [vmem:[%s1609_s2 + $0x30] sm:$0xff] %v886_v3  ;;  %v919_v7 = vmul.f32 %v886_v3, %v886_v3  ;;  %v824_v8 = vadd.f32 %v1153_v4, %v759_v47  ;;  %v905_v10 = vadd.f32 %v904_v6, %v886_v3 }
 0x126   :  { %v889_v11 = vadd.f32 %v1183_v37, %v824_v8  ;;  %v926_v12 = vadd.f32 %v925_v9, %v919_v7 }
 0x128   :  { %899 = vst [vmem:[%s1609_s2 + $0x38] sm:$0xff] %v889_v11  ;;  %v906_v13 = vadd.f32 %v905_v10, %v889_v11  ;;  %v920_v14 = vmul.f32 %v889_v11, %v889_v11 }
 0x12a   :  { %v907_v15 = vrot.slane %v906_v13, 4  ;;  %v927_v16 = vadd.f32 %v926_v12, %v920_v14 }
 0x12c   :  { %v908_v17 = vadd.f32 %v907_v15, %v906_v13  ;;  %v928_v18 = vrot.slane %v927_v16, 4 }
 0x12e   :  { %v909_v19 = vrot.slane %v908_v17, 2  ;;  %v929_v20 = vadd.f32 %v928_v18, %v927_v16 }
 0x130   :  { %v910_v21 = vadd.f32 %v909_v19, %v908_v17  ;;  %v930_v22 = vrot.slane %v929_v20, 2 }
 0x132   :  { %v911_v23 = vrot.slane %v910_v21, 1  ;;  %v931_v24 = vadd.f32 %v930_v22, %v929_v20 }
 0x134   :  { %v912_v25 = vadd.f32 %v911_v23, %v910_v21  ;;  %v932_v26 = vrot.slane %v931_v24, 1 }
 0x136   :  { %v933_v27 = vadd.f32 %v932_v26, %v931_v24  ;;  %934 = vst [vmem:[%s1610_s3] sm:$0x1] %v912_v25 }
 0x138   :  { %935 = vst [vmem:[%s1611_s4] sm:$0x1] %v933_v27 }

// kernel: _lambda_.20
= control target key start
LH: loop header
LB: loop body
LE: loop exit
PB: predicated region body
PF: predicated region fallthrough
CT: control target
= control target key end

     0   :  { %s74_s0 = inlined_call_operand.vmem [shape: f32[8,128], index: 0, kind: input, shape index: {}]   ;;  %s75_s1 = inlined_call_operand.vmem [shape: f32[1,128], index: 1, kind: input, shape index: {}]   ;;  %s76_s2 = inlined_call_operand.vmem [shape: f32[1,128], index: 2, kind: input, shape index: {}]   ;;  %s77_s3 = inlined_call_operand.vmem [shape: bf16[8,128], index: 3, kind: output, shape index: {}]  }
   0x1   :  { %v14_v0 = vld [vmem:[%s74_s0] sm:$0xff] }
   0x2   :  { %v40_v1 = vld [vmem:[%s75_s1] ss:$0 sm:$0xff] }
   0x3   :  { %v41_v2 = vld [vmem:[%s76_s2] ss:$0 sm:$0xff]  ;;  %v22_v3 = vmul.f32 %v40_v1, %v14_v0 }
   0x5   :  { %v30_v4 = vadd.f32 %v41_v2, %v22_v3 }
   0x7   :  { %vm31_vm0 = vcmp.gt.f32.partialorder %v30_v4, 0.0  ;;  %v32_v5 = vmul.f32 0.2, %v30_v4 }
   0x9   :  { %v33_v6 = vsel %vm31_vm0, %v30_v4, %v32_v5 }
   0xa   :  { %v34_v7 = vpack.c.bf16 %v33_v6, %v33_v6 }
   0xc   :  { %35 = vst [vmem:[%s77_s3] sm:$0xf] %v34_v7 }

// kernel: _lambda_.21
= control target key start
LH: loop header
LB: loop body
LE: loop exit
PB: predicated region body
PF: predicated region fallthrough
CT: control target
= control target key end

     0   :  { %v139_v0 = vmov 0.0   ;;  %vm140_vm0 = vmmov 0   ;;  %vm55_vm1 = vcmask 523264   ;;  %s182_s1 = inlined_call_operand.vmem [shape: bf16[64,128], index: 1, kind: input, shape index: {}]   ;;  %s183_s0 = inlined_call_operand.vmem [shape: bf16[8,64], index: 0, kind: input, shape index: {}]   ;;  %s184_s2 = inlined_call_operand.vmem [shape: f32[1,128], index: 2, kind: input, shape index: {}]   ;;  %s185_s3 = inlined_call_operand.vmem [shape: f32[8,128], index: 3, kind: output, shape index: {}]  }
   0x1   :  { %119 = vmatprep.subr.bf16.mxu0 %v139_v0  ;;  %v133_v1 = vld [vmem:[%s182_s1 + $0x18] sm:$0xff]   ;;  %127 = vmatprep.mubr.msk.bf16.mxu0 %vm140_vm0, %v139_v0  ;;  %v134_v2 = vld [vmem:[%s182_s1 + $0x10] sm:$0xff]   ;;  %v135_v3 = vld [vmem:[%s182_s1 + $0x8] sm:$0xff]  }
   0x2   :  { %120 = vmatpush3.bf16.msra.mxu0 %v133_v1  ;;  %v136_v4 = vld [vmem:[%s182_s1] sm:$0xff]  }
   0x3   :  { %121 = vmatprep.subr.bf16.mxu0 %v139_v0  ;;  %v15_v5 = vld [vmem:[%s183_s0] sm:$0xf] }
   0x4   :  { %v108_v6 = vld [vmem:[%s184_s2] ss:$0 sm:$0xff] }
   0x6   :  { %122 = vmatpush3.bf16.msra.mxu0 %v134_v2 }
   0x7   :  { %123 = vmatprep.subr.bf16.mxu0 %v139_v0 }
   0xa   :  { %124 = vmatpush3.bf16.msra.mxu0 %v135_v3 }
   0xb   :  { %125 = vmatprep.subr.bf16.mxu0 %v139_v0 }
   0xe   :  { %126 = vmatpush3.bf16.msra.mxu0 %v136_v4 }
  0x11   :  { %128 = vmatmul.mubr.msk.bf16.vlgmr.msra.gmra.mxu0 %vm55_vm1, %v15_v5 }
  0xd1   :  { %v93_v7 = vpop.f32.mrf.mxu0 }
  0xd2   :  { %v94_v8 = vadd.f32 %v108_v6, %v93_v7 }
  0xd3   :  { %v129_v9 = vpop.f32.mrf.mxu0 }
  0xd4   :  { %v99_v10 = vmul.f32 0.5, %v94_v8 }
  0xd5   :  { %v96_v11 = vpop.f32.mrf.mxu0 }
  0xd6   :  { %137 = vtanh.f32 %v99_v10 }
  0xd7   :  { %v130_v12 = vpop.f32.mrf.mxu0 }
  0xe3   :  { %v138_v13 = vpop.eup %137 }
  0xe4   :  { %v101_v14 = vadd.f32 1.0, %v138_v13 }
  0xe6   :  { %v102_v15 = vmul.f32 0.5, %v101_v14 }
  0xe8   :  { %103 = vst [vmem:[%s185_s3] sm:$0xff] %v102_v15 }

// kernel: _lambda_.19
= control target key start
LH: loop header
LB: loop body
LE: loop exit
PB: predicated region body
PF: predicated region fallthrough
CT: control target
= control target key end

     0   :  { %s1217_s1 = inlined_call_operand.vmem [shape: bf16[1024,128], index: 1, kind: input, shape index: {}]   ;;  %s1218_s0 = inlined_call_operand.vmem [shape: bf16[8,1024], index: 0, kind: input, shape index: {}]   ;;  %s1219_s2 = inlined_call_operand.vmem [shape: f32[8,128], index: 2, kind: output, shape index: {0}]   ;;  %s1220_s3 = inlined_call_operand.vmem [shape: f32[1,1,128], index: 3, kind: output, shape index: {1}]   ;;  %s1221_s4 = inlined_call_operand.vmem [shape: f32[1,1,128], index: 4, kind: output, shape index: {2}]  }
   0x1   :  { %v907_v0 = vld [vmem:[%s1217_s1 + $0x78] sm:$0xff]   ;;  %v911_v4 = vld [vmem:[%s1217_s1 + $0x70] sm:$0xff]   ;;  %v915_v8 = vld [vmem:[%s1217_s1 + $0x68] sm:$0xff]  }
   0x2   :  { %v908_v1 = vld [vmem:[%s1217_s1 + $0xf8] sm:$0xff]   ;;  %819 = vmatprep.subr.bf16.mxu0 %v907_v0  ;;  %v912_v5 = vld [vmem:[%s1217_s1 + $0xf0] sm:$0xff]   ;;  %v916_v9 = vld [vmem:[%s1217_s1 + $0xe8] sm:$0xff]  }
   0x3   :  { %v909_v2 = vld [vmem:[%s1217_s1 + $0x38] sm:$0xff]   ;;  %841 = vmatprep.subr.bf16.mxu1 %v908_v1  ;;  %v913_v6 = vld [vmem:[%s1217_s1 + $0x30] sm:$0xff]   ;;  %v917_v10 = vld [vmem:[%s1217_s1 + $0x28] sm:$0xff]  }
   0x4   :  { %v910_v3 = vld [vmem:[%s1217_s1 + $0xb8] sm:$0xff]   ;;  %820 = vmatpush3.bf16.msra.mxu0 %v909_v2  ;;  %v914_v7 = vld [vmem:[%s1217_s1 + $0xb0] sm:$0xff]   ;;  %v918_v11 = vld [vmem:[%s1217_s1 + $0xa8] sm:$0xff]  }
   0x5   :  { %842 = vmatpush3.bf16.msra.mxu1 %v910_v3  ;;  %821 = vmatprep.subr.bf16.mxu0 %v911_v4  ;;  %v919_v12 = vld [vmem:[%s1217_s1 + $0x60] sm:$0xff]   ;;  %v923_v16 = vld [vmem:[%s1217_s1 + $0x58] sm:$0xff]   ;;  %v927_v20 = vld [vmem:[%s1217_s1 + $0x50] sm:$0xff]  }
   0x6   :  { %843 = vmatprep.subr.bf16.mxu1 %v912_v5  ;;  %v920_v13 = vld [vmem:[%s1217_s1 + $0xe0] sm:$0xff]   ;;  %v924_v17 = vld [vmem:[%s1217_s1 + $0xd8] sm:$0xff]   ;;  %v928_v21 = vld [vmem:[%s1217_s1 + $0xd0] sm:$0xff]  }
   0x7   :  { %v921_v14 = vld [vmem:[%s1217_s1 + $0x20] sm:$0xff]   ;;  %v925_v18 = vld [vmem:[%s1217_s1 + $0x18] sm:$0xff]   ;;  %v929_v22 = vld [vmem:[%s1217_s1 + $0x10] sm:$0xff]  }
   0x8   :  { %822 = vmatpush3.bf16.msra.mxu0 %v913_v6  ;;  %v922_v15 = vld [vmem:[%s1217_s1 + $0xa0] sm:$0xff]   ;;  %v926_v19 = vld [vmem:[%s1217_s1 + $0x98] sm:$0xff]   ;;  %v930_v23 = vld [vmem:[%s1217_s1 + $0x90] sm:$0xff]  }
   0x9   :  { %844 = vmatpush3.bf16.msra.mxu1 %v914_v7  ;;  %823 = vmatprep.subr.bf16.mxu0 %v915_v8  ;;  %v931_v24 = vld [vmem:[%s1217_s1 + $0x48] sm:$0xff]   ;;  %v935_v28 = vld [vmem:[%s1217_s1 + $0x40] sm:$0xff]   ;;  %v943_v38 = vld [vmem:[%s1217_s1 + $0x178] sm:$0xff]  }
   0xa   :  { %845 = vmatprep.subr.bf16.mxu1 %v916_v9  ;;  %v932_v25 = vld [vmem:[%s1217_s1 + $0xc8] sm:$0xff]   ;;  %v936_v29 = vld [vmem:[%s1217_s1 + $0xc0] sm:$0xff]   ;;  %v944_v39 = vld [vmem:[%s1217_s1 + $0x1f8] sm:$0xff]  }
   0xb   :  { %v933_v26 = vld [vmem:[%s1217_s1 + $0x8] sm:$0xff]   ;;  %v937_v30 = vld [vmem:[%s1217_s1] sm:$0xff]   ;;  %v945_v40 = vld [vmem:[%s1217_s1 + $0x138] sm:$0xff]  }
   0xc   :  { %824 = vmatpush3.bf16.msra.mxu0 %v917_v10  ;;  %v934_v27 = vld [vmem:[%s1217_s1 + $0x88] sm:$0xff]   ;;  %v938_v31 = vld [vmem:[%s1217_s1 + $0x80] sm:$0xff]   ;;  %v946_v41 = vld [vmem:[%s1217_s1 + $0x1b8] sm:$0xff]  }
   0xd   :  { %846 = vmatpush3.bf16.msra.mxu1 %v918_v11  ;;  %825 = vmatprep.subr.bf16.mxu0 %v919_v12  ;;  %v15_v32 = vld [vmem:[%s1218_s0] sm:$0xff]  ;;  %v16_v33 = vld [vmem:[%s1218_s0 + $0x8] sm:$0xff]  ;;  %v947_v42 = vld [vmem:[%s1217_s1 + $0x170] sm:$0xff]  }
   0xe   :  { %847 = vmatprep.subr.bf16.mxu1 %v920_v13  ;;  %v747_v34 = vcombine.low %v15_v32, %v15_v32  ;;  %v748_v35 = vcombine.high %v15_v32, %v15_v32  ;;  %v749_v36 = vcombine.low %v16_v33, %v16_v33  ;;  %v750_v37 = vcombine.high %v16_v33, %v16_v33  ;;  %v948_v43 = vld [vmem:[%s1217_s1 + $0x1f0] sm:$0xff]   ;;  %v951_v46 = vld [vmem:[%s1217_s1 + $0x168] sm:$0xff]   ;;  %v955_v50 = vld [vmem:[%s1217_s1 + $0x160] sm:$0xff]  }
   0xf   :  { %v949_v44 = vld [vmem:[%s1217_s1 + $0x130] sm:$0xff]   ;;  %v952_v47 = vld [vmem:[%s1217_s1 + $0x1e8] sm:$0xff]   ;;  %v956_v51 = vld [vmem:[%s1217_s1 + $0x1e0] sm:$0xff]  }
  0x10   :  { %826 = vmatpush3.bf16.msra.mxu0 %v921_v14  ;;  %591 = vmatprep.mubr.bf16.mxu0 %v748_v35  ;;  %v950_v45 = vld [vmem:[%s1217_s1 + $0x1b0] sm:$0xff]   ;;  %v953_v48 = vld [vmem:[%s1217_s1 + $0x128] sm:$0xff]   ;;  %v957_v52 = vld [vmem:[%s1217_s1 + $0x120] sm:$0xff]  }
  0x11   :  { %848 = vmatpush3.bf16.msra.mxu1 %v922_v15  ;;  %827 = vmatprep.subr.bf16.mxu0 %v923_v16  ;;  %v954_v49 = vld [vmem:[%s1217_s1 + $0x1a8] sm:$0xff]   ;;  %v958_v53 = vld [vmem:[%s1217_s1 + $0x1a0] sm:$0xff]   ;;  %v959_v54 = vld [vmem:[%s1217_s1 + $0x158] sm:$0xff]  }
  0x12   :  { %849 = vmatprep.subr.bf16.mxu1 %v924_v17  ;;  %631 = vmatprep.mubr.bf16.mxu1 %v750_v37  ;;  %v960_v55 = vld [vmem:[%s1217_s1 + $0x1d8] sm:$0xff]   ;;  %v963_v58 = vld [vmem:[%s1217_s1 + $0x150] sm:$0xff]   ;;  %v967_v62 = vld [vmem:[%s1217_s1 + $0x148] sm:$0xff]  }
  0x13   :  { %v961_v56 = vld [vmem:[%s1217_s1 + $0x118] sm:$0xff]   ;;  %v964_v59 = vld [vmem:[%s1217_s1 + $0x1d0] sm:$0xff]   ;;  %v968_v63 = vld [vmem:[%s1217_s1 + $0x1c8] sm:$0xff]  }
  0x14   :  { %828 = vmatpush3.bf16.msra.mxu0 %v925_v18  ;;  %v962_v57 = vld [vmem:[%s1217_s1 + $0x198] sm:$0xff]   ;;  %v965_v60 = vld [vmem:[%s1217_s1 + $0x110] sm:$0xff]   ;;  %v969_v0 = vld [vmem:[%s1217_s1 + $0x108] sm:$0xff]  }
  0x15   :  { %850 = vmatpush3.bf16.msra.mxu1 %v926_v19  ;;  %829 = vmatprep.subr.bf16.mxu0 %v927_v20  ;;  %v966_v61 = vld [vmem:[%s1217_s1 + $0x190] sm:$0xff]   ;;  %v970_v1 = vld [vmem:[%s1217_s1 + $0x188] sm:$0xff]   ;;  %v971_v2 = vld [vmem:[%s1217_s1 + $0x140] sm:$0xff]  }
  0x16   :  { %851 = vmatprep.subr.bf16.mxu1 %v928_v21  ;;  %v972_v3 = vld [vmem:[%s1217_s1 + $0x1c0] sm:$0xff]   ;;  %v17_v6 = vld [vmem:[%s1218_s0 + $0x10] sm:$0xff]  ;;  %v18_v9 = vld [vmem:[%s1218_s0 + $0x18] sm:$0xff] }
  0x17   :  { %v973_v4 = vld [vmem:[%s1217_s1 + $0x100] sm:$0xff]   ;;  %v751_v7 = vcombine.low %v17_v6, %v17_v6  ;;  %v752_v8 = vcombine.high %v17_v6, %v17_v6  ;;  %v753_v10 = vcombine.low %v18_v9, %v18_v9  ;;  %v754_v11 = vcombine.high %v18_v9, %v18_v9 }
  0x18   :  { %830 = vmatpush3.bf16.msra.mxu0 %v929_v22  ;;  %v974_v5 = vld [vmem:[%s1217_s1 + $0x180] sm:$0xff]  }
  0x19   :  { %852 = vmatpush3.bf16.msra.mxu1 %v930_v23  ;;  %831 = vmatprep.subr.bf16.mxu0 %v931_v24 }
  0x1a   :  { %853 = vmatprep.subr.bf16.mxu1 %v932_v25 }
  0x1c   :  { %832 = vmatpush3.bf16.msra.mxu0 %v933_v26 }
  0x1d   :  { %854 = vmatpush3.bf16.msra.mxu1 %v934_v27  ;;  %833 = vmatprep.subr.bf16.mxu0 %v935_v28 }
  0x1e   :  { %855 = vmatprep.subr.bf16.mxu1 %v936_v29 }
  0x20   :  { %834 = vmatpush3.bf16.msra.mxu0 %v937_v30 }
  0x21   :  { %856 = vmatpush3.bf16.msra.mxu1 %v938_v31  ;;  %863 = vmatprep.subr.bf16.mxu0 %v943_v38 }
  0x22   :  { %885 = vmatprep.subr.bf16.mxu1 %v944_v39 }
  0x23   :  { %592 = vmatmul.mubr.bf16.vlgmr.msra.gmra.mxu0 %v747_v34 }
  0x24   :  { %632 = vmatmul.mubr.bf16.vlgmr.msra.gmra.mxu1 %v749_v36  ;;  %864 = vmatpush3.bf16.msra.mxu0 %v945_v40 }
  0x25   :  { %886 = vmatpush3.bf16.msra.mxu1 %v946_v41  ;;  %865 = vmatprep.subr.bf16.mxu0 %v947_v42 }
  0x26   :  { %887 = vmatprep.subr.bf16.mxu1 %v948_v43  ;;  %671 = vmatprep.mubr.bf16.mxu0 %v752_v8 }
  0x27   :  { %711 = vmatprep.mubr.bf16.mxu1 %v754_v11 }
  0x28   :  { %866 = vmatpush3.bf16.msra.mxu0 %v949_v44 }
  0x29   :  { %888 = vmatpush3.bf16.msra.mxu1 %v950_v45  ;;  %867 = vmatprep.subr.bf16.mxu0 %v951_v46 }
  0x2a   :  { %889 = vmatprep.subr.bf16.mxu1 %v952_v47 }
  0x2c   :  { %868 = vmatpush3.bf16.msra.mxu0 %v953_v48 }
  0x2d   :  { %890 = vmatpush3.bf16.msra.mxu1 %v954_v49  ;;  %869 = vmatprep.subr.bf16.mxu0 %v955_v50 }
  0x2e   :  { %891 = vmatprep.subr.bf16.mxu1 %v956_v51 }
  0x30   :  { %870 = vmatpush3.bf16.msra.mxu0 %v957_v52 }
  0x31   :  { %892 = vmatpush3.bf16.msra.mxu1 %v958_v53  ;;  %871 = vmatprep.subr.bf16.mxu0 %v959_v54 }
  0x32   :  { %893 = vmatprep.subr.bf16.mxu1 %v960_v55 }
  0x34   :  { %872 = vmatpush3.bf16.msra.mxu0 %v961_v56 }
  0x35   :  { %894 = vmatpush3.bf16.msra.mxu1 %v962_v57  ;;  %873 = vmatprep.subr.bf16.mxu0 %v963_v58 }
  0x36   :  { %895 = vmatprep.subr.bf16.mxu1 %v964_v59 }
  0x38   :  { %874 = vmatpush3.bf16.msra.mxu0 %v965_v60 }
  0x39   :  { %896 = vmatpush3.bf16.msra.mxu1 %v966_v61  ;;  %875 = vmatprep.subr.bf16.mxu0 %v967_v62 }
  0x3a   :  { %897 = vmatprep.subr.bf16.mxu1 %v968_v63 }
  0x3c   :  { %876 = vmatpush3.bf16.msra.mxu0 %v969_v0 }
  0x3d   :  { %898 = vmatpush3.bf16.msra.mxu1 %v970_v1  ;;  %877 = vmatprep.subr.bf16.mxu0 %v971_v2 }
  0x3e   :  { %899 = vmatprep.subr.bf16.mxu1 %v972_v3 }
  0x40   :  { %878 = vmatpush3.bf16.msra.mxu0 %v973_v4 }
  0x41   :  { %900 = vmatpush3.bf16.msra.mxu1 %v974_v5 }
  0x43   :  { %672 = vmatmul.mubr.bf16.vlgmr.msra.gmra.mxu0 %v751_v7 }
  0x44   :  { %712 = vmatmul.mubr.bf16.vlgmr.msra.gmra.mxu1 %v753_v10 }
  0xe3   :  { %v835_v12 = vpop.f32.mrf.mxu0 }
  0xe4   :  { %v857_v13 = vpop.f32.mrf.mxu1 }
  0xe5   :  { %v836_v14 = vpop.f32.mrf.mxu0 }
  0xe6   :  { %v858_v15 = vpop.f32.mrf.mxu1  ;;  %v837_v20 = vadd.f32 %v836_v14, %v835_v12 }
  0xe7   :  { %v838_v16 = vpop.f32.mrf.mxu0  ;;  %v859_v21 = vadd.f32 %v858_v15, %v857_v13 }
  0xe8   :  { %v860_v17 = vpop.f32.mrf.mxu1 }
  0xe9   :  { %v839_v18 = vpop.f32.mrf.mxu0  ;;  %v634_v26 = vadd.f32 %v859_v21, %v837_v20 }
  0xea   :  { %v861_v19 = vpop.f32.mrf.mxu1 }
 0x103   :  { %v879_v22 = vpop.f32.mrf.mxu0 }
 0x104   :  { %v901_v23 = vpop.f32.mrf.mxu1 }
 0x105   :  { %v880_v24 = vpop.f32.mrf.mxu0 }
 0x106   :  { %v902_v25 = vpop.f32.mrf.mxu1  ;;  %v881_v27 = vadd.f32 %v880_v24, %v879_v22 }
 0x107   :  { %v882_v28 = vpop.f32.mrf.mxu0  ;;  %v903_v31 = vadd.f32 %v902_v25, %v901_v23 }
 0x108   :  { %v904_v29 = vpop.f32.mrf.mxu1  ;;  %v674_v30 = vadd.f32 %v881_v27, %v634_v26 }
 0x109   :  { %v883_v32 = vpop.f32.mrf.mxu0 }
 0x10a   :  { %v905_v33 = vpop.f32.mrf.mxu1  ;;  %v714_v34 = vadd.f32 %v903_v31, %v674_v30 }
 0x10c   :  { %719 = vst [vmem:[%s1219_s2] sm:$0xff] %v714_v34  ;;  %v720_v35 = vrot.slane %v714_v34, 4  ;;  %v726_v36 = vmul.f32 %v714_v34, %v714_v34 }
 0x10e   :  { %v721_v37 = vadd.f32 %v720_v35, %v714_v34  ;;  %v727_v38 = vrot.slane %v726_v36, 4 }
 0x110   :  { %v722_v39 = vrot.slane %v721_v37, 2  ;;  %v728_v40 = vadd.f32 %v727_v38, %v726_v36 }
 0x112   :  { %v723_v41 = vadd.f32 %v722_v39, %v721_v37  ;;  %v729_v42 = vrot.slane %v728_v40, 2 }
 0x114   :  { %v724_v43 = vrot.slane %v723_v41, 1  ;;  %v730_v44 = vadd.f32 %v729_v42, %v728_v40 }
 0x116   :  { %v725_v45 = vadd.f32 %v724_v43, %v723_v41  ;;  %v731_v46 = vrot.slane %v730_v44, 1 }
 0x118   :  { %v732_v47 = vadd.f32 %v731_v46, %v730_v44  ;;  %733 = vst [vmem:[%s1220_s3] sm:$0x1] %v725_v45 }
 0x11a   :  { %734 = vst [vmem:[%s1221_s4] sm:$0x1] %v732_v47 }

</bundles_post_ra>
